<compile_context>
chip_gen: v6e
topology: v6e:2x2x1
jax: 0.10.0
libtpu: 0.0.40
codegen_flags: <defaults>
</compile_context>

<pallas_src>
import functools

import jax
import jax.numpy as jnp
import numpy as np
from jax import lax
from jax.experimental import pallas as pl
from jax.experimental.pallas import tpu as pltpu

FLT_MAX = np.float32(3.4028235e38)


# ----------------------------- Pallas kernel -------------------------------- #
def _roi_ring_pool_kernel(roi_ref, feat_ref, out_ref, *, pooled_h, pooled_w,
                          height, width, rois_per_block):
    # roi_ref : SMEM (n_pad * 8,) int32, flattened per-ROI
    #           [sw, sh, ew, eh, sw_in, sh_in, ew_in, eh_in]
    # feat_ref: VMEM (H, W, TC) float32   (channel tile of feature map, image 0)
    # out_ref : VMEM (RB, PH, PW, TC) float32
    neg_max = jnp.float32(-FLT_MAX)

    # Iotas with a trailing (lane) singleton: W stays on sublanes and the masks
    # broadcast along the channel/lane axis for free (no lane->sublane relayout).
    h_ids = lax.broadcasted_iota(jnp.int32, (height, width, 1), 0)
    w_ids = lax.broadcasted_iota(jnp.int32, (height, width, 1), 1)
    w_ids_2d = lax.broadcasted_iota(jnp.int32, (width, 1), 0)

    roi_block = pl.program_id(1)

    def roi_body(rr, carry):
        base = (roi_block * rois_per_block + rr) * 8
        sw = roi_ref[base + 0]
        sh = roi_ref[base + 1]
        ew = roi_ref[base + 2]
        eh = roi_ref[base + 3]
        sw_in = roi_ref[base + 4]
        sh_in = roi_ref[base + 5]
        ew_in = roi_ref[base + 6]
        eh_in = roi_ref[base + 7]

        roi_w = jnp.maximum(ew - sw + 1, 1).astype(jnp.float32)
        roi_h = jnp.maximum(eh - sh + 1, 1).astype(jnp.float32)
        bin_h = roi_h / jnp.float32(pooled_h)
        bin_w = roi_w / jnp.float32(pooled_w)

        # Strict inner-box exclusion (computed once per ROI, folded into the
        # per-ph mask below so no full (H, W, TC) select is materialized).
        not_inner = jnp.logical_not((w_ids > sw_in) & (w_ids < ew_in) &
                                    (h_ids > sh_in) & (h_ids < eh_in))  # (H,W,1)

        rows = []
        for ph in range(pooled_h):
            # h-range scalars + h-bin mask hoisted out of the pw loop.
            hstart = jnp.clip(
                jnp.floor(jnp.float32(ph) * bin_h).astype(jnp.int32) + sh,
                0, height)
            hend = jnp.clip(
                jnp.ceil(jnp.float32(ph + 1) * bin_h).astype(jnp.int32) + sh,
                0, height)
            mask_h = (h_ids >= hstart) & (h_ids < hend) & not_inner    # (H,W,1)

            # Stage 1: reduce the bin's rows over H -> (W, TC) partial.
            partial = jnp.max(jnp.where(mask_h, feat_ref[...], neg_max), axis=0)

            cols = []
            for pw in range(pooled_w):
                wstart = jnp.clip(
                    jnp.floor(jnp.float32(pw) * bin_w).astype(jnp.int32) + sw,
                    0, width)
                wend = jnp.clip(
                    jnp.ceil(jnp.float32(pw + 1) * bin_w).astype(jnp.int32) + sw,
                    0, width)
                is_empty = jnp.logical_or(hend <= hstart, wend <= wstart)

                # Stage 2: reduce only the (W, TC) partial over W.
                w_in_bin = (w_ids_2d >= wstart) & (w_ids_2d < wend)    # (W, 1)
                maxval = jnp.max(jnp.where(w_in_bin, partial, neg_max),
                                 axis=0, keepdims=True)                # (1, TC)
                cols.append(jnp.where(is_empty, jnp.float32(0.0), maxval))
            rows.append(jnp.concatenate(cols, axis=0)[None])           # (1,PW,TC)

        # One dense store per ROI (dynamic index on the leading, untiled axis).
        out_ref[rr] = jnp.concatenate(rows, axis=0)                    # (PH,PW,TC)
        return carry

    lax.fori_loop(0, rois_per_block, roi_body, 0)


# ----------------------------- JAX glue -------------------------------------- #
def _round_half_away_from_zero(x):
    # C's round(): halfway cases go away from zero.
    return jnp.sign(x) * jnp.floor(jnp.abs(x) + 0.5)


def _process_rois(rois, spatial_scale, scale_inner, scale_outer):
    """RectangularRing + round(x*spatial_scale) -> int coords (N, 8)."""
    rois = rois.astype(jnp.float32)
    ctr_x = (rois[:, 0] + rois[:, 2]) / 2
    ctr_y = (rois[:, 1] + rois[:, 3]) / 2
    w_half = (rois[:, 2] - rois[:, 0]) / 2
    h_half = (rois[:, 3] - rois[:, 1]) / 2
    outer = jnp.stack([ctr_x - w_half * scale_outer, ctr_y - h_half * scale_outer,
                       ctr_x + w_half * scale_outer, ctr_y + h_half * scale_outer],
                      axis=1)
    inner = jnp.stack([ctr_x - w_half * scale_inner, ctr_y - h_half * scale_inner,
                       ctr_x + w_half * scale_inner, ctr_y + h_half * scale_inner],
                      axis=1)
    if scale_inner == 0:
        inner = jnp.zeros_like(inner)
    coords = jnp.concatenate([outer, inner], axis=1) * spatial_scale
    return _round_half_away_from_zero(coords).astype(jnp.int32)


def _pick_channel_tile(C, H, W, itemsize=4, tile_budget_bytes=8 * 1024 * 1024):
    """Largest channel tile that is a multiple of 128, divides C, and keeps an
    (H, W, TC) feature tile small enough that (double-buffer + in-kernel temps)
    comfortably fits the 64 MiB/core VMEM of v7x and default scoped limits."""
    cands = [t for t in range(128, C + 1, 128) if C % t == 0]
    if not cands:
        return C                      # small C: take the whole channel axis
    fits = [t for t in cands if H * W * t * itemsize <= tile_budget_bytes]
    return max(fits) if fits else min(cands)


def roi_ring_pool(features, rois_list, pooled_height, pooled_width,
                  spatial_scale, scale_inner, scale_outer, rois_per_block=8):
    """features: tuple whose first element is (B, C, H, W) NCHW float array.
    rois_list: list (length B) of (num_rois_i, 4) boxes (x1, y1, x2, y2).
    Returns (sum_i num_rois_i, C, pooled_height, pooled_width) float32."""
    feats = jnp.asarray(features[0], jnp.float32)
    _, C, H, W = feats.shape
    H, W, C = int(H), int(W), int(C)
    # Faithful to the reference: the batch-index column of processed_rois is
    # never filled, so every ROI (from every image) pools from image 0.
    feat_hwc = jnp.transpose(feats[0], (1, 2, 0))               # (H, W, C)

    all_rois = jnp.concatenate([jnp.asarray(r, jnp.float32) for r in rois_list],
                               axis=0)
    roi_int = _process_rois(all_rois, spatial_scale, scale_inner, scale_outer)
    n_rois = int(all_rois.shape[0])

    PH, PW = int(pooled_height), int(pooled_width)
    RB = max(1, min(int(rois_per_block), n_rois))               # ROIs / grid step
    n_blocks = -(-n_rois // RB)
    n_pad = n_blocks * RB

    # Flattened 1D int32 coord table -> compact SMEM footprint.
    roi_pad = jnp.zeros((n_pad, 8), jnp.int32).at[:n_rois].set(roi_int)
    roi_flat = roi_pad.reshape(-1)

    TC = _pick_channel_tile(C, H, W)
    n_ctiles = C // TC

    feat_tile_bytes = H * W * TC * 4
    out_block_bytes = RB * PH * PW * TC * 4
    vmem_limit = int(min(max(4 * feat_tile_bytes + 4 * out_block_bytes + (8 << 20),
                             32 << 20), 56 << 20))

    kern = functools.partial(_roi_ring_pool_kernel, pooled_h=PH, pooled_w=PW,
                             height=H, width=W, rois_per_block=RB)

    out = pl.pallas_call(
        kern,
        out_shape=jax.ShapeDtypeStruct((n_pad, PH, PW, C), jnp.float32),
        grid_spec=pltpu.PrefetchScalarGridSpec(
            num_scalar_prefetch=1,                   # roi_flat -> SMEM
            # Channel-tile axis OUTERMOST: the (H, W, TC) feature tile stays
            # resident across all ROI blocks -> HBM traffic ~ one map read.
            grid=(n_ctiles, n_blocks),
            in_specs=[pl.BlockSpec((H, W, TC), lambda c, n, roi: (0, 0, c))],
            out_specs=pl.BlockSpec((RB, PH, PW, TC),
                                   lambda c, n, roi: (n, 0, 0, c)),
        ),
        compiler_params=pltpu.CompilerParams(
            dimension_semantics=("parallel", "parallel"),
            vmem_limit_bytes=vmem_limit),
    )(roi_flat, feat_hwc)

    out = out[:n_rois]
    # Back to the PyTorch output layout (num_rois, C, PH, PW).
    return jnp.transpose(out, (0, 3, 1, 2))


# ----------------------------- numpy reference ------------------------------- #
def _reference(feat_chw, roi_int, pooled_h, pooled_w):
    C, H, W = feat_chw.shape
    N = roi_int.shape[0]
    out = np.zeros((N, C, pooled_h, pooled_w), np.float32)
    for n in range(N):
        sw, sh, ew, eh, sw_in, sh_in, ew_in, eh_in = [int(v) for v in roi_int[n]]
        roi_w = max(ew - sw + 1, 1)
        roi_h = max(eh - sh + 1, 1)
        bin_h = np.float32(roi_h) / np.float32(pooled_h)
        bin_w = np.float32(roi_w) / np.float32(pooled_w)
        for ph in range(pooled_h):
            hstart = min(max(int(np.floor(np.float32(ph) * bin_h)) + sh, 0), H)
            hend = min(max(int(np.ceil(np.float32(ph + 1) * bin_h)) + sh, 0), H)
            for pw in range(pooled_w):
                wstart = min(max(int(np.floor(np.float32(pw) * bin_w)) + sw, 0), W)
                wend = min(max(int(np.ceil(np.float32(pw + 1) * bin_w)) + sw, 0), W)
                is_empty = (hend <= hstart) or (wend <= wstart)
                for c in range(C):
                    maxval = 0.0 if is_empty else -float(FLT_MAX)
                    for h in range(hstart, hend):
                        for w in range(wstart, wend):
                            if not (w > sw_in and w < ew_in and
                                    h > sh_in and h < eh_in):
                                v = float(feat_chw[c, h, w])
                                if v > maxval:
                                    maxval = v
                    out[n, c, ph, pw] = maxval
    return out


# ----------------------------- demo ------------------------------------------ #
if __name__ == "__main__":
    # Module config (RoIRingPool(pooled_h, pooled_w, spatial_scale, inner, outer))
    POOLED_H, POOLED_W = 4, 4
    SPATIAL_SCALE = 0.5
    SCALE_INNER, SCALE_OUTER = 0.2, 1.3

    B, C, H, W = 2, 8, 16, 16
    R = 3  # rois per image

    key = jax.random.PRNGKey(0)
    kf, kxy, kwh = jax.random.split(key, 3)
    feats = jax.random.normal(kf, (B, C, H, W), jnp.float32)
    xy = jax.random.uniform(kxy, (B, R, 2), minval=0.0, maxval=18.0)
    wh = jax.random.uniform(kwh, (B, R, 2), minval=4.0, maxval=12.0)
    boxes = jnp.concatenate([xy, xy + wh], axis=-1)      # (B, R, 4) x1,y1,x2,y2
    rois_list = [boxes[i] for i in range(B)]

    out = roi_ring_pool((feats,), rois_list, POOLED_H, POOLED_W,
                        SPATIAL_SCALE, SCALE_INNER, SCALE_OUTER)
    out = jax.block_until_ready(out)

    # Verify against a direct numpy port of the CUDA forward.
    all_rois = jnp.concatenate(rois_list, axis=0)
    roi_int = np.asarray(
        _process_rois(all_rois, SPATIAL_SCALE, SCALE_INNER, SCALE_OUTER))
    ref = _reference(np.asarray(feats[0]), roi_int, POOLED_H, POOLED_W)
    np.testing.assert_allclose(np.asarray(out), ref, rtol=0, atol=1e-6)

    print("KERNEL_OK")
</pallas_src>

<mosaic_0001>
module attributes {stable_mosaic.version = 11 : i64} {
  func.func @_roi_ring_pool_kernel(%arg0: i32, %arg1: i32, %arg2: memref<48xi32, #tpu.memory_space<smem>>, %arg3: memref<16x16x8xf32, #tpu.memory_space<vmem>>, %arg4: memref<6x4x4x8xf32, #tpu.memory_space<vmem>>) attributes {dimension_semantics = [#tpu.dimension_semantics<parallel>, #tpu.dimension_semantics<parallel>], iteration_bounds = array<i64: 1, 1>, scalar_prefetch = 1 : i64, scratch_operands = 0 : i64, tpu.core_type = #tpu.core_type<tc>, window_params = [{transform_indices = @transform_0, window_bounds = array<i64: 16, 16, 8>}, {transform_indices = @transform_1, window_bounds = array<i64: 6, 4, 4, 8>}]} {
    %0 = tpu.iota {dimensions = array<i32: 0>} : vector<16x16x1xi32>
    %1 = tpu.iota {dimensions = array<i32: 1>} : vector<16x16x1xi32>
    %2 = tpu.iota {dimensions = array<i32: 0>} : vector<16x1xi32>
    %cst = arith.constant -3.40282347E+38 : f32
    %c0_i32 = arith.constant 0 : i32
    %c6_i32 = arith.constant 6 : i32
    %3 = arith.addi %c0_i32, %c6_i32 : i32
    %c1_i32 = arith.constant 1 : i32
    scf.for %arg5 = %c0_i32 to %3 step %c1_i32  : i32 {
      %c6_i32_1 = arith.constant 6 : i32
      %4 = arith.muli %arg1, %c6_i32_1 : i32
      %5 = arith.addi %4, %arg5 : i32
      %c8_i32 = arith.constant 8 : i32
      %6 = arith.muli %5, %c8_i32 : i32
      %c0_i32_2 = arith.constant 0 : i32
      %7 = arith.addi %6, %c0_i32_2 : i32
      %8 = arith.index_cast %7 : i32 to index
      %9 = memref.load %arg2[%8] : memref<48xi32, #tpu.memory_space<smem>>
      %c1_i32_3 = arith.constant 1 : i32
      %10 = arith.addi %6, %c1_i32_3 : i32
      %11 = arith.index_cast %10 : i32 to index
      %12 = memref.load %arg2[%11] : memref<48xi32, #tpu.memory_space<smem>>
      %c2_i32 = arith.constant 2 : i32
      %13 = arith.addi %6, %c2_i32 : i32
      %14 = arith.index_cast %13 : i32 to index
      %15 = memref.load %arg2[%14] : memref<48xi32, #tpu.memory_space<smem>>
      %c3_i32 = arith.constant 3 : i32
      %16 = arith.addi %6, %c3_i32 : i32
      %17 = arith.index_cast %16 : i32 to index
      %18 = memref.load %arg2[%17] : memref<48xi32, #tpu.memory_space<smem>>
      %c4_i32 = arith.constant 4 : i32
      %19 = arith.addi %6, %c4_i32 : i32
      %20 = arith.index_cast %19 : i32 to index
      %21 = memref.load %arg2[%20] : memref<48xi32, #tpu.memory_space<smem>>
      %c5_i32 = arith.constant 5 : i32
      %22 = arith.addi %6, %c5_i32 : i32
      %23 = arith.index_cast %22 : i32 to index
      %24 = memref.load %arg2[%23] : memref<48xi32, #tpu.memory_space<smem>>
      %c6_i32_4 = arith.constant 6 : i32
      %25 = arith.addi %6, %c6_i32_4 : i32
      %26 = arith.index_cast %25 : i32 to index
      %27 = memref.load %arg2[%26] : memref<48xi32, #tpu.memory_space<smem>>
      %c7_i32 = arith.constant 7 : i32
      %28 = arith.addi %6, %c7_i32 : i32
      %29 = arith.index_cast %28 : i32 to index
      %30 = memref.load %arg2[%29] : memref<48xi32, #tpu.memory_space<smem>>
      %31 = arith.subi %15, %9 : i32
      %c1_i32_5 = arith.constant 1 : i32
      %32 = arith.addi %31, %c1_i32_5 : i32
      %c1_i32_6 = arith.constant 1 : i32
      %33 = arith.maxsi %32, %c1_i32_6 : i32
      %34 = arith.sitofp %33 : i32 to f32
      %35 = arith.subi %18, %12 : i32
      %c1_i32_7 = arith.constant 1 : i32
      %36 = arith.addi %35, %c1_i32_7 : i32
      %c1_i32_8 = arith.constant 1 : i32
      %37 = arith.maxsi %36, %c1_i32_8 : i32
      %38 = arith.sitofp %37 : i32 to f32
      %cst_9 = arith.constant 4.000000e+00 : f32
      %39 = arith.divf %38, %cst_9 : f32
      %cst_10 = arith.constant 4.000000e+00 : f32
      %40 = arith.divf %34, %cst_10 : f32
      %41 = vector.broadcast %21 : i32 to vector<16x16x1xi32>
      %42 = arith.cmpi sgt, %1, %41 : vector<16x16x1xi32>
      %43 = vector.broadcast %27 : i32 to vector<16x16x1xi32>
      %44 = arith.cmpi slt, %1, %43 : vector<16x16x1xi32>
      %45 = arith.andi %42, %44 : vector<16x16x1xi1>
      %46 = vector.broadcast %24 : i32 to vector<16x16x1xi32>
      %47 = arith.cmpi sgt, %0, %46 : vector<16x16x1xi32>
      %48 = arith.andi %45, %47 : vector<16x16x1xi1>
      %49 = vector.broadcast %30 : i32 to vector<16x16x1xi32>
      %50 = arith.cmpi slt, %0, %49 : vector<16x16x1xi32>
      %51 = arith.andi %48, %50 : vector<16x16x1xi1>
      %cst_11 = arith.constant dense<true> : vector<16x16x1xi1>
      %52 = arith.xori %51, %cst_11 : vector<16x16x1xi1>
      %cst_12 = arith.constant 0.000000e+00 : f32
      %53 = arith.mulf %cst_12, %39 : f32
      %54 = math.floor %53 : f32
      %55 = arith.fptosi %54 : f32 to i32
      %56 = arith.addi %55, %12 : i32
      %c0_i32_13 = arith.constant 0 : i32
      %c16_i32 = arith.constant 16 : i32
      %57 = arith.maxsi %c0_i32_13, %56 : i32
      %58 = arith.minsi %c16_i32, %57 : i32
      %cst_14 = arith.constant 1.000000e+00 : f32
      %59 = arith.mulf %cst_14, %39 : f32
      %60 = math.ceil %59 : f32
      %61 = arith.fptosi %60 : f32 to i32
      %62 = arith.addi %61, %12 : i32
      %c0_i32_15 = arith.constant 0 : i32
      %c16_i32_16 = arith.constant 16 : i32
      %63 = arith.maxsi %c0_i32_15, %62 : i32
      %64 = arith.minsi %c16_i32_16, %63 : i32
      %65 = vector.broadcast %58 : i32 to vector<16x16x1xi32>
      %66 = arith.cmpi sge, %0, %65 : vector<16x16x1xi32>
      %67 = vector.broadcast %64 : i32 to vector<16x16x1xi32>
      %68 = arith.cmpi slt, %0, %67 : vector<16x16x1xi32>
      %69 = arith.andi %66, %68 : vector<16x16x1xi1>
      %70 = arith.andi %69, %52 : vector<16x16x1xi1>
      %c0 = arith.constant 0 : index
      %c0_17 = arith.constant 0 : index
      %c0_18 = arith.constant 0 : index
      %71 = vector.load %arg3[%c0, %c0_17, %c0_18] : memref<16x16x8xf32, #tpu.memory_space<vmem>>, vector<16x16x8xf32>
      %72 = vector.shape_cast %70 : vector<16x16x1xi1> to vector<16x16x1xi1>
      %73 = vector.broadcast %72 : vector<16x16x1xi1> to vector<16x16x8xi1>
      %74 = vector.broadcast %cst : f32 to vector<16x16x8xf32>
      %75 = arith.select %73, %71, %74 : vector<16x16x8xi1>, vector<16x16x8xf32>
      %cst_19 = arith.constant dense<0xFF800000> : vector<16x8xf32>
      %76 = vector.multi_reduction <maximumf>, %75, %cst_19 [0] : vector<16x16x8xf32> to vector<16x8xf32>
      %cst_20 = arith.constant 0.000000e+00 : f32
      %77 = arith.mulf %cst_20, %40 : f32
      %78 = math.floor %77 : f32
      %79 = arith.fptosi %78 : f32 to i32
      %80 = arith.addi %79, %9 : i32
      %c0_i32_21 = arith.constant 0 : i32
      %c16_i32_22 = arith.constant 16 : i32
      %81 = arith.maxsi %c0_i32_21, %80 : i32
      %82 = arith.minsi %c16_i32_22, %81 : i32
      %cst_23 = arith.constant 1.000000e+00 : f32
      %83 = arith.mulf %cst_23, %40 : f32
      %84 = math.ceil %83 : f32
      %85 = arith.fptosi %84 : f32 to i32
      %86 = arith.addi %85, %9 : i32
      %c0_i32_24 = arith.constant 0 : i32
      %c16_i32_25 = arith.constant 16 : i32
      %87 = arith.maxsi %c0_i32_24, %86 : i32
      %88 = arith.minsi %c16_i32_25, %87 : i32
      %89 = arith.cmpi sle, %64, %58 : i32
      %90 = arith.cmpi sle, %88, %82 : i32
      %91 = arith.ori %89, %90 : i1
      %92 = vector.broadcast %82 : i32 to vector<16x1xi32>
      %93 = arith.cmpi sge, %2, %92 : vector<16x1xi32>
      %94 = vector.broadcast %88 : i32 to vector<16x1xi32>
      %95 = arith.cmpi slt, %2, %94 : vector<16x1xi32>
      %96 = arith.andi %93, %95 : vector<16x1xi1>
      %97 = vector.shape_cast %96 : vector<16x1xi1> to vector<16x1xi1>
      %98 = vector.broadcast %97 : vector<16x1xi1> to vector<16x8xi1>
      %99 = vector.broadcast %cst : f32 to vector<16x8xf32>
      %100 = arith.select %98, %76, %99 : vector<16x8xi1>, vector<16x8xf32>
      %cst_26 = arith.constant dense<0xFF800000> : vector<8xf32>
      %101 = vector.multi_reduction <maximumf>, %100, %cst_26 [0] : vector<16x8xf32> to vector<8xf32>
      %102 = vector.shape_cast %101 : vector<8xf32> to vector<1x8xf32>
      %cst_27 = arith.constant 0.000000e+00 : f32
      %103 = vector.broadcast %cst_27 : f32 to vector<1x8xf32>
      %104 = arith.select %91, %103, %102 : vector<1x8xf32>
      %cst_28 = arith.constant 1.000000e+00 : f32
      %105 = arith.mulf %cst_28, %40 : f32
      %106 = math.floor %105 : f32
      %107 = arith.fptosi %106 : f32 to i32
      %108 = arith.addi %107, %9 : i32
      %c0_i32_29 = arith.constant 0 : i32
      %c16_i32_30 = arith.constant 16 : i32
      %109 = arith.maxsi %c0_i32_29, %108 : i32
      %110 = arith.minsi %c16_i32_30, %109 : i32
      %cst_31 = arith.constant 2.000000e+00 : f32
      %111 = arith.mulf %cst_31, %40 : f32
      %112 = math.ceil %111 : f32
      %113 = arith.fptosi %112 : f32 to i32
      %114 = arith.addi %113, %9 : i32
      %c0_i32_32 = arith.constant 0 : i32
      %c16_i32_33 = arith.constant 16 : i32
      %115 = arith.maxsi %c0_i32_32, %114 : i32
      %116 = arith.minsi %c16_i32_33, %115 : i32
      %117 = arith.cmpi sle, %64, %58 : i32
      %118 = arith.cmpi sle, %116, %110 : i32
      %119 = arith.ori %117, %118 : i1
      %120 = vector.broadcast %110 : i32 to vector<16x1xi32>
      %121 = arith.cmpi sge, %2, %120 : vector<16x1xi32>
      %122 = vector.broadcast %116 : i32 to vector<16x1xi32>
      %123 = arith.cmpi slt, %2, %122 : vector<16x1xi32>
      %124 = arith.andi %121, %123 : vector<16x1xi1>
      %125 = vector.shape_cast %124 : vector<16x1xi1> to vector<16x1xi1>
      %126 = vector.broadcast %125 : vector<16x1xi1> to vector<16x8xi1>
      %127 = vector.broadcast %cst : f32 to vector<16x8xf32>
      %128 = arith.select %126, %76, %127 : vector<16x8xi1>, vector<16x8xf32>
      %cst_34 = arith.constant dense<0xFF800000> : vector<8xf32>
      %129 = vector.multi_reduction <maximumf>, %128, %cst_34 [0] : vector<16x8xf32> to vector<8xf32>
      %130 = vector.shape_cast %129 : vector<8xf32> to vector<1x8xf32>
      %cst_35 = arith.constant 0.000000e+00 : f32
      %131 = vector.broadcast %cst_35 : f32 to vector<1x8xf32>
      %132 = arith.select %119, %131, %130 : vector<1x8xf32>
      %cst_36 = arith.constant 2.000000e+00 : f32
      %133 = arith.mulf %cst_36, %40 : f32
      %134 = math.floor %133 : f32
      %135 = arith.fptosi %134 : f32 to i32
      %136 = arith.addi %135, %9 : i32
      %c0_i32_37 = arith.constant 0 : i32
      %c16_i32_38 = arith.constant 16 : i32
      %137 = arith.maxsi %c0_i32_37, %136 : i32
      %138 = arith.minsi %c16_i32_38, %137 : i32
      %cst_39 = arith.constant 3.000000e+00 : f32
      %139 = arith.mulf %cst_39, %40 : f32
      %140 = math.ceil %139 : f32
      %141 = arith.fptosi %140 : f32 to i32
      %142 = arith.addi %141, %9 : i32
      %c0_i32_40 = arith.constant 0 : i32
      %c16_i32_41 = arith.constant 16 : i32
      %143 = arith.maxsi %c0_i32_40, %142 : i32
      %144 = arith.minsi %c16_i32_41, %143 : i32
      %145 = arith.cmpi sle, %64, %58 : i32
      %146 = arith.cmpi sle, %144, %138 : i32
      %147 = arith.ori %145, %146 : i1
      %148 = vector.broadcast %138 : i32 to vector<16x1xi32>
      %149 = arith.cmpi sge, %2, %148 : vector<16x1xi32>
      %150 = vector.broadcast %144 : i32 to vector<16x1xi32>
      %151 = arith.cmpi slt, %2, %150 : vector<16x1xi32>
      %152 = arith.andi %149, %151 : vector<16x1xi1>
      %153 = vector.shape_cast %152 : vector<16x1xi1> to vector<16x1xi1>
      %154 = vector.broadcast %153 : vector<16x1xi1> to vector<16x8xi1>
      %155 = vector.broadcast %cst : f32 to vector<16x8xf32>
      %156 = arith.select %154, %76, %155 : vector<16x8xi1>, vector<16x8xf32>
      %cst_42 = arith.constant dense<0xFF800000> : vector<8xf32>
      %157 = vector.multi_reduction <maximumf>, %156, %cst_42 [0] : vector<16x8xf32> to vector<8xf32>
      %158 = vector.shape_cast %157 : vector<8xf32> to vector<1x8xf32>
      %cst_43 = arith.constant 0.000000e+00 : f32
      %159 = vector.broadcast %cst_43 : f32 to vector<1x8xf32>
      %160 = arith.select %147, %159, %158 : vector<1x8xf32>
      %cst_44 = arith.constant 3.000000e+00 : f32
      %161 = arith.mulf %cst_44, %40 : f32
      %162 = math.floor %161 : f32
      %163 = arith.fptosi %162 : f32 to i32
      %164 = arith.addi %163, %9 : i32
      %c0_i32_45 = arith.constant 0 : i32
      %c16_i32_46 = arith.constant 16 : i32
      %165 = arith.maxsi %c0_i32_45, %164 : i32
      %166 = arith.minsi %c16_i32_46, %165 : i32
      %cst_47 = arith.constant 4.000000e+00 : f32
      %167 = arith.mulf %cst_47, %40 : f32
      %168 = math.ceil %167 : f32
      %169 = arith.fptosi %168 : f32 to i32
      %170 = arith.addi %169, %9 : i32
      %c0_i32_48 = arith.constant 0 : i32
      %c16_i32_49 = arith.constant 16 : i32
      %171 = arith.maxsi %c0_i32_48, %170 : i32
      %172 = arith.minsi %c16_i32_49, %171 : i32
      %173 = arith.cmpi sle, %64, %58 : i32
      %174 = arith.cmpi sle, %172, %166 : i32
      %175 = arith.ori %173, %174 : i1
      %176 = vector.broadcast %166 : i32 to vector<16x1xi32>
      %177 = arith.cmpi sge, %2, %176 : vector<16x1xi32>
      %178 = vector.broadcast %172 : i32 to vector<16x1xi32>
      %179 = arith.cmpi slt, %2, %178 : vector<16x1xi32>
      %180 = arith.andi %177, %179 : vector<16x1xi1>
      %181 = vector.shape_cast %180 : vector<16x1xi1> to vector<16x1xi1>
      %182 = vector.broadcast %181 : vector<16x1xi1> to vector<16x8xi1>
      %183 = vector.broadcast %cst : f32 to vector<16x8xf32>
      %184 = arith.select %182, %76, %183 : vector<16x8xi1>, vector<16x8xf32>
      %cst_50 = arith.constant dense<0xFF800000> : vector<8xf32>
      %185 = vector.multi_reduction <maximumf>, %184, %cst_50 [0] : vector<16x8xf32> to vector<8xf32>
      %186 = vector.shape_cast %185 : vector<8xf32> to vector<1x8xf32>
      %cst_51 = arith.constant 0.000000e+00 : f32
      %187 = vector.broadcast %cst_51 : f32 to vector<1x8xf32>
      %188 = arith.select %175, %187, %186 : vector<1x8xf32>
      %189 = tpu.concatenate %104, %132, %160, %188 in 0 : vector<1x8xf32>, vector<1x8xf32>, vector<1x8xf32>, vector<1x8xf32> -> vector<4x8xf32>
      %190 = vector.shape_cast %189 : vector<4x8xf32> to vector<1x4x8xf32>
      %cst_52 = arith.constant 1.000000e+00 : f32
      %191 = arith.mulf %cst_52, %39 : f32
      %192 = math.floor %191 : f32
      %193 = arith.fptosi %192 : f32 to i32
      %194 = arith.addi %193, %12 : i32
      %c0_i32_53 = arith.constant 0 : i32
      %c16_i32_54 = arith.constant 16 : i32
      %195 = arith.maxsi %c0_i32_53, %194 : i32
      %196 = arith.minsi %c16_i32_54, %195 : i32
      %cst_55 = arith.constant 2.000000e+00 : f32
      %197 = arith.mulf %cst_55, %39 : f32
      %198 = math.ceil %197 : f32
      %199 = arith.fptosi %198 : f32 to i32
      %200 = arith.addi %199, %12 : i32
      %c0_i32_56 = arith.constant 0 : i32
      %c16_i32_57 = arith.constant 16 : i32
      %201 = arith.maxsi %c0_i32_56, %200 : i32
      %202 = arith.minsi %c16_i32_57, %201 : i32
      %203 = vector.broadcast %196 : i32 to vector<16x16x1xi32>
      %204 = arith.cmpi sge, %0, %203 : vector<16x16x1xi32>
      %205 = vector.broadcast %202 : i32 to vector<16x16x1xi32>
      %206 = arith.cmpi slt, %0, %205 : vector<16x16x1xi32>
      %207 = arith.andi %204, %206 : vector<16x16x1xi1>
      %208 = arith.andi %207, %52 : vector<16x16x1xi1>
      %c0_58 = arith.constant 0 : index
      %c0_59 = arith.constant 0 : index
      %c0_60 = arith.constant 0 : index
      %209 = vector.load %arg3[%c0_58, %c0_59, %c0_60] : memref<16x16x8xf32, #tpu.memory_space<vmem>>, vector<16x16x8xf32>
      %210 = vector.shape_cast %208 : vector<16x16x1xi1> to vector<16x16x1xi1>
      %211 = vector.broadcast %210 : vector<16x16x1xi1> to vector<16x16x8xi1>
      %212 = vector.broadcast %cst : f32 to vector<16x16x8xf32>
      %213 = arith.select %211, %209, %212 : vector<16x16x8xi1>, vector<16x16x8xf32>
      %cst_61 = arith.constant dense<0xFF800000> : vector<16x8xf32>
      %214 = vector.multi_reduction <maximumf>, %213, %cst_61 [0] : vector<16x16x8xf32> to vector<16x8xf32>
      %cst_62 = arith.constant 0.000000e+00 : f32
      %215 = arith.mulf %cst_62, %40 : f32
      %216 = math.floor %215 : f32
      %217 = arith.fptosi %216 : f32 to i32
      %218 = arith.addi %217, %9 : i32
      %c0_i32_63 = arith.constant 0 : i32
      %c16_i32_64 = arith.constant 16 : i32
      %219 = arith.maxsi %c0_i32_63, %218 : i32
      %220 = arith.minsi %c16_i32_64, %219 : i32
      %cst_65 = arith.constant 1.000000e+00 : f32
      %221 = arith.mulf %cst_65, %40 : f32
      %222 = math.ceil %221 : f32
      %223 = arith.fptosi %222 : f32 to i32
      %224 = arith.addi %223, %9 : i32
      %c0_i32_66 = arith.constant 0 : i32
      %c16_i32_67 = arith.constant 16 : i32
      %225 = arith.maxsi %c0_i32_66, %224 : i32
      %226 = arith.minsi %c16_i32_67, %225 : i32
      %227 = arith.cmpi sle, %202, %196 : i32
      %228 = arith.cmpi sle, %226, %220 : i32
      %229 = arith.ori %227, %228 : i1
      %230 = vector.broadcast %220 : i32 to vector<16x1xi32>
      %231 = arith.cmpi sge, %2, %230 : vector<16x1xi32>
      %232 = vector.broadcast %226 : i32 to vector<16x1xi32>
      %233 = arith.cmpi slt, %2, %232 : vector<16x1xi32>
      %234 = arith.andi %231, %233 : vector<16x1xi1>
      %235 = vector.shape_cast %234 : vector<16x1xi1> to vector<16x1xi1>
      %236 = vector.broadcast %235 : vector<16x1xi1> to vector<16x8xi1>
      %237 = vector.broadcast %cst : f32 to vector<16x8xf32>
      %238 = arith.select %236, %214, %237 : vector<16x8xi1>, vector<16x8xf32>
      %cst_68 = arith.constant dense<0xFF800000> : vector<8xf32>
      %239 = vector.multi_reduction <maximumf>, %238, %cst_68 [0] : vector<16x8xf32> to vector<8xf32>
      %240 = vector.shape_cast %239 : vector<8xf32> to vector<1x8xf32>
      %cst_69 = arith.constant 0.000000e+00 : f32
      %241 = vector.broadcast %cst_69 : f32 to vector<1x8xf32>
      %242 = arith.select %229, %241, %240 : vector<1x8xf32>
      %cst_70 = arith.constant 1.000000e+00 : f32
      %243 = arith.mulf %cst_70, %40 : f32
      %244 = math.floor %243 : f32
      %245 = arith.fptosi %244 : f32 to i32
      %246 = arith.addi %245, %9 : i32
      %c0_i32_71 = arith.constant 0 : i32
      %c16_i32_72 = arith.constant 16 : i32
      %247 = arith.maxsi %c0_i32_71, %246 : i32
      %248 = arith.minsi %c16_i32_72, %247 : i32
      %cst_73 = arith.constant 2.000000e+00 : f32
      %249 = arith.mulf %cst_73, %40 : f32
      %250 = math.ceil %249 : f32
      %251 = arith.fptosi %250 : f32 to i32
      %252 = arith.addi %251, %9 : i32
      %c0_i32_74 = arith.constant 0 : i32
      %c16_i32_75 = arith.constant 16 : i32
      %253 = arith.maxsi %c0_i32_74, %252 : i32
      %254 = arith.minsi %c16_i32_75, %253 : i32
      %255 = arith.cmpi sle, %202, %196 : i32
      %256 = arith.cmpi sle, %254, %248 : i32
      %257 = arith.ori %255, %256 : i1
      %258 = vector.broadcast %248 : i32 to vector<16x1xi32>
      %259 = arith.cmpi sge, %2, %258 : vector<16x1xi32>
      %260 = vector.broadcast %254 : i32 to vector<16x1xi32>
      %261 = arith.cmpi slt, %2, %260 : vector<16x1xi32>
      %262 = arith.andi %259, %261 : vector<16x1xi1>
      %263 = vector.shape_cast %262 : vector<16x1xi1> to vector<16x1xi1>
      %264 = vector.broadcast %263 : vector<16x1xi1> to vector<16x8xi1>
      %265 = vector.broadcast %cst : f32 to vector<16x8xf32>
      %266 = arith.select %264, %214, %265 : vector<16x8xi1>, vector<16x8xf32>
      %cst_76 = arith.constant dense<0xFF800000> : vector<8xf32>
      %267 = vector.multi_reduction <maximumf>, %266, %cst_76 [0] : vector<16x8xf32> to vector<8xf32>
      %268 = vector.shape_cast %267 : vector<8xf32> to vector<1x8xf32>
      %cst_77 = arith.constant 0.000000e+00 : f32
      %269 = vector.broadcast %cst_77 : f32 to vector<1x8xf32>
      %270 = arith.select %257, %269, %268 : vector<1x8xf32>
      %cst_78 = arith.constant 2.000000e+00 : f32
      %271 = arith.mulf %cst_78, %40 : f32
      %272 = math.floor %271 : f32
      %273 = arith.fptosi %272 : f32 to i32
      %274 = arith.addi %273, %9 : i32
      %c0_i32_79 = arith.constant 0 : i32
      %c16_i32_80 = arith.constant 16 : i32
      %275 = arith.maxsi %c0_i32_79, %274 : i32
      %276 = arith.minsi %c16_i32_80, %275 : i32
      %cst_81 = arith.constant 3.000000e+00 : f32
      %277 = arith.mulf %cst_81, %40 : f32
      %278 = math.ceil %277 : f32
      %279 = arith.fptosi %278 : f32 to i32
      %280 = arith.addi %279, %9 : i32
      %c0_i32_82 = arith.constant 0 : i32
      %c16_i32_83 = arith.constant 16 : i32
      %281 = arith.maxsi %c0_i32_82, %280 : i32
      %282 = arith.minsi %c16_i32_83, %281 : i32
      %283 = arith.cmpi sle, %202, %196 : i32
      %284 = arith.cmpi sle, %282, %276 : i32
      %285 = arith.ori %283, %284 : i1
      %286 = vector.broadcast %276 : i32 to vector<16x1xi32>
      %287 = arith.cmpi sge, %2, %286 : vector<16x1xi32>
      %288 = vector.broadcast %282 : i32 to vector<16x1xi32>
      %289 = arith.cmpi slt, %2, %288 : vector<16x1xi32>
      %290 = arith.andi %287, %289 : vector<16x1xi1>
      %291 = vector.shape_cast %290 : vector<16x1xi1> to vector<16x1xi1>
      %292 = vector.broadcast %291 : vector<16x1xi1> to vector<16x8xi1>
      %293 = vector.broadcast %cst : f32 to vector<16x8xf32>
      %294 = arith.select %292, %214, %293 : vector<16x8xi1>, vector<16x8xf32>
      %cst_84 = arith.constant dense<0xFF800000> : vector<8xf32>
      %295 = vector.multi_reduction <maximumf>, %294, %cst_84 [0] : vector<16x8xf32> to vector<8xf32>
      %296 = vector.shape_cast %295 : vector<8xf32> to vector<1x8xf32>
      %cst_85 = arith.constant 0.000000e+00 : f32
      %297 = vector.broadcast %cst_85 : f32 to vector<1x8xf32>
      %298 = arith.select %285, %297, %296 : vector<1x8xf32>
      %cst_86 = arith.constant 3.000000e+00 : f32
      %299 = arith.mulf %cst_86, %40 : f32
      %300 = math.floor %299 : f32
      %301 = arith.fptosi %300 : f32 to i32
      %302 = arith.addi %301, %9 : i32
      %c0_i32_87 = arith.constant 0 : i32
      %c16_i32_88 = arith.constant 16 : i32
      %303 = arith.maxsi %c0_i32_87, %302 : i32
      %304 = arith.minsi %c16_i32_88, %303 : i32
      %cst_89 = arith.constant 4.000000e+00 : f32
      %305 = arith.mulf %cst_89, %40 : f32
      %306 = math.ceil %305 : f32
      %307 = arith.fptosi %306 : f32 to i32
      %308 = arith.addi %307, %9 : i32
      %c0_i32_90 = arith.constant 0 : i32
      %c16_i32_91 = arith.constant 16 : i32
      %309 = arith.maxsi %c0_i32_90, %308 : i32
      %310 = arith.minsi %c16_i32_91, %309 : i32
      %311 = arith.cmpi sle, %202, %196 : i32
      %312 = arith.cmpi sle, %310, %304 : i32
      %313 = arith.ori %311, %312 : i1
      %314 = vector.broadcast %304 : i32 to vector<16x1xi32>
      %315 = arith.cmpi sge, %2, %314 : vector<16x1xi32>
      %316 = vector.broadcast %310 : i32 to vector<16x1xi32>
      %317 = arith.cmpi slt, %2, %316 : vector<16x1xi32>
      %318 = arith.andi %315, %317 : vector<16x1xi1>
      %319 = vector.shape_cast %318 : vector<16x1xi1> to vector<16x1xi1>
      %320 = vector.broadcast %319 : vector<16x1xi1> to vector<16x8xi1>
      %321 = vector.broadcast %cst : f32 to vector<16x8xf32>
      %322 = arith.select %320, %214, %321 : vector<16x8xi1>, vector<16x8xf32>
      %cst_92 = arith.constant dense<0xFF800000> : vector<8xf32>
      %323 = vector.multi_reduction <maximumf>, %322, %cst_92 [0] : vector<16x8xf32> to vector<8xf32>
      %324 = vector.shape_cast %323 : vector<8xf32> to vector<1x8xf32>
      %cst_93 = arith.constant 0.000000e+00 : f32
      %325 = vector.broadcast %cst_93 : f32 to vector<1x8xf32>
      %326 = arith.select %313, %325, %324 : vector<1x8xf32>
      %327 = tpu.concatenate %242, %270, %298, %326 in 0 : vector<1x8xf32>, vector<1x8xf32>, vector<1x8xf32>, vector<1x8xf32> -> vector<4x8xf32>
      %328 = vector.shape_cast %327 : vector<4x8xf32> to vector<1x4x8xf32>
      %cst_94 = arith.constant 2.000000e+00 : f32
      %329 = arith.mulf %cst_94, %39 : f32
      %330 = math.floor %329 : f32
      %331 = arith.fptosi %330 : f32 to i32
      %332 = arith.addi %331, %12 : i32
      %c0_i32_95 = arith.constant 0 : i32
      %c16_i32_96 = arith.constant 16 : i32
      %333 = arith.maxsi %c0_i32_95, %332 : i32
      %334 = arith.minsi %c16_i32_96, %333 : i32
      %cst_97 = arith.constant 3.000000e+00 : f32
      %335 = arith.mulf %cst_97, %39 : f32
      %336 = math.ceil %335 : f32
      %337 = arith.fptosi %336 : f32 to i32
      %338 = arith.addi %337, %12 : i32
      %c0_i32_98 = arith.constant 0 : i32
      %c16_i32_99 = arith.constant 16 : i32
      %339 = arith.maxsi %c0_i32_98, %338 : i32
      %340 = arith.minsi %c16_i32_99, %339 : i32
      %341 = vector.broadcast %334 : i32 to vector<16x16x1xi32>
      %342 = arith.cmpi sge, %0, %341 : vector<16x16x1xi32>
      %343 = vector.broadcast %340 : i32 to vector<16x16x1xi32>
      %344 = arith.cmpi slt, %0, %343 : vector<16x16x1xi32>
      %345 = arith.andi %342, %344 : vector<16x16x1xi1>
      %346 = arith.andi %345, %52 : vector<16x16x1xi1>
      %c0_100 = arith.constant 0 : index
      %c0_101 = arith.constant 0 : index
      %c0_102 = arith.constant 0 : index
      %347 = vector.load %arg3[%c0_100, %c0_101, %c0_102] : memref<16x16x8xf32, #tpu.memory_space<vmem>>, vector<16x16x8xf32>
      %348 = vector.shape_cast %346 : vector<16x16x1xi1> to vector<16x16x1xi1>
      %349 = vector.broadcast %348 : vector<16x16x1xi1> to vector<16x16x8xi1>
      %350 = vector.broadcast %cst : f32 to vector<16x16x8xf32>
      %351 = arith.select %349, %347, %350 : vector<16x16x8xi1>, vector<16x16x8xf32>
      %cst_103 = arith.constant dense<0xFF800000> : vector<16x8xf32>
      %352 = vector.multi_reduction <maximumf>, %351, %cst_103 [0] : vector<16x16x8xf32> to vector<16x8xf32>
      %cst_104 = arith.constant 0.000000e+00 : f32
      %353 = arith.mulf %cst_104, %40 : f32
      %354 = math.floor %353 : f32
      %355 = arith.fptosi %354 : f32 to i32
      %356 = arith.addi %355, %9 : i32
      %c0_i32_105 = arith.constant 0 : i32
      %c16_i32_106 = arith.constant 16 : i32
      %357 = arith.maxsi %c0_i32_105, %356 : i32
      %358 = arith.minsi %c16_i32_106, %357 : i32
      %cst_107 = arith.constant 1.000000e+00 : f32
      %359 = arith.mulf %cst_107, %40 : f32
      %360 = math.ceil %359 : f32
      %361 = arith.fptosi %360 : f32 to i32
      %362 = arith.addi %361, %9 : i32
      %c0_i32_108 = arith.constant 0 : i32
      %c16_i32_109 = arith.constant 16 : i32
      %363 = arith.maxsi %c0_i32_108, %362 : i32
      %364 = arith.minsi %c16_i32_109, %363 : i32
      %365 = arith.cmpi sle, %340, %334 : i32
      %366 = arith.cmpi sle, %364, %358 : i32
      %367 = arith.ori %365, %366 : i1
      %368 = vector.broadcast %358 : i32 to vector<16x1xi32>
      %369 = arith.cmpi sge, %2, %368 : vector<16x1xi32>
      %370 = vector.broadcast %364 : i32 to vector<16x1xi32>
      %371 = arith.cmpi slt, %2, %370 : vector<16x1xi32>
      %372 = arith.andi %369, %371 : vector<16x1xi1>
      %373 = vector.shape_cast %372 : vector<16x1xi1> to vector<16x1xi1>
      %374 = vector.broadcast %373 : vector<16x1xi1> to vector<16x8xi1>
      %375 = vector.broadcast %cst : f32 to vector<16x8xf32>
      %376 = arith.select %374, %352, %375 : vector<16x8xi1>, vector<16x8xf32>
      %cst_110 = arith.constant dense<0xFF800000> : vector<8xf32>
      %377 = vector.multi_reduction <maximumf>, %376, %cst_110 [0] : vector<16x8xf32> to vector<8xf32>
      %378 = vector.shape_cast %377 : vector<8xf32> to vector<1x8xf32>
      %cst_111 = arith.constant 0.000000e+00 : f32
      %379 = vector.broadcast %cst_111 : f32 to vector<1x8xf32>
      %380 = arith.select %367, %379, %378 : vector<1x8xf32>
      %cst_112 = arith.constant 1.000000e+00 : f32
      %381 = arith.mulf %cst_112, %40 : f32
      %382 = math.floor %381 : f32
      %383 = arith.fptosi %382 : f32 to i32
      %384 = arith.addi %383, %9 : i32
      %c0_i32_113 = arith.constant 0 : i32
      %c16_i32_114 = arith.constant 16 : i32
      %385 = arith.maxsi %c0_i32_113, %384 : i32
      %386 = arith.minsi %c16_i32_114, %385 : i32
      %cst_115 = arith.constant 2.000000e+00 : f32
      %387 = arith.mulf %cst_115, %40 : f32
      %388 = math.ceil %387 : f32
      %389 = arith.fptosi %388 : f32 to i32
      %390 = arith.addi %389, %9 : i32
      %c0_i32_116 = arith.constant 0 : i32
      %c16_i32_117 = arith.constant 16 : i32
      %391 = arith.maxsi %c0_i32_116, %390 : i32
      %392 = arith.minsi %c16_i32_117, %391 : i32
      %393 = arith.cmpi sle, %340, %334 : i32
      %394 = arith.cmpi sle, %392, %386 : i32
      %395 = arith.ori %393, %394 : i1
      %396 = vector.broadcast %386 : i32 to vector<16x1xi32>
      %397 = arith.cmpi sge, %2, %396 : vector<16x1xi32>
      %398 = vector.broadcast %392 : i32 to vector<16x1xi32>
      %399 = arith.cmpi slt, %2, %398 : vector<16x1xi32>
      %400 = arith.andi %397, %399 : vector<16x1xi1>
      %401 = vector.shape_cast %400 : vector<16x1xi1> to vector<16x1xi1>
      %402 = vector.broadcast %401 : vector<16x1xi1> to vector<16x8xi1>
      %403 = vector.broadcast %cst : f32 to vector<16x8xf32>
      %404 = arith.select %402, %352, %403 : vector<16x8xi1>, vector<16x8xf32>
      %cst_118 = arith.constant dense<0xFF800000> : vector<8xf32>
      %405 = vector.multi_reduction <maximumf>, %404, %cst_118 [0] : vector<16x8xf32> to vector<8xf32>
      %406 = vector.shape_cast %405 : vector<8xf32> to vector<1x8xf32>
      %cst_119 = arith.constant 0.000000e+00 : f32
      %407 = vector.broadcast %cst_119 : f32 to vector<1x8xf32>
      %408 = arith.select %395, %407, %406 : vector<1x8xf32>
      %cst_120 = arith.constant 2.000000e+00 : f32
      %409 = arith.mulf %cst_120, %40 : f32
      %410 = math.floor %409 : f32
      %411 = arith.fptosi %410 : f32 to i32
      %412 = arith.addi %411, %9 : i32
      %c0_i32_121 = arith.constant 0 : i32
      %c16_i32_122 = arith.constant 16 : i32
      %413 = arith.maxsi %c0_i32_121, %412 : i32
      %414 = arith.minsi %c16_i32_122, %413 : i32
      %cst_123 = arith.constant 3.000000e+00 : f32
      %415 = arith.mulf %cst_123, %40 : f32
      %416 = math.ceil %415 : f32
      %417 = arith.fptosi %416 : f32 to i32
      %418 = arith.addi %417, %9 : i32
      %c0_i32_124 = arith.constant 0 : i32
      %c16_i32_125 = arith.constant 16 : i32
      %419 = arith.maxsi %c0_i32_124, %418 : i32
      %420 = arith.minsi %c16_i32_125, %419 : i32
      %421 = arith.cmpi sle, %340, %334 : i32
      %422 = arith.cmpi sle, %420, %414 : i32
      %423 = arith.ori %421, %422 : i1
      %424 = vector.broadcast %414 : i32 to vector<16x1xi32>
      %425 = arith.cmpi sge, %2, %424 : vector<16x1xi32>
      %426 = vector.broadcast %420 : i32 to vector<16x1xi32>
      %427 = arith.cmpi slt, %2, %426 : vector<16x1xi32>
      %428 = arith.andi %425, %427 : vector<16x1xi1>
      %429 = vector.shape_cast %428 : vector<16x1xi1> to vector<16x1xi1>
      %430 = vector.broadcast %429 : vector<16x1xi1> to vector<16x8xi1>
      %431 = vector.broadcast %cst : f32 to vector<16x8xf32>
      %432 = arith.select %430, %352, %431 : vector<16x8xi1>, vector<16x8xf32>
      %cst_126 = arith.constant dense<0xFF800000> : vector<8xf32>
      %433 = vector.multi_reduction <maximumf>, %432, %cst_126 [0] : vector<16x8xf32> to vector<8xf32>
      %434 = vector.shape_cast %433 : vector<8xf32> to vector<1x8xf32>
      %cst_127 = arith.constant 0.000000e+00 : f32
      %435 = vector.broadcast %cst_127 : f32 to vector<1x8xf32>
      %436 = arith.select %423, %435, %434 : vector<1x8xf32>
      %cst_128 = arith.constant 3.000000e+00 : f32
      %437 = arith.mulf %cst_128, %40 : f32
      %438 = math.floor %437 : f32
      %439 = arith.fptosi %438 : f32 to i32
      %440 = arith.addi %439, %9 : i32
      %c0_i32_129 = arith.constant 0 : i32
      %c16_i32_130 = arith.constant 16 : i32
      %441 = arith.maxsi %c0_i32_129, %440 : i32
      %442 = arith.minsi %c16_i32_130, %441 : i32
      %cst_131 = arith.constant 4.000000e+00 : f32
      %443 = arith.mulf %cst_131, %40 : f32
      %444 = math.ceil %443 : f32
      %445 = arith.fptosi %444 : f32 to i32
      %446 = arith.addi %445, %9 : i32
      %c0_i32_132 = arith.constant 0 : i32
      %c16_i32_133 = arith.constant 16 : i32
      %447 = arith.maxsi %c0_i32_132, %446 : i32
      %448 = arith.minsi %c16_i32_133, %447 : i32
      %449 = arith.cmpi sle, %340, %334 : i32
      %450 = arith.cmpi sle, %448, %442 : i32
      %451 = arith.ori %449, %450 : i1
      %452 = vector.broadcast %442 : i32 to vector<16x1xi32>
      %453 = arith.cmpi sge, %2, %452 : vector<16x1xi32>
      %454 = vector.broadcast %448 : i32 to vector<16x1xi32>
      %455 = arith.cmpi slt, %2, %454 : vector<16x1xi32>
      %456 = arith.andi %453, %455 : vector<16x1xi1>
      %457 = vector.shape_cast %456 : vector<16x1xi1> to vector<16x1xi1>
      %458 = vector.broadcast %457 : vector<16x1xi1> to vector<16x8xi1>
      %459 = vector.broadcast %cst : f32 to vector<16x8xf32>
      %460 = arith.select %458, %352, %459 : vector<16x8xi1>, vector<16x8xf32>
      %cst_134 = arith.constant dense<0xFF800000> : vector<8xf32>
      %461 = vector.multi_reduction <maximumf>, %460, %cst_134 [0] : vector<16x8xf32> to vector<8xf32>
      %462 = vector.shape_cast %461 : vector<8xf32> to vector<1x8xf32>
      %cst_135 = arith.constant 0.000000e+00 : f32
      %463 = vector.broadcast %cst_135 : f32 to vector<1x8xf32>
      %464 = arith.select %451, %463, %462 : vector<1x8xf32>
      %465 = tpu.concatenate %380, %408, %436, %464 in 0 : vector<1x8xf32>, vector<1x8xf32>, vector<1x8xf32>, vector<1x8xf32> -> vector<4x8xf32>
      %466 = vector.shape_cast %465 : vector<4x8xf32> to vector<1x4x8xf32>
      %cst_136 = arith.constant 3.000000e+00 : f32
      %467 = arith.mulf %cst_136, %39 : f32
      %468 = math.floor %467 : f32
      %469 = arith.fptosi %468 : f32 to i32
      %470 = arith.addi %469, %12 : i32
      %c0_i32_137 = arith.constant 0 : i32
      %c16_i32_138 = arith.constant 16 : i32
      %471 = arith.maxsi %c0_i32_137, %470 : i32
      %472 = arith.minsi %c16_i32_138, %471 : i32
      %cst_139 = arith.constant 4.000000e+00 : f32
      %473 = arith.mulf %cst_139, %39 : f32
      %474 = math.ceil %473 : f32
      %475 = arith.fptosi %474 : f32 to i32
      %476 = arith.addi %475, %12 : i32
      %c0_i32_140 = arith.constant 0 : i32
      %c16_i32_141 = arith.constant 16 : i32
      %477 = arith.maxsi %c0_i32_140, %476 : i32
      %478 = arith.minsi %c16_i32_141, %477 : i32
      %479 = vector.broadcast %472 : i32 to vector<16x16x1xi32>
      %480 = arith.cmpi sge, %0, %479 : vector<16x16x1xi32>
      %481 = vector.broadcast %478 : i32 to vector<16x16x1xi32>
      %482 = arith.cmpi slt, %0, %481 : vector<16x16x1xi32>
      %483 = arith.andi %480, %482 : vector<16x16x1xi1>
      %484 = arith.andi %483, %52 : vector<16x16x1xi1>
      %c0_142 = arith.constant 0 : index
      %c0_143 = arith.constant 0 : index
      %c0_144 = arith.constant 0 : index
      %485 = vector.load %arg3[%c0_142, %c0_143, %c0_144] : memref<16x16x8xf32, #tpu.memory_space<vmem>>, vector<16x16x8xf32>
      %486 = vector.shape_cast %484 : vector<16x16x1xi1> to vector<16x16x1xi1>
      %487 = vector.broadcast %486 : vector<16x16x1xi1> to vector<16x16x8xi1>
      %488 = vector.broadcast %cst : f32 to vector<16x16x8xf32>
      %489 = arith.select %487, %485, %488 : vector<16x16x8xi1>, vector<16x16x8xf32>
      %cst_145 = arith.constant dense<0xFF800000> : vector<16x8xf32>
      %490 = vector.multi_reduction <maximumf>, %489, %cst_145 [0] : vector<16x16x8xf32> to vector<16x8xf32>
      %cst_146 = arith.constant 0.000000e+00 : f32
      %491 = arith.mulf %cst_146, %40 : f32
      %492 = math.floor %491 : f32
      %493 = arith.fptosi %492 : f32 to i32
      %494 = arith.addi %493, %9 : i32
      %c0_i32_147 = arith.constant 0 : i32
      %c16_i32_148 = arith.constant 16 : i32
      %495 = arith.maxsi %c0_i32_147, %494 : i32
      %496 = arith.minsi %c16_i32_148, %495 : i32
      %cst_149 = arith.constant 1.000000e+00 : f32
      %497 = arith.mulf %cst_149, %40 : f32
      %498 = math.ceil %497 : f32
      %499 = arith.fptosi %498 : f32 to i32
      %500 = arith.addi %499, %9 : i32
      %c0_i32_150 = arith.constant 0 : i32
      %c16_i32_151 = arith.constant 16 : i32
      %501 = arith.maxsi %c0_i32_150, %500 : i32
      %502 = arith.minsi %c16_i32_151, %501 : i32
      %503 = arith.cmpi sle, %478, %472 : i32
      %504 = arith.cmpi sle, %502, %496 : i32
      %505 = arith.ori %503, %504 : i1
      %506 = vector.broadcast %496 : i32 to vector<16x1xi32>
      %507 = arith.cmpi sge, %2, %506 : vector<16x1xi32>
      %508 = vector.broadcast %502 : i32 to vector<16x1xi32>
      %509 = arith.cmpi slt, %2, %508 : vector<16x1xi32>
      %510 = arith.andi %507, %509 : vector<16x1xi1>
      %511 = vector.shape_cast %510 : vector<16x1xi1> to vector<16x1xi1>
      %512 = vector.broadcast %511 : vector<16x1xi1> to vector<16x8xi1>
      %513 = vector.broadcast %cst : f32 to vector<16x8xf32>
      %514 = arith.select %512, %490, %513 : vector<16x8xi1>, vector<16x8xf32>
      %cst_152 = arith.constant dense<0xFF800000> : vector<8xf32>
      %515 = vector.multi_reduction <maximumf>, %514, %cst_152 [0] : vector<16x8xf32> to vector<8xf32>
      %516 = vector.shape_cast %515 : vector<8xf32> to vector<1x8xf32>
      %cst_153 = arith.constant 0.000000e+00 : f32
      %517 = vector.broadcast %cst_153 : f32 to vector<1x8xf32>
      %518 = arith.select %505, %517, %516 : vector<1x8xf32>
      %cst_154 = arith.constant 1.000000e+00 : f32
      %519 = arith.mulf %cst_154, %40 : f32
      %520 = math.floor %519 : f32
      %521 = arith.fptosi %520 : f32 to i32
      %522 = arith.addi %521, %9 : i32
      %c0_i32_155 = arith.constant 0 : i32
      %c16_i32_156 = arith.constant 16 : i32
      %523 = arith.maxsi %c0_i32_155, %522 : i32
      %524 = arith.minsi %c16_i32_156, %523 : i32
      %cst_157 = arith.constant 2.000000e+00 : f32
      %525 = arith.mulf %cst_157, %40 : f32
      %526 = math.ceil %525 : f32
      %527 = arith.fptosi %526 : f32 to i32
      %528 = arith.addi %527, %9 : i32
      %c0_i32_158 = arith.constant 0 : i32
      %c16_i32_159 = arith.constant 16 : i32
      %529 = arith.maxsi %c0_i32_158, %528 : i32
      %530 = arith.minsi %c16_i32_159, %529 : i32
      %531 = arith.cmpi sle, %478, %472 : i32
      %532 = arith.cmpi sle, %530, %524 : i32
      %533 = arith.ori %531, %532 : i1
      %534 = vector.broadcast %524 : i32 to vector<16x1xi32>
      %535 = arith.cmpi sge, %2, %534 : vector<16x1xi32>
      %536 = vector.broadcast %530 : i32 to vector<16x1xi32>
      %537 = arith.cmpi slt, %2, %536 : vector<16x1xi32>
      %538 = arith.andi %535, %537 : vector<16x1xi1>
      %539 = vector.shape_cast %538 : vector<16x1xi1> to vector<16x1xi1>
      %540 = vector.broadcast %539 : vector<16x1xi1> to vector<16x8xi1>
      %541 = vector.broadcast %cst : f32 to vector<16x8xf32>
      %542 = arith.select %540, %490, %541 : vector<16x8xi1>, vector<16x8xf32>
      %cst_160 = arith.constant dense<0xFF800000> : vector<8xf32>
      %543 = vector.multi_reduction <maximumf>, %542, %cst_160 [0] : vector<16x8xf32> to vector<8xf32>
      %544 = vector.shape_cast %543 : vector<8xf32> to vector<1x8xf32>
      %cst_161 = arith.constant 0.000000e+00 : f32
      %545 = vector.broadcast %cst_161 : f32 to vector<1x8xf32>
      %546 = arith.select %533, %545, %544 : vector<1x8xf32>
      %cst_162 = arith.constant 2.000000e+00 : f32
      %547 = arith.mulf %cst_162, %40 : f32
      %548 = math.floor %547 : f32
      %549 = arith.fptosi %548 : f32 to i32
      %550 = arith.addi %549, %9 : i32
      %c0_i32_163 = arith.constant 0 : i32
      %c16_i32_164 = arith.constant 16 : i32
      %551 = arith.maxsi %c0_i32_163, %550 : i32
      %552 = arith.minsi %c16_i32_164, %551 : i32
      %cst_165 = arith.constant 3.000000e+00 : f32
      %553 = arith.mulf %cst_165, %40 : f32
      %554 = math.ceil %553 : f32
      %555 = arith.fptosi %554 : f32 to i32
      %556 = arith.addi %555, %9 : i32
      %c0_i32_166 = arith.constant 0 : i32
      %c16_i32_167 = arith.constant 16 : i32
      %557 = arith.maxsi %c0_i32_166, %556 : i32
      %558 = arith.minsi %c16_i32_167, %557 : i32
      %559 = arith.cmpi sle, %478, %472 : i32
      %560 = arith.cmpi sle, %558, %552 : i32
      %561 = arith.ori %559, %560 : i1
      %562 = vector.broadcast %552 : i32 to vector<16x1xi32>
      %563 = arith.cmpi sge, %2, %562 : vector<16x1xi32>
      %564 = vector.broadcast %558 : i32 to vector<16x1xi32>
      %565 = arith.cmpi slt, %2, %564 : vector<16x1xi32>
      %566 = arith.andi %563, %565 : vector<16x1xi1>
      %567 = vector.shape_cast %566 : vector<16x1xi1> to vector<16x1xi1>
      %568 = vector.broadcast %567 : vector<16x1xi1> to vector<16x8xi1>
      %569 = vector.broadcast %cst : f32 to vector<16x8xf32>
      %570 = arith.select %568, %490, %569 : vector<16x8xi1>, vector<16x8xf32>
      %cst_168 = arith.constant dense<0xFF800000> : vector<8xf32>
      %571 = vector.multi_reduction <maximumf>, %570, %cst_168 [0] : vector<16x8xf32> to vector<8xf32>
      %572 = vector.shape_cast %571 : vector<8xf32> to vector<1x8xf32>
      %cst_169 = arith.constant 0.000000e+00 : f32
      %573 = vector.broadcast %cst_169 : f32 to vector<1x8xf32>
      %574 = arith.select %561, %573, %572 : vector<1x8xf32>
      %cst_170 = arith.constant 3.000000e+00 : f32
      %575 = arith.mulf %cst_170, %40 : f32
      %576 = math.floor %575 : f32
      %577 = arith.fptosi %576 : f32 to i32
      %578 = arith.addi %577, %9 : i32
      %c0_i32_171 = arith.constant 0 : i32
      %c16_i32_172 = arith.constant 16 : i32
      %579 = arith.maxsi %c0_i32_171, %578 : i32
      %580 = arith.minsi %c16_i32_172, %579 : i32
      %cst_173 = arith.constant 4.000000e+00 : f32
      %581 = arith.mulf %cst_173, %40 : f32
      %582 = math.ceil %581 : f32
      %583 = arith.fptosi %582 : f32 to i32
      %584 = arith.addi %583, %9 : i32
      %c0_i32_174 = arith.constant 0 : i32
      %c16_i32_175 = arith.constant 16 : i32
      %585 = arith.maxsi %c0_i32_174, %584 : i32
      %586 = arith.minsi %c16_i32_175, %585 : i32
      %587 = arith.cmpi sle, %478, %472 : i32
      %588 = arith.cmpi sle, %586, %580 : i32
      %589 = arith.ori %587, %588 : i1
      %590 = vector.broadcast %580 : i32 to vector<16x1xi32>
      %591 = arith.cmpi sge, %2, %590 : vector<16x1xi32>
      %592 = vector.broadcast %586 : i32 to vector<16x1xi32>
      %593 = arith.cmpi slt, %2, %592 : vector<16x1xi32>
      %594 = arith.andi %591, %593 : vector<16x1xi1>
      %595 = vector.shape_cast %594 : vector<16x1xi1> to vector<16x1xi1>
      %596 = vector.broadcast %595 : vector<16x1xi1> to vector<16x8xi1>
      %597 = vector.broadcast %cst : f32 to vector<16x8xf32>
      %598 = arith.select %596, %490, %597 : vector<16x8xi1>, vector<16x8xf32>
      %cst_176 = arith.constant dense<0xFF800000> : vector<8xf32>
      %599 = vector.multi_reduction <maximumf>, %598, %cst_176 [0] : vector<16x8xf32> to vector<8xf32>
      %600 = vector.shape_cast %599 : vector<8xf32> to vector<1x8xf32>
      %cst_177 = arith.constant 0.000000e+00 : f32
      %601 = vector.broadcast %cst_177 : f32 to vector<1x8xf32>
      %602 = arith.select %589, %601, %600 : vector<1x8xf32>
      %603 = tpu.concatenate %518, %546, %574, %602 in 0 : vector<1x8xf32>, vector<1x8xf32>, vector<1x8xf32>, vector<1x8xf32> -> vector<4x8xf32>
      %604 = vector.shape_cast %603 : vector<4x8xf32> to vector<1x4x8xf32>
      %605 = tpu.concatenate %190, %328, %466, %604 in 0 : vector<1x4x8xf32>, vector<1x4x8xf32>, vector<1x4x8xf32>, vector<1x4x8xf32> -> vector<4x4x8xf32>
      %606 = arith.index_cast %arg5 : i32 to index
      %c0_178 = arith.constant 0 : index
      %c0_179 = arith.constant 0 : index
      %c0_180 = arith.constant 0 : index
      %607 = vector.load %arg4[%606, %c0_178, %c0_179, %c0_180] : memref<6x4x4x8xf32, #tpu.memory_space<vmem>>, vector<1x4x4x8xf32>
      %608 = vector.shape_cast %607 : vector<1x4x4x8xf32> to vector<4x4x8xf32>
      %609 = vector.shape_cast %605 : vector<4x4x8xf32> to vector<1x4x4x8xf32>
      tpu.vector_store %arg4[%606, %c0_178, %c0_179, %c0_180], %609 {strides = array<i32>} : memref<6x4x4x8xf32, #tpu.memory_space<vmem>>, vector<1x4x4x8xf32>,
    }
    %c6_i32_0 = arith.constant 6 : i32
    return
  }
  func.func @transform_0(%arg0: i32, %arg1: i32, %arg2: memref<48xi32, #tpu.memory_space<smem>>) -> (i32, i32, i32) {
    %c0_i32 = arith.constant 0 : i32
    %c0_i32_0 = arith.constant 0 : i32
    %c0_i32_1 = arith.constant 0 : i32
    return %c0_i32, %c0_i32_0, %arg0 : i32, i32, i32
  }
  func.func @transform_1(%arg0: i32, %arg1: i32, %arg2: memref<48xi32, #tpu.memory_space<smem>>) -> (i32, i32, i32, i32) {
    %c0_i32 = arith.constant 0 : i32
    %c0_i32_0 = arith.constant 0 : i32
    %c0_i32_1 = arith.constant 0 : i32
    return %arg1, %c0_i32, %c0_i32_0, %arg0 : i32, i32, i32, i32
  }
}

</mosaic_0001>

<bundles_post_ra>
// kernel: tpu_custom_call.1
= control target key start
LH: loop header
LB: loop body
LE: loop exit
PB: predicated region body
PF: predicated region fallthrough
CT: control target
= control target key end

     0   :  { %s6530_s0 = inlined_call_operand.vmem [shape: s32[48], index: 0, kind: input, shape index: {}]   ;;  %s6531_s1 = inlined_call_operand.vmem [shape: f32[16,16,8], index: 1, kind: input, shape index: {}]   ;;  %s6532_s2 = inlined_call_operand.hbm [shape: f32[6,4,4,8], index: 2, kind: output, shape index: {}]  }
   0x1   :  { %s7_s11 = sshll.u32 %s6530_s0, 4  ;;  %s8_s11 = int_to_ptr.vmem [resolvable:$true] %s7_s11 }
   0x2   :  { %s1859_s12 = scalar_lea.vmem %s8_s11, 16  ;;  %p1864_p1 = scmp.lt.s32.totalorder %s8_s11, %s8_s11 }
   0x3   :  { %p1860_p0 = scmp.ne.s32.totalorder %s8_s11, %s1859_s12  ;;  %p1865_p2 = scmp.lt.s32.totalorder %s1859_s12, %s1859_s12 }
   0x5   :  { %p1866_p3 = por %p1865_p2, %p1864_p1 }
   0x7   :  { %p1867_p4 = pnand %p1866_p3, %p1860_p0 }
   0x9   :  { %1870 = shalt.err (!%p1867_p4)  }
   0xa   :  { %s1903_s13 = smov [#allocation3]  }
   0xb   :  { %10 = dma.vmem_to_smem %s8_s11, 16, %s1903_s13, [#allocation2] }
   0xc   :  { %1895 = dma.done.wait [#allocation2], 16 }
   0xd   :  { %1896 = vsyncadd [#allocation2], 4294967280 }
   0xe   :  { %12 = sfence }
   0xf   :  { %13 = vsyncpa [#allocation5], 0  ;;  %v16_v0 = vlaneseq  ;;  %s1932_s0 = smov 0  }
  0x11   :  { %v1927_v1 = vshrl.u32 %v16_v0, 7 }
  0x13   :  { %6827 = vst [vmem:[#allocation8_spill] sm:$0xff] %v1927_v1  ;;  %v1930_v2 = vadd.s32 8, %v1927_v1 }
  0x15   :  { %6828 = vst [vmem:[#allocation9_spill] sm:$0xff] %v1930_v2 }
  0x16 LB: > { %s1938_s14 = sshll.u32 %s1901_s0, 3  ;;  %v6849_v16 = vmov 0  ;;  %v6851_v17 = vmov 0  ;;  %v6853_v18 = vmov 0  ;;  %v6857_v20 = vmov 0  ;;  %s1901_s0 = sphi %s1932_s0, %s24_s0  }
  0x17   : > { %s29_s15 = sadd.s32 1, %s1938_s14  ;;  %s33_s16 = sadd.s32 3, %s1938_s14  ;;  %v6863_v22 = vmov 0  ;;  %v6868_v24 = vmov 0  ;;  %v6871_v25 = vmov 0  ;;  %v6874_v26 = vmov 0 }
  0x18   : > { %s1942_s17 = sld [smem:[#allocation3 + %s29_s15]]  ;;  %s31_s21 = sadd.s32 2, %s1938_s14  ;;  %v6883_v29 = vmov 0  ;;  %v6889_v31 = vmov 0  ;;  %v6892_v32 = vmov 0  ;;  %v6895_v33 = vmov 0 }
  0x19   : > { %s34_s18 = sld [smem:[#allocation3 + %s33_s16]]  ;;  %s35_s4 = sadd.s32 4, %s1938_s14  ;;  %v6898_v34 = vmov 0  ;;  %v6902_v35 = vmov 0  ;;  %v6904_v36 = vmov 0  ;;  %v6911_v38 = vmov 0 }
  0x1a   : > { %v6830_v1 = vld [vmem:[#allocation8_spill] sm:$0xff]  ;;  %s1947_s22 = sld [smem:[#allocation3 + %s1938_s14]]  ;;  %s39_s8 = sadd.s32 6, %s1938_s14  ;;  %v6915_v39 = vmov 0  ;;  %v6918_v40 = vmov 0  ;;  %v6921_v41 = vmov 0 }
  0x1b   : > { %s32_s23 = sld [smem:[#allocation3 + %s31_s21]]  ;;  %s37_s10 = sadd.s32 5, %s1938_s14  ;;  %v6927_v45 = vmov 0  ;;  %v6929_v46 = vmov 0  ;;  %v6932_v47 = vmov 0  ;;  %v6936_v48 = vmov 0 }
  0x1c   : > { %v6829_v2 = vld [vmem:[#allocation9_spill] sm:$0xff]  ;;  %s36_s9 = sld [smem:[#allocation3 + %s35_s4]]  ;;  %v6938_v49 = vmov 0  ;;  %v6941_v50 = vmov 0  ;;  %v6947_v52 = vmov 0  ;;  %v6950_v53 = vmov 0 }
  0x1d   : > { %s40_s12 = sld [smem:[#allocation3 + %s39_s8]]  ;;  %v6954_v54 = vmov 0  ;;  %v6957_v55 = vmov 0  ;;  %v6961_v56 = vmov 0  ;;  %v6964_v57 = vmov 0 }
  0x1e   : > { %s38_s15 = sld [smem:[#allocation3 + %s37_s10]]  ;;  %v6967_v58 = vmov 0  ;;  %v6971_v59 = vmov 0  ;;  %v6974_v60 = vmov 0  ;;  %v6977_v61 = vmov 0 }
  0x1f   : > { %s48_s19 = ssub.s32 %s34_s18, %s1942_s17  ;;  %v6985_v63 = vmov 0  ;;  %v6988_v0 = vmov 0  ;;  %v7000_v8 = vmov 0  ;;  %v7003_v9 = vmov 0 }
  0x20   : > { %s49_s20 = sadd.s32 1, %s48_s19  ;;  %v7011_v11 = vmov 0  ;;  %v7015_v12 = vmov 0  ;;  %v7017_v13 = vmov 0  ;;  %v7037_v6 = vmov 0 }
  0x21   : > { %p50_p5 = scmp.gt.s32.totalorder %s49_s20, 1  ;;  %s43_s25 = ssub.s32 %s32_s23, %s1947_s22  ;;  %v7040_v19 = vmov 0  ;;  %v7052_v7 = vmov 0  ;;  %v7055_v21 = vmov 0  ;;  %v7064_v23 = vmov 0 }
  0x22   : > { %s44_s26 = sadd.s32 1, %s43_s25  ;;  %v59_v3 = vstv %s36_s9  ;;  %v7079_v27 = vmov 0  ;;  %v6603_v28 = vmov 0   ;;  %v7087_v30 = vmov 0 }
  0x23   : > { %s8318_s20 = smov (!%p50_p5, %s49_s20), 1  ;;  %p45_p6 = scmp.gt.s32.totalorder %s44_s26, 1  ;;  %v62_v4 = vstv %s40_s12  ;;  %vm60_vm0 = vcmp.gt.s32.totalorder %v6830_v1, %v59_v3  ;;  %vm61_vm2 = vcmp.gt.s32.totalorder %v6829_v2, %v59_v3  ;;  %v6993_v3 = vmov 0 }
  0x24   : > { %s52_s24 = scvt.s32.f32 %s8318_s20  ;;  %s41_s20 = sadd.s32 7, %s1938_s14  ;;  %vm63_vm1 = vcmp.lt.s32.totalorder %v6830_v1, %v62_v4  ;;  %v1974_v5 = vstv %s38_s15  ;;  %vm64_vm3 = vcmp.lt.s32.totalorder %v6829_v2, %v62_v4  ;;  %v6996_v4 = vmov 0 }
  0x25   : > { %s8320_s26 = smov (!%p45_p6, %s44_s26), 1  ;;  %vm1978_vm4 = vmand %vm60_vm0, %vm63_vm1  ;;  %vm68_vm5 = vcmp.lt.s32.totalorder %v1974_v5, 0  ;;  %vm69_vm7 = vcmp.lt.s32.totalorder %v1974_v5, 1  ;;  %vm70_vm9 = vcmp.lt.s32.totalorder %v1974_v5, 2  ;;  %vm71_vm12 = vcmp.lt.s32.totalorder %v1974_v5, 3 }
  0x26   : > { %s1950_s27 = smul.f32 0.25, %s52_s24  ;;  %s47_s6 = scvt.s32.f32 %s8320_s26  ;;  %vm1985_vm6 = vmand %vm61_vm2, %vm64_vm3  ;;  %vm72_vm15 = vcmp.lt.s32.totalorder %v1974_v5, 4  ;;  %vm73_vm2 = vcmp.lt.s32.totalorder %v1974_v5, 5  ;;  %v7111_v37 = vmov 0  ;;  %v7124_v44 = vmov 0 }
  0x27   : > { %s42_s26 = sld [smem:[#allocation3 + %s41_s20]]  ;;  %vm1998_vm8 = vmand %vm1978_vm4, %vm68_vm5  ;;  %v7132_v51 = vmov 0  ;;  %v7159_v62 = vmov 0  ;;  %v7213_v10 = vmov 0  ;;  %v7236_v15 = vmov 0 }
  0x28   : > { %s197_s28 = smul.f32 0.0, %s1950_s27  ;;  %s205_s29 = sceil.f32 %s1950_s27  ;;  %vm2008_vm10 = vmand %vm1985_vm6, %vm68_vm5 }
  0x29   : > { %s1784_s3 = scvt.f32.s32 %s205_s29  ;;  %s1961_s13 = smul.f32 0.25, %s47_s6  ;;  %vm2015_vm11 = vmand %vm1978_vm4, %vm69_vm7 }
  0x2a   : > { %s198_s30 = sfloor.f32 %s197_s28  ;;  %vm2023_vm13 = vmand %vm1985_vm6, %vm69_vm7  ;;  %vm6862_vm7 = vcmp.lt.s32.totalorder %v1974_v5, 6 }
  0x2b   : > { %s1782_s5 = scvt.f32.s32 %s198_s30  ;;  %s207_s7 = sadd.s32 %s1784_s3, %s1942_s17  ;;  %vm2031_vm14 = vmand %vm1978_vm4, %vm70_vm9 }
  0x2c   : > { %p208_p7 = scmp.gt.s32.totalorder %s207_s7, 0  ;;  %p1673_p9 = scmp.lt.s32.totalorder %s207_s7, 16  ;;  %vm2040_vm0 = vmand %vm1985_vm6, %vm70_vm9 }
  0x2d   : > { %s1959_s11 = sadd.s32 %s1782_s5, %s1942_s17  ;;  %s485_s16 = smul.f32 0.0, %s1961_s13  ;;  %v2044_v14 = vstv %s42_s26  ;;  %vm2049_vm1 = vmand %vm1978_vm4, %vm71_vm12 }
  0x2e   : > { %p201_p8 = scmp.gt.s32.totalorder %s1959_s11, 0  ;;  %s8322_s7 = smov (!%p208_p7, %s207_s7), 0  ;;  %vm2057_vm3 = vmand %vm1985_vm6, %vm71_vm12 }
  0x2f   : > { %s8324_s7 = smov (!%p1673_p9, %s8322_s7), 16  ;;  %s486_s19 = sfloor.f32 %s485_s16  ;;  %v6850_v16 = vsel %vm2057_vm3, 4294967295, %v6849_v16  ;;  %vm2064_vm5 = vmand %vm1978_vm4, %vm72_vm15 }
  0x30   : > { %s202_s18 = scalar_select %p201_p8, %s1959_s11, 0  ;;  %v6852_v17 = vsel %vm2064_vm5, 4294967295, %v6851_v17  ;;  %vm2075_vm12 = vmand %vm1985_vm6, %vm72_vm15  ;;  %v2306_v43 = vstv %s8324_s7 }
  0x31   : > { %s493_s21 = sceil.f32 %s1961_s13  ;;  %p1668_p10 = scmp.lt.s32.totalorder %s1959_s11, 16  ;;  %v6854_v18 = vsel %vm2075_vm12, 4294967295, %v6853_v18  ;;  %vm2085_vm5 = vmand %vm1978_vm4, %vm73_vm2  ;;  %vm6859_vm12 = vcmp.gt.s32.totalorder %v2044_v14, 0 }
  0x32   : > { %s530_s23 = sfloor.f32 %s1961_s13  ;;  %s1786_s24 = scvt.f32.s32 %s486_s19  ;;  %vm2097_vm9 = vmand %vm1985_vm6, %vm73_vm2  ;;  %vm6870_vm2 = vcmp.gt.s32.totalorder %v2044_v14, 1 }
  0x33   : > { %s1788_s25 = scvt.f32.s32 %s493_s21  ;;  %s1790_s14 = scvt.f32.s32 %s530_s23  ;;  %v6858_v20 = vsel %vm2097_vm9, 4294967295, %v6857_v20  ;;  %vm2105_vm3 = vmand %vm1998_vm8, %vm6859_vm12 }
  0x34   : > { %s8326_s18 = smov (!%p1668_p10, %s202_s18), 16  ;;  %s1990_s28 = sadd.s32 %s1786_s24, %s1947_s22  ;;  %vm2113_vm15 = vmand %vm1978_vm4, %vm6862_vm7 }
  0x35   : > { %s1994_s29 = sadd.s32 %s1788_s25, %s1947_s22  ;;  %s2003_s30 = sadd.s32 %s1790_s14, %s1947_s22  ;;  %v6864_v22 = vsel %vm2113_vm15, 4294967295, %v6863_v22  ;;  %vm6865_vm9 = vmmov %vm6859_vm12  ;;  %vm6882_vm12 = vcmp.gt.s32.totalorder %v2044_v14, 2  ;;  %v2303_v42 = vstv %s8326_s18 }
  0x36   : > { %p489_p11 = scmp.gt.s32.totalorder %s1990_s28, 0  ;;  %p496_p12 = scmp.gt.s32.totalorder %s1994_s29, 0  ;;  %vm2122_vm8 = vmand %vm2008_vm10, %vm6865_vm9  ;;  %vm6873_vm9 = vcmp.lt.s32.totalorder %v1974_v5, 7 }
  0x37   : > { %p533_p13 = scmp.gt.s32.totalorder %s2003_s30, 0  ;;  %s537_s3 = smul.f32 2.0, %s1961_s13  ;;  %vm2135_vm15 = vmand %vm1985_vm6, %vm6862_vm7 }
  0x38   : > { %p1678_p0 = scmp.lt.s32.totalorder %s1990_s28, 16  ;;  %p1683_p1 = scmp.lt.s32.totalorder %s1994_s29, 16  ;;  %v6869_v24 = vsel %vm2135_vm15, 4294967295, %v6868_v24  ;;  %vm2143_vm10 = vmand %vm2015_vm11, %vm6870_vm2 }
  0x39   : > { %s490_s4 = scalar_select %p489_p11, %s1990_s28, 0  ;;  %v6872_v25 = vsel %vm2143_vm10, 4294967295, %v6871_v25  ;;  %vm2155_vm7 = vmand %vm1978_vm4, %vm6873_vm9 }
  0x3a   : > { %s497_s5 = scalar_select %p496_p12, %s1994_s29, 0  ;;  %v6875_v26 = vsel %vm2155_vm7, 4294967295, %v6874_v26  ;;  %vm6876_vm11 = vmmov %vm6870_vm2 }
  0x3b   : > { %s534_s6 = scalar_select %p533_p13, %s2003_s30, 0  ;;  %vm2164_vm2 = vmand %vm2023_vm13, %vm6876_vm11  ;;  %vm6885_vm13 = vcmp.lt.s32.totalorder %v1974_v5, 8 }
  0x3c   : > { %p1688_p2 = scmp.lt.s32.totalorder %s2003_s30, 16  ;;  %s538_s8 = sceil.f32 %s537_s3  ;;  %vm6879_vm15 = vmmov %vm6873_vm9 }
  0x3d   : > { %s8328_s4 = smov (!%p1678_p0, %s490_s4), 16  ;;  %s8330_s5 = smov (!%p1683_p1, %s497_s5), 16  ;;  %vm2174_vm9 = vmand %vm1985_vm6, %vm6879_vm15  ;;  %vm6894_vm15 = vcmp.gt.s32.totalorder %v2044_v14, 3 }
  0x3e   : > { %s1792_s9 = scvt.f32.s32 %s538_s8  ;;  %s8332_s6 = smov (!%p1688_p2, %s534_s6), 16  ;;  %vm2182_vm7 = vmand %vm2031_vm14, %vm6882_vm12 }
  0x3f   : > { %s2149_s10 = sfloor.f32 %s537_s3  ;;  %s581_s11 = smul.f32 3.0, %s1961_s13  ;;  %v6884_v29 = vsel %vm2182_vm7, 4294967295, %v6883_v29  ;;  %vm2193_vm11 = vmand %vm1978_vm4, %vm6885_vm13 }
  0x40   : > { %s2187_s12 = sadd.s32 %s1792_s9, %s1947_s22  ;;  %vm6888_vm10 = vmmov %vm6882_vm12  ;;  %s1794_s15 = scvt.f32.s32 %s2149_s10 }
  0x41   : > { %vm2202_vm14 = vmand %vm2040_vm0, %vm6888_vm10  ;;  %s625_s16 = smul.f32 4.0, %s1961_s13  ;;  %vm6897_vm10 = vcmp.lt.s32.totalorder %v1974_v5, 9  ;;  %p541_p3 = scmp.gt.s32.totalorder %s2187_s12, 0 }
  0x42   : > { %v6890_v31 = vsel %vm2202_vm14, 4294967295, %v6889_v31  ;;  %vm6891_vm7 = vmmov %vm6885_vm13  ;;  %vm6901_vm14 = vnez %v6850_v16  ;;  %s2243_s13 = sceil.f32 %s581_s11  ;;  %p1693_p4 = scmp.lt.s32.totalorder %s2187_s12, 16  ;;  %v7025_v16 = vmov 0 }
  0x43   : > { %vm2212_vm13 = vmand %vm1985_vm6, %vm6891_vm7  ;;  %s2281_s19 = sadd.s32 %s1794_s15, %s1947_s22  ;;  %s2283_s20 = sfloor.f32 %s581_s11 }
  0x44   : > { %v6893_v32 = vsel %vm2212_vm13, 4294967295, %v6892_v32  ;;  %vm2220_vm0 = vmand %vm2049_vm1, %vm6894_vm15  ;;  %s1796_s21 = scvt.f32.s32 %s2243_s13  ;;  %s2309_s23 = sceil.f32 %s625_s16 }
  0x45   : > { %v6896_v33 = vsel %vm2220_vm0, 4294967295, %v6895_v33  ;;  %vm2229_vm12 = vmand %vm1978_vm4, %vm6897_vm10  ;;  %vm6914_vm0 = vnez %v6854_v18  ;;  %s542_s24 = scalar_select %p541_p3, %s2187_s12, 0  ;;  %v7032_v18 = vmov 0 }
  0x46   : > { %v6899_v34 = vsel %vm2229_vm12, 4294967295, %v6898_v34  ;;  %vm6900_vm13 = vmmov %vm6894_vm15  ;;  %vm6910_vm12 = vcmp.lt.s32.totalorder %v1974_v5, 10  ;;  %s1798_s25 = scvt.f32.s32 %s2283_s20  ;;  %s1800_s26 = scvt.f32.s32 %s2309_s23 }
  0x47   : > { %vm2238_vm1 = vmand %vm6901_vm14, %vm6900_vm13  ;;  %vm6906_vm14 = vcmp.gt.s32.totalorder %v2044_v14, 4  ;;  %vm6907_vm13 = vnez %v6852_v17  ;;  %p577_p5 = scmp.gt.s32.totalorder %s2281_s19, 0  ;;  %s2417_s14 = sadd.s32 %s1796_s21, %s1947_s22  ;;  %v7029_v17 = vmov 0 }
  0x48   : > { %v6903_v35 = vsel %vm2238_vm1, 4294967295, %v6902_v35  ;;  %vm2250_vm7 = vmand %vm1985_vm6, %vm6897_vm10  ;;  %s8334_s24 = smov (!%p1693_p4, %s542_s24), 16  ;;  %s2486_s28 = sadd.s32 %s1798_s25, %s1947_s22 }
  0x49   : > { %v6905_v36 = vsel %vm2250_vm7, 4294967295, %v6904_v36  ;;  %vm2258_vm1 = vmand %vm6907_vm13, %vm6906_vm14  ;;  %p585_p6 = scmp.gt.s32.totalorder %s2417_s14, 0  ;;  %s2519_s29 = sadd.s32 %s1800_s26, %s1947_s22 }
  0x4a   : > { %vm2267_vm15 = vmand %vm1978_vm4, %vm6910_vm12  ;;  %s2557_s22 = scalar_select %p577_p5, %s2281_s19, 0 }
  0x4b   : > { %v6912_v38 = vsel %vm2267_vm15, 4294967295, %v6911_v38  ;;  %vm6913_vm7 = vmmov %vm6906_vm14  ;;  %vm6920_vm15 = vcmp.gt.s32.totalorder %v2044_v14, 5  ;;  %p621_p7 = scmp.gt.s32.totalorder %s2486_s28, 0  ;;  %p1698_p8 = scmp.lt.s32.totalorder %s2281_s19, 16 }
  0x4c   : > { %vm2276_vm14 = vmand %vm6914_vm0, %vm6913_vm7  ;;  %vm6923_vm7 = vcmp.lt.s32.totalorder %v1974_v5, 11  ;;  %p629_p9 = scmp.gt.s32.totalorder %s2519_s29, 0  ;;  %p1703_p10 = scmp.lt.s32.totalorder %s2417_s14, 16 }
  0x4d   : > { %v6916_v39 = vsel %vm2276_vm14, 4294967295, %v6915_v39  ;;  %vm6917_vm13 = vmmov %vm6910_vm12  ;;  %vm6926_vm12 = vnez %v6858_v20  ;;  %v7044_v20 = vmov 0  ;;  %s2662_s30 = scalar_select %p585_p6, %s2417_s14, 0 }
  0x4e   : > { %vm2290_vm10 = vmand %vm1985_vm6, %vm6917_vm13  ;;  %p1708_p11 = scmp.lt.s32.totalorder %s2486_s28, 16  ;;  %p1713_p12 = scmp.lt.s32.totalorder %s2519_s29, 16 }
  0x4f   : > { %v6919_v40 = vsel %vm2290_vm10, 4294967295, %v6918_v40  ;;  %vm2298_vm0 = vmand %vm2085_vm5, %vm6920_vm15  ;;  %vm6535_vm10 = vmmov 1   ;;  %s2720_s3 = scalar_select %p621_p7, %s2486_s28, 0 }
  0x50   : > { %v6922_v41 = vsel %vm2298_vm0, 4294967295, %v6921_v41  ;;  %vm2315_vm13 = vmand %vm1978_vm4, %vm6923_vm7  ;;  %s2753_s8 = scalar_select %p629_p9, %s2519_s29, 0 }
  0x51   : > { %vm2324_vm0 = vmand %vm6926_vm12, %vm6920_vm15  ;;  %vm6934_vm15 = vcmp.gt.s32.totalorder %v2044_v14, 6  ;;  %s8336_s22 = smov (!%p1698_p8, %s2557_s22), 16  ;;  %s8338_s30 = smov (!%p1703_p10, %s2662_s30), 16 }
  0x52   : > { %v6928_v45 = vsel %vm2324_vm0, 4294967295, %v6927_v45  ;;  %vm2331_vm14 = vmxor %vm2105_vm3, %vm6535_vm10  ;;  %vm6935_vm0 = vnez %v6864_v22  ;;  %v7058_v22 = vmov 0  ;;  %s8340_s3 = smov (!%p1708_p11, %s2720_s3), 16  ;;  %s8342_s8 = smov (!%p1713_p12, %s2753_s8), 16 }
  0x53   : > { %v6930_v46 = vsel %vm2331_vm14, 4294967295, %v6929_v46  ;;  %vm6931_vm5 = vmmov %vm6923_vm7  ;;  %s675_s26 = smul.f32 2.0, %s1950_s27  ;;  %s668_s14 = sfloor.f32 %s1950_s27 }
  0x54   : > { %vm2343_vm12 = vmand %vm1985_vm6, %vm6931_vm5  ;;  %vm6940_vm5 = vcmp.lt.s32.totalorder %v1974_v5, 12  ;;  %s1802_s15 = scvt.f32.s32 %s668_s14  ;;  %p500_p1 = scmp.le.s32.totalorder %s8324_s7, %s8326_s18 }
  0x55   : > { %v6933_v47 = vsel %vm2343_vm12, 4294967295, %v6932_v47  ;;  %vm2351_vm3 = vmand %vm6935_vm0, %vm6934_vm15  ;;  %s3329_s16 = sceil.f32 %s675_s26  ;;  %p501_p2 = scmp.le.s32.totalorder %s8330_s5, %s8328_s4 }
  0x56   : > { %v6937_v48 = vsel %vm2351_vm3, 4294967295, %v6936_v48  ;;  %vm2358_vm7 = vmxor %vm2122_vm8, %vm6535_vm10  ;;  %vm6943_vm3 = vnez %v6869_v24  ;;  %vm6946_vm8 = vnez %v6872_v25  ;;  %v7067_v24 = vmov 0  ;;  %s3389_s14 = sadd.s32 %s1802_s15, %s1942_s17  ;;  %s1804_s28 = scvt.f32.s32 %s3329_s16 }
  0x57   : > { %v6939_v49 = vsel %vm2358_vm7, 4294967295, %v6938_v49  ;;  %vm2367_vm12 = vmand %vm1978_vm4, %vm6940_vm5  ;;  %v7072_v25 = vmov 0  ;;  %p671_p13 = scmp.gt.s32.totalorder %s3389_s14, 0  ;;  %p1718_p0 = scmp.lt.s32.totalorder %s3389_s14, 16 }
  0x58   : > { %v6942_v50 = vsel %vm2367_vm12, 4294967295, %v6941_v50  ;;  %vm2376_vm14 = vmand %vm6943_vm3, %vm6934_vm15  ;;  %vm6952_vm15 = vcmp.gt.s32.totalorder %v2044_v14, 7  ;;  %s3476_s29 = sadd.s32 %s1804_s28, %s1942_s17  ;;  %p3610_p4 = por %p501_p2, %p500_p1 }
  0x59   : > { %vm2383_vm7 = vmxor %vm6946_vm8, %vm6535_vm10  ;;  %vm6953_vm8 = vnez %v6875_v26  ;;  %v7077_v26 = vmov 0  ;;  %p679_p3 = scmp.gt.s32.totalorder %s3476_s29, 0  ;;  %p1723_p5 = scmp.lt.s32.totalorder %s3476_s29, 16 }
  0x5a   : > { %v6948_v52 = vsel %vm2383_vm7, 4294967295, %v6947_v52  ;;  %vm6949_vm0 = vmmov %vm6940_vm5  ;;  %vm6956_vm5 = vmmov 1   ;;  %s3587_s9 = scalar_select %p671_p13, %s3389_s14, 0 }
  0x5b   : > { %vm2394_vm3 = vmand %vm1985_vm6, %vm6949_vm0  ;;  %s3655_s11 = sfloor.f32 %s675_s26  ;;  %p545_p6 = scmp.le.s32.totalorder %s8334_s24, %s8332_s6 }
  0x5c   : > { %v6951_v53 = vsel %vm2394_vm3, 4294967295, %v6950_v53  ;;  %vm2402_vm10 = vmand %vm6953_vm8, %vm6952_vm15  ;;  %vm6960_vm8 = vcmp.lt.s32.totalorder %v1974_v5, 13  ;;  %s680_s26 = scalar_select %p679_p3, %s3476_s29, 0 }
  0x5d   : > { %v6955_v54 = vsel %vm2402_vm10, 4294967295, %v6954_v54  ;;  %vm2409_vm12 = vmxor %vm2164_vm2, %vm6956_vm5  ;;  %s8344_s9 = smov (!%p1718_p0, %s3587_s9), 16  ;;  %s998_s14 = smul.f32 3.0, %s1950_s27 }
  0x5e   : > { %v6958_v55 = vsel %vm2409_vm12, 4294967295, %v6957_v55  ;;  %vm2424_vm10 = vmand %vm1978_vm4, %vm6960_vm8  ;;  %p589_p7 = scmp.le.s32.totalorder %s8338_s30, %s8336_s22  ;;  %s1806_s12 = scvt.f32.s32 %s3655_s11 }
  0x5f   : > { %6959 = vst [vmem:[#allocation10_spill] sm:$0xff] %v6958_v55  ;;  %v6962_v56 = vsel %vm2424_vm10, 4294967295, %v6961_v56  ;;  %vm6963_vm0 = vmmov %vm6952_vm15  ;;  %vm6966_vm15 = vnez %v6884_v29  ;;  %vm6976_vm10 = vnez %v6890_v31  ;;  %v7090_v31 = vmov 0  ;;  %s8346_s26 = smov (!%p1723_p5, %s680_s26), 16  ;;  %p3751_p8 = por %p545_p6, %p500_p1 }
  0x60   : > { %vm2433_vm7 = vmand %vm2174_vm9, %vm6963_vm0  ;;  %s3757_s15 = sceil.f32 %s998_s14  ;;  %p3798_p9 = por %p589_p7, %p500_p1 }
  0x61   : > { %v6965_v57 = vsel %vm2433_vm7, 4294967295, %v6964_v57  ;;  %vm2440_vm12 = vmxor %vm6966_vm15, %vm6956_vm5  ;;  %vm6973_vm15 = vcmp.gt.s32.totalorder %v2044_v14, 8  ;;  %vm6981_vm7 = vcmp.le.s32.totalorder %v2303_v42, 0  ;;  %s526_s13 = scalar_select %p3610_p4, 1, 0 }
  0x62   : > { %v6968_v58 = vsel %vm2440_vm12, 4294967295, %v6967_v58  ;;  %vm6970_vm9 = vmmov %vm6960_vm8  ;;  %s3808_s20 = sadd.s32 %s1806_s12, %s1942_s17  ;;  %s1808_s11 = scvt.f32.s32 %s3757_s15 }
  0x63   : > { %6969 = vst [vmem:[#allocation11_spill] sm:$0xff] %v6968_v58  ;;  %vm2454_vm0 = vmand %vm1985_vm6, %vm6970_vm9  ;;  %vm6984_vm9 = vnez %v6893_v32  ;;  %v7095_v32 = vmov 0  ;;  %s570_s21 = scalar_select %p3751_p8, 1, 0 }
  0x64   : > { %v6972_v59 = vsel %vm2454_vm0, 4294967295, %v6971_v59  ;;  %vm2462_vm8 = vmand %vm2193_vm11, %vm6973_vm15  ;;  %vm6980_vm0 = vcmp.gt.s32.totalorder %v2306_v43, 0  ;;  %vm6999_vm11 = vnez %v6899_v34  ;;  %v7101_v34 = vmov 0  ;;  %p994_p10 = scmp.gt.s32.totalorder %s3808_s20, 0  ;;  %s3879_s25 = sadd.s32 %s1808_s11, %s1942_s17 }
  0x65   : > { %v6975_v60 = vsel %vm2462_vm8, 4294967295, %v6974_v60  ;;  %vm2469_vm2 = vmxor %vm6976_vm10, %vm6956_vm5  ;;  %vm6991_vm10 = vcmp.gt.s32.totalorder %v2306_v43, 1  ;;  %vm6992_vm8 = vcmp.le.s32.totalorder %v2303_v42, 1  ;;  %s614_s23 = scalar_select %p3798_p9, 1, 0 }
  0x66   : > { %v6978_v61 = vsel %vm2469_vm2, 4294967295, %v6977_v61  ;;  %vm2479_vm3 = vmand %vm6981_vm7, %vm6980_vm0  ;;  %vm6987_vm7 = vnez %v6896_v33  ;;  %vm6998_vm2 = vcmp.gt.s32.totalorder %v2044_v14, 9  ;;  %p633_p11 = scmp.le.s32.totalorder %s8342_s8, %s8340_s3  ;;  %p1002_p12 = scmp.gt.s32.totalorder %s3879_s25, 0 }
  0x67   : > { %6979 = vst [vmem:[#allocation12_spill] sm:$0xff] %v6978_v61  ;;  %vm2494_vm12 = vmand %vm6984_vm9, %vm6973_vm15  ;;  %vm6995_vm15 = vcmp.lt.s32.totalorder %v1974_v5, 14  ;;  %s3900_s16 = scalar_select %p994_p10, %s3808_s20, 0 }
  0x68   : > { %v6986_v63 = vsel %vm2494_vm12, 4294967295, %v6985_v63  ;;  %vm2501_vm0 = vmxor %vm6987_vm7, %vm6956_vm5  ;;  %vm7006_vm12 = vcmp.gt.s32.totalorder %v2306_v43, 2  ;;  %p1728_p13 = scmp.lt.s32.totalorder %s3808_s20, 16  ;;  %p1733_p0 = scmp.lt.s32.totalorder %s3879_s25, 16 }
  0x69   : > { %v6989_v0 = vsel %vm2501_vm0, 4294967295, %v6988_v0  ;;  %vm2511_vm9 = vmand %vm6992_vm8, %vm6991_vm10  ;;  %vm7002_vm10 = vnez %v6903_v35  ;;  %v7104_v35 = vmov 0  ;;  %p3934_p3 = por %p633_p11, %p500_p1  ;;  %p923_p1 = scmp.le.s32.totalorder %s8346_s26, %s8344_s9 }
  0x6a   : > { %6990 = vst [vmem:[#allocation13_spill] sm:$0xff] %v6989_v0  ;;  %v6994_v3 = vsel %vm2511_vm9, 4294967295, %v6993_v3  ;;  %vm2525_vm7 = vmand %vm1978_vm4, %vm6995_vm15  ;;  %vm7007_vm9 = vcmp.le.s32.totalorder %v2303_v42, 2  ;;  %s1003_s7 = scalar_select %p1002_p12, %s3879_s25, 0 }
  0x6b   : > { %v6997_v4 = vsel %vm2525_vm7, 4294967295, %v6996_v4  ;;  %vm2533_vm8 = vmand %vm6999_vm11, %vm6998_vm2  ;;  %vm7013_vm7 = vcmp.gt.s32.totalorder %v2044_v14, 9  ;;  %s658_s18 = scalar_select %p3934_p3, 1, 0 }
  0x6c   : > { %v7001_v8 = vsel %vm2533_vm8, 4294967295, %v7000_v8  ;;  %vm2540_vm0 = vmxor %vm7002_vm10, %vm6956_vm5  ;;  %vm7036_vm8 = vcmp.le.s32.totalorder %v2303_v42, 4  ;;  %s8348_s16 = smov (!%p1728_p13, %s3900_s16), 16  ;;  %s8350_s7 = smov (!%p1733_p0, %s1003_s7), 16 }
  0x6d   : > { %v7004_v9 = vsel %vm2540_vm0, 4294967295, %v7003_v9  ;;  %vm2550_vm2 = vmand %vm7007_vm9, %vm7006_vm12  ;;  %vm7014_vm12 = vnez %v6905_v36  ;;  %s1321_s10 = smul.f32 4.0, %s1950_s27  ;;  %s4437_s12 = sfloor.f32 %s998_s14 }
  0x6e   : > { %7005 = vst [vmem:[#allocation14_spill] sm:$0xff] %v7004_v9  ;;  %vm7010_vm11 = vmmov %vm6995_vm15  ;;  %p4448_p4 = por %p923_p1, %p501_p2  ;;  %s1810_s27 = scvt.f32.s32 %s4437_s12 }
  0x6f   : > { %vm2563_vm10 = vmand %vm1985_vm6, %vm7010_vm11  ;;  %vm7020_vm11 = vcmp.gt.s32.totalorder %v2306_v43, 3  ;;  %s4469_s14 = sceil.f32 %s1321_s10  ;;  %p4479_p5 = por %p923_p1, %p545_p6 }
  0x70   : > { %v7012_v11 = vsel %vm2563_vm10, 4294967295, %v7011_v11  ;;  %vm2572_vm9 = vmand %vm7014_vm12, %vm7013_vm7  ;;  %vm7021_vm10 = vcmp.le.s32.totalorder %v2303_v42, 3  ;;  %vm7024_vm7 = vcmp.lt.s32.totalorder %v1974_v5, 15  ;;  %v7047_v5 = vmov 0  ;;  %s1812_s19 = scvt.f32.s32 %s4469_s14  ;;  %p4506_p8 = por %p923_p1, %p589_p7 }
  0x71   : > { %v7016_v12 = vsel %vm2572_vm9, 4294967295, %v7015_v12  ;;  %vm2579_vm0 = vmxor %vm2258_vm1, %vm6956_vm5  ;;  %vm7027_vm1 = vcmp.gt.s32.totalorder %v2044_v14, 10  ;;  %s4512_s11 = sadd.s32 %s1810_s27, %s1942_s17  ;;  %p4523_p9 = por %p923_p1, %p633_p11 }
  0x72   : > { %v7018_v13 = vsel %vm2579_vm0, 4294967295, %v7017_v13  ;;  %vm2587_vm15 = vmand %vm7021_vm10, %vm7020_vm11  ;;  %vm7028_vm0 = vnez %v6912_v38  ;;  %vm7031_vm10 = vnez %v6916_v39  ;;  %v7114_v38 = vmov 0  ;;  %p1317_p10 = scmp.gt.s32.totalorder %s4512_s11, 0  ;;  %p1246_p13 = scmp.le.s32.totalorder %s8350_s7, %s8348_s16 }
  0x73   : > { %7019 = vst [vmem:[#allocation15_spill] sm:$0xff] %v7018_v13  ;;  %vm2596_vm12 = vmand %vm1978_vm4, %vm7024_vm7  ;;  %v7119_v39 = vmov 0  ;;  %p1738_p0 = scmp.lt.s32.totalorder %s4512_s11, 16  ;;  %s1748_s15 = sshll.u32 %s1901_s0, 4 }
  0x74   : > { %v7026_v16 = vsel %vm2596_vm12, 4294967295, %v7025_v16  ;;  %vm2604_vm9 = vmand %vm7028_vm0, %vm7027_vm1  ;;  %vm7035_vm12 = vcmp.gt.s32.totalorder %v2306_v43, 4  ;;  %s4626_s25 = scalar_select %p1317_p10, %s4512_s11, 0 }
  0x75   : > { %v7030_v17 = vsel %vm2604_vm9, 4294967295, %v7029_v17  ;;  %vm2611_vm11 = vmxor %vm7031_vm10, %vm6956_vm5  ;;  %p4711_p1 = por %p1246_p13, %p501_p2  ;;  %p4739_p10 = por %p1246_p13, %p545_p6 }
  0x76   : > { %v7033_v18 = vsel %vm2611_vm11, 4294967295, %v7032_v18  ;;  %vm2621_vm0 = vmand %vm7036_vm8, %vm7035_vm12  ;;  %vm7043_vm11 = vnez %v6919_v40  ;;  %vm7046_vm12 = vnez %v6922_v41  ;;  %v2858_v40 = vld [vmem:[%s6531_s1] sm:$0xff]  ;;  %s8352_s25 = smov (!%p1738_p0, %s4626_s25), 16  ;;  %s24_s0 = sadd.s32 1, %s1901_s0  }
  0x77   : > { %7034 = vst [vmem:[#allocation16_spill] sm:$0xff] %v7033_v18  ;;  %v7038_v6 = vsel %vm2621_vm0, 4294967295, %v7037_v6  ;;  %vm7039_vm1 = vmmov %vm7024_vm7  ;;  %vm7042_vm7 = vcmp.gt.s32.totalorder %v2044_v14, 10  ;;  %s1259_s12 = scalar_select %p4711_p1, 1, 0 }
  0x78   : > { %vm2631_vm10 = vmand %vm1985_vm6, %vm7039_vm1  ;;  %vm7050_vm6 = vcmp.gt.s32.totalorder %v2306_v43, 5  ;;  %vm7051_vm1 = vcmp.le.s32.totalorder %v2303_v42, 5  ;;  %7122 = vst [vmem:[#allocation24_spill] sm:$0xff] %v2858_v40  ;;  %s1275_s29 = scalar_select %p4739_p10, 1, 0 }
  0x79   : > { %v7041_v19 = vsel %vm2631_vm10, 4294967295, %v7040_v19  ;;  %vm2640_vm8 = vmand %vm7043_vm11, %vm7042_vm7  ;;  %vm7054_vm11 = vcmp.gt.s32.totalorder %v2044_v14, 11 }
  0x7a   : > { %v7045_v20 = vsel %vm2640_vm8, 4294967295, %v7044_v20  ;;  %vm2647_vm9 = vmxor %vm7046_vm12, %vm6956_vm5  ;;  %vm7057_vm12 = vnez %v6928_v45  ;;  %vm7066_vm8 = vnez %v6937_v48  ;;  %v2880_v45 = vld [vmem:[%s6531_s1 + $0x8] sm:$0xff]  ;;  %v7177_v48 = vmov 0 }
  0x7b   : > { %v7048_v5 = vsel %vm2647_vm9, 4294967295, %v7047_v5  ;;  %vm2655_vm4 = vmand %vm7051_vm1, %vm7050_vm6  ;;  %vm7061_vm9 = vnez %v6930_v46  ;;  %vm7063_vm1 = vnez %v6933_v47  ;;  %7128 = vst [vmem:[#allocation26_spill] sm:$0xff] %v2880_v45  ;;  %v2885_v47 = vld [vmem:[%s6531_s1 + $0x20] sm:$0xff] }
  0x7c   : > { %7049 = vst [vmem:[#allocation17_spill] sm:$0xff] %v7048_v5  ;;  %v7053_v7 = vsel %vm2655_vm4, 4294967295, %v7052_v7  ;;  %vm2668_vm7 = vmand %vm2315_vm13, %vm7054_vm11  ;;  %vm7071_vm13 = vcmp.le.s32.totalorder %v2303_v42, 6 }
  0x7d   : > { %v7056_v21 = vsel %vm2668_vm7, 4294967295, %v7055_v21  ;;  %vm2675_vm6 = vmxor %vm7057_vm12, %vm6956_vm5  ;;  %7129 = vst [vmem:[#allocation27_spill] sm:$0xff] %v2885_v47 }
  0x7e   : > { %v7059_v22 = vsel %vm2675_vm6, 4294967295, %v7058_v22  ;;  %vm7062_vm6 = vmmov %vm7054_vm11  ;;  %vm7070_vm11 = vcmp.gt.s32.totalorder %v2306_v43, 6 }
  0x7f   : > { %7060 = vst [vmem:[#allocation18_spill] sm:$0xff] %v7059_v22  ;;  %vm2694_vm4 = vmand %vm7063_vm1, %vm7062_vm6  ;;  %vm7074_vm6 = vnez %v6939_v49 }
  0x80   : > { %v7065_v23 = vsel %vm2694_vm4, 4294967295, %v7064_v23  ;;  %vm2701_vm7 = vmxor %vm7066_vm8, %vm6956_vm5  ;;  %vm7075_vm8 = vcmp.gt.s32.totalorder %v2044_v14, 12 }
  0x81   : > { %v7068_v24 = vsel %vm2701_vm7, 4294967295, %v7067_v24  ;;  %vm2709_vm12 = vmand %vm7071_vm13, %vm7070_vm11  ;;  %vm7076_vm7 = vnez %v6942_v50  ;;  %vm7086_vm11 = vnez %v6951_v53  ;;  %v7135_v53 = vmov 0 }
  0x82   : > { %7069 = vst [vmem:[#allocation19_spill] sm:$0xff] %v7068_v24  ;;  %v7073_v25 = vsel %vm2709_vm12, 4294967295, %v7072_v25  ;;  %vm2726_vm10 = vmand %vm7076_vm7, %vm7075_vm8  ;;  %vm7082_vm12 = vnez %v6948_v52  ;;  %vm7083_vm7 = vnez %v6994_v3  ;;  %v7162_v3 = vmov 0 }
  0x83   : > { %v7078_v26 = vsel %vm2726_vm10, 4294967295, %v7077_v26  ;;  %vm2733_vm13 = vmxor %vm2376_vm14, %vm6956_vm5  ;;  %vm7099_vm10 = vcmp.gt.s32.totalorder %v2044_v14, 13  ;;  %v7174_v50 = vmov 0 }
  0x84   : > { %v7080_v27 = vsel %vm2733_vm13, 4294967295, %v7079_v27  ;;  %vm7084_vm14 = vmand %vm2479_vm3, %vm7061_vm9 }
  0x85   : > { %7081 = vst [vmem:[#allocation20_spill] sm:$0xff] %v7080_v27  ;;  %v326_v29 = vsel %vm7084_vm14, 1, %v6603_v28  ;;  %vm7085_vm4 = vmmov %vm7075_vm8  ;;  %vm7089_vm8 = vnez %v6955_v54  ;;  %vm7103_vm14 = vnez %v6965_v57  ;;  %v7140_v54 = vmov 0  ;;  %v2931_v57 = vld [vmem:[%s6531_s1 + $0x30] sm:$0xff] }
  0x86   : > { %vm2759_vm1 = vmand %vm7086_vm11, %vm7085_vm4  ;;  %vm7093_vm4 = vcmp.gt.s32.totalorder %v2306_v43, 7  ;;  %vm7094_vm11 = vcmp.le.s32.totalorder %v2303_v42, 7  ;;  %7144 = vst [vmem:[#allocation30_spill] sm:$0xff] %v2931_v57 }
  0x87   : > { %v7088_v30 = vsel %vm2759_vm1, 4294967295, %v7087_v30  ;;  %vm2766_vm13 = vmxor %vm7089_vm8, %vm6956_vm5  ;;  %vm7097_vm8 = vnez %v6958_v55 }
  0x88   : > { %v7091_v31 = vsel %vm2766_vm13, 4294967295, %v7090_v31  ;;  %vm2777_vm1 = vmand %vm7094_vm11, %vm7093_vm4  ;;  %vm7100_vm4 = vnez %v6962_v56  ;;  %v2926_v56 = vld [vmem:[%s6531_s1 + $0x10] sm:$0xff] }
  0x89   : > { %7092 = vst [vmem:[#allocation21_spill] sm:$0xff] %v7091_v31  ;;  %v7096_v32 = vsel %vm2777_vm1, 4294967295, %v7095_v32  ;;  %vm7098_vm9 = vmand %vm2479_vm3, %vm7074_vm6  ;;  %vm7113_vm3 = vnez %v6975_v60  ;;  %v7191_v60 = vmov 0 }
  0x8a   : > { %v327_v33 = vsel %vm7098_vm9, 1, %v6603_v28  ;;  %vm2796_vm11 = vmand %vm7100_vm4, %vm7099_vm10  ;;  %vm7107_vm4 = vnez %v6968_v58  ;;  %vm7110_vm9 = vnez %v6972_v59  ;;  %7143 = vst [vmem:[#allocation29_spill] sm:$0xff] %v2926_v56 }
  0x8b   : > { %v7102_v34 = vsel %vm2796_vm11, 4294967295, %v7101_v34  ;;  %vm2803_vm13 = vmxor %vm7103_vm14, %vm6956_vm5  ;;  %vm7138_vm11 = vcmp.gt.s32.totalorder %v2306_v43, 9 }
  0x8c   : > { %v7105_v35 = vsel %vm2803_vm13, 4294967295, %v7104_v35  ;;  %vm266_vm6 = vmand %vm2550_vm2, %vm7107_vm4  ;;  %vm7147_vm13 = vnez %v7012_v11 }
  0x8d   : > { %7106 = vst [vmem:[#allocation22_spill] sm:$0xff] %v7105_v35  ;;  %vm7108_vm14 = vmand %vm7083_vm7, %vm7082_vm12  ;;  %v330_v41 = vsel %vm266_vm6, 1, %v6603_v28  ;;  %vm7130_vm12 = vcmp.gt.s32.totalorder %v2044_v14, 14  ;;  %vm7134_vm6 = vnez %v7001_v8 }
  0x8e   : > { %v328_v36 = vsel %vm7108_vm14, 1, %v6603_v28  ;;  %vm7109_vm1 = vmmov %vm7099_vm10  ;;  %vm7127_vm14 = vnez %v6989_v0 }
  0x8f   : > { %vm2830_vm10 = vmand %vm7110_vm9, %vm7109_vm1  ;;  %vm7117_vm1 = vcmp.gt.s32.totalorder %v2306_v43, 8  ;;  %vm7118_vm9 = vcmp.le.s32.totalorder %v2303_v42, 8 }
  0x90   : > { %v7112_v37 = vsel %vm2830_vm10, 4294967295, %v7111_v37  ;;  %vm2837_vm4 = vmxor %vm7113_vm3, %vm6956_vm5  ;;  %vm7139_vm3 = vcmp.le.s32.totalorder %v2303_v42, 9 }
  0x91   : > { %v7115_v38 = vsel %vm2837_vm4, 4294967295, %v7114_v38  ;;  %vm2847_vm10 = vmand %vm7118_vm9, %vm7117_vm1  ;;  %vm7123_vm1 = vnez %v6986_v63  ;;  %vm7131_vm4 = vnez %v6997_v4  ;;  %v7148_v63 = vmov 0 }
  0x92   : > { %7116 = vst [vmem:[#allocation23_spill] sm:$0xff] %v7115_v38  ;;  %v7120_v39 = vsel %vm2847_vm10, 4294967295, %v7119_v39  ;;  %vm2869_vm9 = vmxor %vm7123_vm1, %vm6956_vm5  ;;  %vm7146_vm1 = vcmp.gt.s32.totalorder %v2044_v14, 14  ;;  %v7151_v4 = vmov 0 }
  0x93   : > { %v7125_v44 = vsel %vm2869_vm9, 4294967295, %v7124_v44  ;;  %vm2898_vm9 = vmand %vm7131_vm4, %vm7130_vm12  ;;  %vm7142_vm4 = vnez %v7004_v9 }
  0x94   : > { %7126 = vst [vmem:[#allocation25_spill] sm:$0xff] %v7125_v44  ;;  %v7133_v51 = vsel %vm2898_vm9, 4294967295, %v7132_v51  ;;  %vm2905_vm10 = vmxor %vm7134_vm6, %vm6956_vm5 }
  0x95   : > { %v7136_v53 = vsel %vm2905_vm10, 4294967295, %v7135_v53  ;;  %vm2915_vm12 = vmand %vm7139_vm3, %vm7138_vm11 }
  0x96   : > { %7137 = vst [vmem:[#allocation28_spill] sm:$0xff] %v7136_v53  ;;  %v7141_v54 = vsel %vm2915_vm12, 4294967295, %v7140_v54  ;;  %vm7145_vm11 = vmand %vm2587_vm15, %vm7127_vm14  ;;  %vm7150_vm12 = vnez %v7016_v12 }
  0x97   : > { %v332_v59 = vsel %vm7145_vm11, 1, %v6603_v28  ;;  %vm2950_vm6 = vmand %vm7147_vm13, %vm7146_vm1  ;;  %vm7154_vm11 = vnez %v7018_v13  ;;  %vm7171_vm1 = vcmp.eq.s32.totalorder %v330_v41, 1  ;;  %v7186_v41 = vmov 0 }
  0x98   : > { %v7149_v63 = vsel %vm2950_vm6, 4294967295, %v7148_v63  ;;  %vm2957_vm14 = vmxor %vm7150_vm12, %vm6956_vm5  ;;  %vm7156_vm6 = vcmp.eq.s32.totalorder %v326_v29, 1  ;;  %vm7157_vm12 = vcmp.gt.s32.totalorder %v2044_v14, 15  ;;  %v7167_v29 = vmov 0  ;;  %v3029_v14 = vld [vmem:[%s6531_s1 + $0x40] sm:$0xff] }
  0x99   : > { %v7152_v4 = vsel %vm2957_vm14, 4294967295, %v7151_v4  ;;  %vm270_vm3 = vmand %vm2621_vm0, %vm7154_vm11  ;;  %v390_v11 = vsel %vm7156_vm6, %v2858_v40, -3.4028235e+38  ;;  %vm7158_vm14 = vnez %v7026_v16  ;;  %vm7161_vm11 = vnez %v7030_v17  ;;  %7182 = vst [vmem:[#allocation34_spill] sm:$0xff] %v3029_v14 }
  0x9a   : > { %7153 = vst [vmem:[#allocation31_spill] sm:$0xff] %v7152_v4  ;;  %vm7155_vm13 = vmand %vm7083_vm7, %vm7097_vm8  ;;  %vm7165_vm7 = vcmp.gt.s32.totalorder %v2306_v43, 10  ;;  %vm7166_vm6 = vcmp.le.s32.totalorder %v2303_v42, 10  ;;  %v334_v16 = vsel %vm270_vm3, 1, %v6603_v28  ;;  %v394_v12 = vsel %vm7171_vm1, %v2885_v47, -3.4028235e+38 }
  0x9b   : > { %v329_v8 = vsel %vm7155_vm13, 1, %v6603_v28  ;;  %vm2978_vm10 = vmand %vm7158_vm14, %vm7157_vm12  ;;  %vm7181_vm1 = vnez %v7053_v7  ;;  %v7198_v47 = vmov 0  ;;  %vm7212_vm14 = vcmp.le.s32.totalorder %v2303_v42, 12 }
  0x9c   : > { %v7160_v62 = vsel %vm2978_vm10, 4294967295, %v7159_v62  ;;  %vm2985_vm9 = vmxor %vm7161_vm11, %vm6956_vm5  ;;  %vm7170_vm11 = vcmp.eq.s32.totalorder %v327_v33, 1 }
  0x9d   : > { %v7163_v3 = vsel %vm2985_vm9, 4294967295, %v7162_v3  ;;  %vm2993_vm13 = vmand %vm7166_vm6, %vm7165_vm7  ;;  %v391_v17 = vsel %vm7170_vm11, %v2880_v45, -3.4028235e+38  ;;  %vm7173_vm7 = vnez %v7041_v19  ;;  %vm7180_vm11 = vnez %v7048_v5 }
  0x9e   : > { %7164 = vst [vmem:[#allocation32_spill] sm:$0xff] %v7163_v3  ;;  %v7168_v29 = vsel %vm2993_vm13, 4294967295, %v7167_v29  ;;  %vm7172_vm8 = vmmov %vm7157_vm12  ;;  %vm7176_vm12 = vnez %v7045_v20  ;;  %vm7190_vm9 = vcmp.le.s32.totalorder %v2303_v42, 11  ;;  %v7222_v5 = vmov 0 }
  0x9f   : > { %vm3011_vm6 = vmand %vm7173_vm7, %vm7172_vm8  ;;  %vm7183_vm7 = vcmp.eq.s32.totalorder %v328_v36, 1  ;;  %v3063_v36 = vld [vmem:[%s6531_s1 + $0x50] sm:$0xff]  ;;  %vm7201_vm8 = vnez %v7068_v24 }
  0xa0   : > { %v7175_v50 = vsel %vm3011_vm6, 4294967295, %v7174_v50  ;;  %vm3018_vm3 = vmxor %vm7176_vm12, %vm6956_vm5  ;;  %v392_v19 = vsel %vm7183_vm7, %v2926_v56, -3.4028235e+38  ;;  %vm7184_vm6 = vcmp.eq.s32.totalorder %v332_v59, 1  ;;  %vm7185_vm12 = vnez %v7056_v21  ;;  %v3058_v21 = vld [vmem:[%s6531_s1 + $0x18] sm:$0xff]  ;;  %7195 = vst [vmem:[#allocation37_spill] sm:$0xff] %v3063_v36 }
  0xa1   : > { %v7178_v48 = vsel %vm3018_vm3, 4294967295, %v7177_v48  ;;  %vm272_vm13 = vmand %vm7181_vm1, %vm7180_vm11  ;;  %v396_v20 = vsel %vm7184_vm6, %v2931_v57, -3.4028235e+38  ;;  %vm7189_vm11 = vcmp.gt.s32.totalorder %v2306_v43, 11  ;;  %7194 = vst [vmem:[#allocation36_spill] sm:$0xff] %v3058_v21  ;;  %vm7205_vm7 = vcmask 64512  }
  0xa2   : > { %7179 = vst [vmem:[#allocation33_spill] sm:$0xff] %v7178_v48  ;;  %vm3039_vm3 = vmxor %vm7185_vm12, %vm6956_vm5  ;;  %v336_v59 = vsel %vm272_vm13, 1, %v6603_v28  ;;  %vm7197_vm12 = vnez %v7065_v23  ;;  %vm7203_vm13 = vnez %v6978_v61  ;;  %v425_v57 = vsel %vm7205_vm7, %v394_v12, -inf  ;;  %v3118_v12 = vld [vmem:[%s6531_s1 + $0x60] sm:$0xff] }
  0xa3   : > { %v7187_v41 = vsel %vm3039_vm3, 4294967295, %v7186_v41  ;;  %vm3047_vm10 = vmand %vm7190_vm9, %vm7189_vm11  ;;  %vm7196_vm11 = vcmask 64512   ;;  %v7208_v56 = vmov 0  ;;  %7217 = vst [vmem:[#allocation41_spill] sm:$0xff] %v3118_v12  ;;  %vm7226_vm9 = vnez %v7096_v32 }
  0xa4   : > { %7188 = vst [vmem:[#allocation35_spill] sm:$0xff] %v7187_v41  ;;  %v7192_v60 = vsel %vm3047_vm10, 4294967295, %v7191_v60  ;;  %v3067_v33 = vsel %vm7196_vm11, %v390_v11, -inf  ;;  %vm3073_vm6 = vmxor %vm7197_vm12, %vm6956_vm5  ;;  %vm7202_vm10 = vnez %v7073_v25  ;;  %vm7207_vm12 = vnez %v7078_v26  ;;  %v3113_v26 = vld [vmem:[%s6531_s1 + $0x28] sm:$0xff]  ;;  %v3292_v25 = vld [vmem:[%s6531_s1 + $0xa0] sm:$0xff] }
  0xa5   : > { %v7199_v47 = vsel %vm3073_vm6, 4294967295, %v7198_v47  ;;  %vm274_vm3 = vmand %vm7202_vm10, %vm7201_vm8  ;;  %vm7211_vm8 = vcmp.gt.s32.totalorder %v2306_v43, 12  ;;  %7216 = vst [vmem:[#allocation40_spill] sm:$0xff] %v3113_v26 }
  0xa6   : > { %7200 = vst [vmem:[#allocation38_spill] sm:$0xff] %v7199_v47  ;;  %vm7204_vm11 = vmand %vm2550_vm2, %vm7203_vm13  ;;  %vm7215_vm2 = vnez %v7080_v27 }
  0xa7   : > { %v331_v11 = vsel %vm7204_vm11, 1, %v6603_v28  ;;  %vm7206_vm1 = vmmov %vm7205_vm7  ;;  %vm7221_vm11 = vnez %v7088_v30  ;;  %7285 = vst [vmem:[#allocation54_spill] sm:$0xff] %v3292_v25 }
  0xa8   : > { %v3089_v23 = vsel %vm7206_vm1, %v391_v17, -inf  ;;  %vm3094_vm6 = vmxor %vm7207_vm12, %vm6956_vm5  ;;  %v338_v17 = vsel %vm274_vm3, 1, %v6603_v28 }
  0xa9   : > { %v7209_v56 = vsel %vm3094_vm6, 4294967295, %v7208_v56  ;;  %vm3102_vm0 = vmand %vm7212_vm14, %vm7211_vm8  ;;  %vm7218_vm14 = vcmp.eq.s32.totalorder %v334_v16, 1  ;;  %vm7264_vm6 = vcmp.le.s32.totalorder %v2303_v42, 14 }
  0xaa   : > { %7210 = vst [vmem:[#allocation39_spill] sm:$0xff] %v7209_v56  ;;  %v7214_v10 = vsel %vm3102_vm0, 4294967295, %v7213_v10  ;;  %v398_v45 = vsel %vm7218_vm14, %v3029_v14, -3.4028235e+38  ;;  %vm7219_vm8 = vmmov %vm7206_vm1  ;;  %v426_v14 = vmax.f32 %v3067_v33, %v425_v57  ;;  %vm7244_vm14 = vnez %v7112_v37  ;;  %v3204_v57 = vld [vmem:[%s6531_s1 + $0x80] sm:$0xff] }
  0xab   : > { %v424_v40 = vsel %vm7219_vm8, %v392_v19, -inf  ;;  %vm7220_vm7 = vmmov %vm7206_vm1  ;;  %vm7225_vm1 = vnez %v7091_v31  ;;  %vm7228_vm8 = vcmp.eq.s32.totalorder %v329_v8, 1  ;;  %v3175_v8 = vld [vmem:[%s6531_s1 + $0x70] sm:$0xff]  ;;  %7251 = vst [vmem:[#allocation48_spill] sm:$0xff] %v3204_v57 }
  0xac   : > { %v427_v24 = vsel %vm7220_vm7, %v396_v20, -inf  ;;  %vm3128_vm12 = vmxor %vm7221_vm11, %vm6956_vm5  ;;  %v3144_v30 = vsel %vm7228_vm8, %v3058_v21, -3.4028235e+38  ;;  %vm7229_vm7 = vcmp.eq.s32.totalorder %v336_v59, 1  ;;  %vm7230_vm11 = vnez %v7102_v34  ;;  %v3170_v34 = vld [vmem:[%s6531_s1 + $0x38] sm:$0xff]  ;;  %7240 = vst [vmem:[#allocation45_spill] sm:$0xff] %v3175_v8 }
  0xad   : > { %v7223_v5 = vsel %vm3128_vm12, 4294967295, %v7222_v5  ;;  %vm276_vm13 = vmand %vm7226_vm9, %vm7225_vm1  ;;  %v400_v19 = vsel %vm7229_vm7, %v3063_v36, -3.4028235e+38  ;;  %v7231_v20 = vmov 0  ;;  %vm7234_vm1 = vcmp.gt.s32.totalorder %v2306_v43, 13  ;;  %7239 = vst [vmem:[#allocation44_spill] sm:$0xff] %v3170_v34 }
  0xae   : > { %7224 = vst [vmem:[#allocation42_spill] sm:$0xff] %v7223_v5  ;;  %vm7227_vm3 = vmand %vm2587_vm15, %vm7142_vm4  ;;  %vm7235_vm15 = vcmp.le.s32.totalorder %v2303_v42, 13  ;;  %v340_v36 = vsel %vm276_vm13, 1, %v6603_v28  ;;  %v7245_v21 = vmov 0  ;;  %vm7252_vm13 = vnez %v7053_v7 }
  0xaf   : > { %v333_v16 = vsel %vm7227_vm3, 1, %v6603_v28  ;;  %vm3151_vm12 = vmxor %vm7230_vm11, %vm6956_vm5  ;;  %vm7242_vm11 = vnez %v7033_v18  ;;  %v428_v33 = vmax.f32 %v424_v40, %v427_v24  ;;  %vm7255_vm7 = vcmask 64512  }
  0xb0   : > { %v7232_v20 = vsel %vm3151_vm12, 4294967295, %v7231_v20  ;;  %vm3159_vm3 = vmand %vm7235_vm15, %vm7234_vm1  ;;  %vm7241_vm1 = vnez %v7038_v6  ;;  %vm7249_vm12 = vnez %v7120_v39  ;;  %v3199_v6 = vld [vmem:[%s6531_s1 + $0x48] sm:$0xff]  ;;  %v7260_v40 = vmov 0 }
  0xb1   : > { %7233 = vst [vmem:[#allocation43_spill] sm:$0xff] %v7232_v20  ;;  %v7237_v15 = vsel %vm3159_vm3, 4294967295, %v7236_v15  ;;  %vm7243_vm15 = vmand %vm7241_vm1, %vm7242_vm11  ;;  %vm7248_vm3 = vnez %v7115_v38  ;;  %v429_v38 = vsel %vm7255_vm7, %v398_v45, -inf  ;;  %vm7263_vm11 = vcmp.gt.s32.totalorder %v2306_v43, 14 }
  0xb2   : > { %v335_v59 = vsel %vm7243_vm15, 1, %v6603_v28  ;;  %vm3188_vm4 = vmxor %vm7244_vm14, %vm6956_vm5  ;;  %7250 = vst [vmem:[#allocation47_spill] sm:$0xff] %v3199_v6  ;;  %vm7253_vm14 = vnez %v7059_v22  ;;  %v7265_v45 = vmov 0  ;;  %vm7283_vm8 = vnez %v7163_v3 }
  0xb3   : > { %v7246_v21 = vsel %vm3188_vm4, 4294967295, %v7245_v21  ;;  %vm278_vm0 = vmand %vm7249_vm12, %vm7248_vm3  ;;  %vm7256_vm4 = vnez %v7125_v44 }
  0xb4   : > { %7247 = vst [vmem:[#allocation46_spill] sm:$0xff] %v7246_v21  ;;  %vm7254_vm1 = vmand %vm7252_vm13, %vm7253_vm14  ;;  %v342_v7 = vsel %vm278_vm0, 1, %v6603_v28  ;;  %vm7257_vm13 = vcmp.eq.s32.totalorder %v338_v17, 1  ;;  %vm7267_vm0 = vnez %v7136_v53 }
  0xb5   : > { %v337_v37 = vsel %vm7254_vm1, 1, %v6603_v28  ;;  %v402_v31 = vsel %vm7257_vm13, %v3118_v12, -3.4028235e+38  ;;  %vm7258_vm1 = vmmov %vm7255_vm7  ;;  %vm7259_vm7 = vnez %v7133_v51  ;;  %vm7268_vm13 = vnez %v7141_v54 }
  0xb6   : > { %v431_v24 = vsel %vm7258_vm1, %v400_v19, -inf  ;;  %vm3227_vm3 = vmxor %vm7259_vm7, %vm6956_vm5  ;;  %vm7269_vm7 = vcmp.eq.s32.totalorder %v331_v11, 1  ;;  %v7272_v19 = vmov 0  ;;  %v3264_v11 = vld [vmem:[%s6531_s1 + $0x58] sm:$0xff]  ;;  %v430_v12 = vmax.f32 %v426_v14, %v429_v38 }
  0xb7   : > { %v7261_v40 = vsel %vm3227_vm3, 4294967295, %v7260_v40  ;;  %vm3235_vm15 = vmand %vm7264_vm6, %vm7263_vm11  ;;  %v3245_v51 = vsel %vm7269_vm7, %v3113_v26, -3.4028235e+38  ;;  %vm7270_vm3 = vcmp.eq.s32.totalorder %v340_v36, 1  ;;  %vm7271_vm6 = vnez %v7149_v63  ;;  %7276 = vst [vmem:[#allocation51_spill] sm:$0xff] %v3264_v11  ;;  %v3269_v36 = vld [vmem:[%s6531_s1 + $0x90] sm:$0xff] }
  0xb8   : > { %7262 = vst [vmem:[#allocation49_spill] sm:$0xff] %v7261_v40  ;;  %v7266_v45 = vsel %vm3235_vm15, 4294967295, %v7265_v45  ;;  %vm280_vm1 = vmand %vm7268_vm13, %vm7267_vm0  ;;  %v404_v17 = vsel %vm7270_vm3, %v3175_v8, -3.4028235e+38  ;;  %v7280_v26 = vmov 0  ;;  %vm7284_vm0 = vnez %v7168_v29  ;;  %v3399_v29 = vld [vmem:[%s6531_s1 + $0x88] sm:$0xff] }
  0xb9   : > { %vm3253_vm11 = vmxor %vm7271_vm6, %vm6956_vm5  ;;  %7277 = vst [vmem:[#allocation52_spill] sm:$0xff] %v3269_v36  ;;  %v344_v8 = vsel %vm280_vm1, 1, %v6603_v28  ;;  %vm7279_vm6 = vnez %v7160_v62  ;;  %vm7286_vm1 = vcmp.eq.s32.totalorder %v333_v16, 1  ;;  %v432_v62 = vmax.f32 %v428_v33, %v431_v24 }
  0xba   : > { %v7273_v19 = vsel %vm3253_vm11, 4294967295, %v7272_v19  ;;  %vm7278_vm3 = vmand %vm7202_vm10, %vm7215_vm2  ;;  %vm376_vm10 = vcmp.eq.s32.totalorder %v344_v8, 1  ;;  %v3296_v38 = vsel %vm7286_vm1, %v3170_v34, -3.4028235e+38  ;;  %v7293_v8 = vmov 0   ;;  %7318 = vst [vmem:[#allocation59_spill] sm:$0xff] %v3399_v29 }
  0xbb   : > { %7274 = vst [vmem:[#allocation50_spill] sm:$0xff] %v7273_v19  ;;  %v339_v63 = vsel %vm7278_vm3, 1, %v6603_v28  ;;  %vm3281_vm14 = vmxor %vm7279_vm6, %vm6956_vm5  ;;  %vm7287_vm3 = vcmask 64512   ;;  %vm7288_vm6 = vnez %v7175_v50  ;;  %v7289_v28 = vmov 0 }
  0xbc   : > { %v7281_v26 = vsel %vm3281_vm14, 4294967295, %v7280_v26  ;;  %vm282_vm11 = vmand %vm7284_vm0, %vm7283_vm8  ;;  %v433_v14 = vsel %vm7287_vm3, %v402_v31, -inf  ;;  %vm7292_vm8 = vnez %v7178_v48  ;;  %vm7294_vm1 = vcmp.eq.s32.totalorder %v335_v59, 1 }
  0xbd   : > { %7282 = vst [vmem:[#allocation53_spill] sm:$0xff] %v7281_v26  ;;  %vm3302_vm7 = vmxor %vm7288_vm6, %vm6956_vm5  ;;  %v346_v16 = vsel %vm282_vm11, 1, %v7293_v8  ;;  %v3313_v34 = vsel %vm7294_vm1, %v3199_v6, -3.4028235e+38  ;;  %vm7295_vm3 = vcmp.eq.s32.totalorder %v342_v7, 1  ;;  %vm7296_vm14 = vcmask 64512  }
  0xbe   : > { %v7290_v28 = vsel %vm3302_vm7, 4294967295, %v7289_v28  ;;  %v406_v31 = vsel %vm7295_vm3, %v3204_v57, -3.4028235e+38  ;;  %v435_v50 = vsel %vm7296_vm14, %v404_v17, -inf  ;;  %vm7297_vm5 = vnez %v7187_v41  ;;  %v3338_v7 = vld [vmem:[%s6531_s1 + $0x68] sm:$0xff]  ;;  %vm7305_vm1 = vmand %vm7249_vm12, %vm7256_vm4 }
  0xbf   : > { %7291 = vst [vmem:[#allocation55_spill] sm:$0xff] %v7290_v28  ;;  %vm7298_vm6 = vnez %v7192_v60  ;;  %vm7299_vm2 = vcmp.eq.s32.totalorder %v337_v37, 1  ;;  %v408_v59 = vsel %vm376_vm10, %v3269_v36, -3.4028235e+38  ;;  %vm7300_vm11 = vnez %v7199_v47  ;;  %7301 = vst [vmem:[#allocation56_spill] sm:$0xff] %v3338_v7  ;;  %v3343_v37 = vld [vmem:[%s6531_s1 + $0xb0] sm:$0xff] }
  0xc0   : > { %vm284_vm7 = vmand %vm7298_vm6, %vm7297_vm5  ;;  %v3324_v33 = vsel %vm7299_vm2, %v3264_v11, -3.4028235e+38  ;;  %7302 = vst [vmem:[#allocation57_spill] sm:$0xff] %v3343_v37  ;;  %vm7303_vm2 = vnez %v7105_v35  ;;  %v343_v17 = vsel %vm7305_vm1, 1, %v7293_v8  ;;  %v434_v57 = vmax.f32 %v430_v12, %v433_v14  ;;  %v3376_v12 = vld [vmem:[%s6531_s1 + $0x78] sm:$0xff] }
  0xc1   : > { %vm7304_vm10 = vmand %vm7226_vm9, %vm7303_vm2  ;;  %v348_v36 = vsel %vm284_vm7, 1, %v7293_v8  ;;  %vm7306_vm3 = vnez %v7209_v56  ;;  %vm7307_vm15 = vnez %v7214_v10  ;;  %v436_v39 = vmax.f32 %v432_v62, %v435_v50  ;;  %7313 = vst [vmem:[#allocation58_spill] sm:$0xff] %v3376_v12  ;;  %v3421_v60 = vld [vmem:[%s6531_s1 + $0x98] sm:$0xff] }
  0xc2   : > { %v341_v24 = vsel %vm7304_vm10, 1, %v7293_v8  ;;  %vm286_vm14 = vmand %vm7307_vm15, %vm7306_vm3  ;;  %vm7309_vm10 = vnez %v7152_v4  ;;  %vm7311_vm12 = vcmask 64512   ;;  %vm7312_vm1 = vnez %v7223_v5  ;;  %7323 = vst [vmem:[#allocation60_spill] sm:$0xff] %v3421_v60 }
  0xc3   : > { %vm7308_vm9 = vmmov %vm7268_vm13  ;;  %v437_v11 = vsel %vm7311_vm12, %v406_v31, -inf  ;;  %v350_v62 = vsel %vm286_vm14, 1, %v7293_v8  ;;  %v439_v10 = vsel %vm7311_vm12, %v408_v59, -inf  ;;  %vm7317_vm5 = vnez %v7237_v15 }
  0xc4   : > { %vm7310_vm13 = vmand %vm7308_vm9, %vm7309_vm10  ;;  %vm7315_vm9 = vcmp.eq.s32.totalorder %v346_v16, 1  ;;  %vm7320_vm14 = vcmp.eq.s32.totalorder %v339_v63, 1  ;;  %v3426_v63 = vld [vmem:[%s6531_s1 + $0xc0] sm:$0xff]  ;;  %v3443_v5 = vmax.f32 %v436_v39, %v439_v10  ;;  %vm7337_vm3 = vnez %v7273_v19 }
  0xc5   : > { %v345_v32 = vsel %vm7310_vm13, 1, %v7293_v8  ;;  %vm287_vm7 = vmand %vm7307_vm15, %vm7312_vm1  ;;  %v410_v14 = vsel %vm7315_vm9, %v3292_v25, -3.4028235e+38  ;;  %vm7316_vm15 = vnez %v7232_v20  ;;  %v3410_v50 = vsel %vm7320_vm14, %v3338_v7, -3.4028235e+38  ;;  %7324 = vst [vmem:[#allocation61_spill] sm:$0xff] %v3426_v63 }
  0xc6   : > { %vm7314_vm13 = vmand %vm7284_vm0, %vm7292_vm8  ;;  %v351_v31 = vsel %vm287_vm7, 1, %v7293_v8  ;;  %vm7322_vm9 = vnez %v7246_v21  ;;  %vm7325_vm14 = vcmp.gt.s32.totalorder %v2306_v43, 15  ;;  %v3441_v25 = vld [vmem:[%s6531_s1 + $0xa8] sm:$0xff]  ;;  %vm7336_vm1 = vcmask 64512  }
  0xc7   : > { %v347_v54 = vsel %vm7314_vm13, 1, %v7293_v8  ;;  %vm7319_vm0 = vmand %vm7298_vm6, %vm7300_vm11  ;;  %vm7321_vm13 = vcmp.eq.s32.totalorder %v348_v36, 1  ;;  %v3428_v36 = vmax.f32 %v434_v57, %v437_v11  ;;  %7329 = vst [vmem:[#allocation62_spill] sm:$0xff] %v3441_v25  ;;  %v3462_v43 = vld [vmem:[%s6531_s1 + $0xc8] sm:$0xff]  ;;  %vm7341_vm6 = vcmask 64512  }
  0xc8   : > { %v349_v16 = vsel %vm7319_vm0, 1, %v7293_v8  ;;  %v412_v59 = vsel %vm7321_vm13, %v3343_v37, -3.4028235e+38  ;;  %vm7326_vm13 = vcmp.le.s32.totalorder %v2303_v42, 15  ;;  %vm7330_vm0 = vcmask 64512   ;;  %v3457_v42 = vld [vmem:[%s6531_s1 + $0xb8] sm:$0xff] }
  0xc9   : > { %vm3434_vm12 = vmand %vm7326_vm13, %vm7325_vm14  ;;  %v3446_v57 = vsel %vm7330_vm0, %v410_v14, -inf  ;;  %vm7331_vm14 = vnez %v7261_v40  ;;  %vm7332_vm13 = vnez %v7266_v45  ;;  %7333 = vst [vmem:[#allocation63_spill] sm:$0xff] %v3457_v42  ;;  %v3471_v39 = vsel %vm7336_vm1, %v412_v59, -inf }
  0xca   : > { %7334 = vst [vmem:[#allocation64_spill] sm:$0xff] %v3462_v43  ;;  %vm7335_vm0 = vmand %vm7317_vm5, %vm7316_vm15  ;;  %vm7340_vm1 = vcmp.eq.s32.totalorder %v350_v62, 1  ;;  %v455_v20 = vsel %vm7341_vm6, %v3144_v30, -inf  ;;  %vm7342_vm11 = vnez %v7281_v26  ;;  %vm7345_vm7 = vcmp.eq.s32.totalorder %v347_v54, 1 }
  0xcb   : > { %v352_v11 = vsel %vm7335_vm0, 1, %v7293_v8  ;;  %vm7338_vm15 = vmand %vm7317_vm5, %vm7322_vm9  ;;  %vm7339_vm0 = vcmp.eq.s32.totalorder %v341_v24, 1  ;;  %v414_v59 = vsel %vm7340_vm1, %v3426_v63, -3.4028235e+38  ;;  %v411_v62 = vsel %vm7345_vm7, %v3441_v25, -3.4028235e+38 }
  0xcc   : > { %v3488_v14 = vsel %vm7338_vm15, 1, %v7293_v8  ;;  %v405_v10 = vsel %vm7339_vm0, %v3376_v12, -3.4028235e+38  ;;  %vm7343_vm15 = vcmp.eq.s32.totalorder %v343_v17, 1  ;;  %vm7344_vm0 = vcmp.eq.s32.totalorder %v345_v32, 1 }
  0xcd   : > { %v407_v15 = vsel %vm7343_vm15, %v3399_v29, -3.4028235e+38  ;;  %v409_v24 = vsel %vm7344_vm0, %v3421_v60, -3.4028235e+38  ;;  %vm7346_vm6 = vnez %v7290_v28  ;;  %vm7347_vm15 = vcmp.eq.s32.totalorder %v349_v16, 1 }
  0xce   : > { %v3518_v17 = vsel %vm7347_vm15, %v3457_v42, -3.4028235e+38  ;;  %vm7348_vm7 = vcmp.eq.s32.totalorder %v351_v31, 1  ;;  %v7349_v30 = vstv %s8328_s4  ;;  %v7352_v25 = vstv %s8330_s5  ;;  %v3544_v31 = vld [vmem:[%s6531_s1 + $0xd0] sm:$0xff]  ;;  %vm7356_vm15 = vmand %vm7332_vm13, %vm7331_vm14 }
  0xcf   : > { %v3522_v32 = vsel %vm7348_vm7, %v3462_v43, -3.4028235e+38  ;;  %vm3529_vm0 = vcmp.ge.s32.totalorder %v6830_v1, %v7349_v30  ;;  %vm3536_vm5 = vcmp.lt.s32.totalorder %v6830_v1, %v7352_v25  ;;  %7355 = vst [vmem:[#allocation65_spill] sm:$0xff] %v3544_v31  ;;  %v354_v25 = vsel %vm7356_vm15, 1, %v7293_v8  ;;  %vm7371_vm15 = vmand %vm7332_vm13, %vm7337_vm3 }
  0xd0   : > { %vm7357_vm1 = vcmask 64512   ;;  %v7359_v43 = vstv %s8328_s4  ;;  %v7362_v21 = vstv %s8330_s5  ;;  %v7365_v60 = vstv %s8332_s6  ;;  %vm7372_vm7 = vmand %vm3434_vm12, %vm7342_vm11 }
  0xd1   : > { %v445_v30 = vsel %vm7357_vm1, %v414_v59, -inf  ;;  %vm7358_vm9 = vmmov %vm7357_vm1  ;;  %vm3559_vm8 = vcmp.ge.s32.totalorder %v6829_v2, %v7359_v43  ;;  %vm3566_vm10 = vcmp.lt.s32.totalorder %v6829_v2, %v7362_v21  ;;  %vm3573_vm1 = vcmp.ge.s32.totalorder %v6830_v1, %v7365_v60 }
  0xd2   : > { %v456_v54 = vsel %vm7358_vm9, %v3245_v51, -inf  ;;  %v7368_v51 = vstv %s8334_s24  ;;  %v355_v21 = vsel %vm7371_vm15, 1, %v7293_v8  ;;  %v356_v60 = vsel %vm7372_vm7, 1, %v7293_v8 }
  0xd3   : > { %vm3580_vm9 = vcmp.lt.s32.totalorder %v6830_v1, %v7368_v51  ;;  %v457_v51 = vmax.f32 %v3089_v23, %v456_v54  ;;  %vm7373_vm14 = vcmask 64512   ;;  %v7375_v45 = vstv %s8332_s6 }
  0xd4   : > { %v458_v29 = vsel %vm7373_vm14, %v3296_v38, -inf  ;;  %vm3617_vm13 = vcmp.ge.s32.totalorder %v6829_v2, %v7375_v45  ;;  %v7378_v26 = vstv %s8334_s24  ;;  %vm7381_vm14 = vmand %vm3434_vm12, %vm7346_vm6  ;;  %vm7382_vm15 = vcmask 64512  }
  0xd5   : > { %vm3624_vm7 = vcmp.lt.s32.totalorder %v6829_v2, %v7378_v26  ;;  %v357_v38 = vsel %vm7381_vm14, 1, %v7293_v8  ;;  %v459_v54 = vmax.f32 %v455_v20, %v458_v29  ;;  %v460_v45 = vsel %vm7382_vm15, %v3313_v34, -inf  ;;  %vm7383_vm11 = vmmov %vm7382_vm15  ;;  %v3660_v20 = vld [vmem:[%s6531_s1 + $0xd8] sm:$0xff] }
  0xd6   : > { %v462_v12 = vsel %vm7383_vm11, %v3324_v33, -inf  ;;  %v7384_v26 = vstv %s8336_s22  ;;  %v7387_v37 = vstv %s8338_s30  ;;  %vm7390_vm11 = vcmp.eq.s32.totalorder %v352_v11, 1  ;;  %vm7391_vm12 = vmmov %vm7382_vm15  ;;  %v3692_v11 = vld [vmem:[%s6531_s1 + $0xf0] sm:$0xff] }
  0xd7   : > { %vm3641_vm3 = vcmp.ge.s32.totalorder %v6830_v1, %v7384_v26  ;;  %vm3648_vm4 = vcmp.lt.s32.totalorder %v6830_v1, %v7387_v37  ;;  %v416_v34 = vsel %vm7390_vm11, %v3544_v31, -3.4028235e+38  ;;  %v461_v33 = vmax.f32 %v457_v51, %v460_v45  ;;  %vm7392_vm14 = vmmov %vm7391_vm12  ;;  %v3703_v51 = vld [vmem:[%s6531_s1 + $0xe8] sm:$0xff]  ;;  %v3708_v45 = vld [vmem:[%s6531_s1 + $0xf8] sm:$0xff] }
  0xd8   : > { %v464_v29 = vsel %vm7391_vm12, %v3410_v50, -inf  ;;  %v466_v26 = vsel %vm7392_vm14, %v405_v10, -inf  ;;  %v7393_v37 = vstv %s8336_s22  ;;  %v7394_v7 = vmov 0  ;;  %v3687_v50 = vld [vmem:[%s6531_s1 + $0xe0] sm:$0xff]  ;;  %vm7399_vm14 = vmmov %vm7391_vm12 }
  0xd9   : > { %vm3670_vm15 = vcmp.ge.s32.totalorder %v6829_v2, %v7393_v37  ;;  %v7396_v47 = vstv %s8338_s30  ;;  %v7397_v41 = vmov 0  ;;  %v468_v10 = vsel %vm7399_vm14, %v407_v15, -inf  ;;  %vm7400_vm2 = vmmov %vm7399_vm14 }
  0xda   : > { %v7395_v7 = vsel %vm3670_vm15, 4294967295, %v7394_v7  ;;  %vm3677_vm6 = vcmp.lt.s32.totalorder %v6829_v2, %v7396_v47  ;;  %v463_v47 = vmax.f32 %v459_v54, %v462_v12  ;;  %vm387_vm12 = vcmp.eq.s32.totalorder %v355_v21, 1  ;;  %vm7402_vm15 = vmmov %vm7400_vm2 }
  0xdb   : > { %v7398_v41 = vsel %vm3677_vm6, 4294967295, %v7397_v41  ;;  %v465_v12 = vmax.f32 %v461_v33, %v464_v29  ;;  %v470_v54 = vsel %vm7400_vm2, %v409_v24, -inf  ;;  %vm7401_vm14 = vcmp.eq.s32.totalorder %v3488_v14, 1  ;;  %vm7403_vm6 = vmmov %vm7400_vm2 }
  0xdc   : > { %v417_v15 = vsel %vm7401_vm14, %v3660_v20, -3.4028235e+38  ;;  %v447_v37 = vsel %vm7402_vm15, %v416_v34, -inf  ;;  %v467_v31 = vmax.f32 %v463_v47, %v466_v26  ;;  %v472_v6 = vsel %vm7403_vm6, %v411_v62, -inf  ;;  %vm7406_vm14 = vmmov %vm7403_vm6 }
  0xdd   : > { %vm7404_vm2 = vcmp.eq.s32.totalorder %v354_v25, 1  ;;  %vm7405_vm11 = vcmp.eq.s32.totalorder %v356_v60, 1  ;;  %v469_v14 = vmax.f32 %v465_v12, %v468_v10  ;;  %v474_v34 = vsel %vm7406_vm14, %v3518_v17, -inf  ;;  %vm7408_vm15 = vmmov %vm7406_vm14 }
  0xde   : > { %v418_v24 = vsel %vm7404_vm2, %v3687_v50, -3.4028235e+38  ;;  %v420_v33 = vsel %vm7405_vm11, %v3692_v11, -3.4028235e+38  ;;  %v419_v62 = vsel %vm387_vm12, %v3703_v51, -3.4028235e+38  ;;  %v471_v25 = vmax.f32 %v467_v31, %v470_v54  ;;  %vm7411_vm11 = vmmov %vm7406_vm14 }
  0xdf   : > { %vm7407_vm6 = vcmp.eq.s32.totalorder %v357_v38, 1  ;;  %v476_v60 = vsel %vm7408_vm15, %v3522_v32, -inf  ;;  %v7409_v26 = vmax.f32 %v3428_v36, %v3446_v57  ;;  %v7410_v17 = vmax.f32 %v3443_v5, %v3471_v39  ;;  %vm7413_vm12 = vmmov %vm7411_vm11 }
  0xe0   : > { %v421_v29 = vsel %vm7407_vm6, %v3708_v45, -3.4028235e+38  ;;  %v473_v21 = vmax.f32 %v469_v14, %v472_v6  ;;  %v478_v38 = vsel %vm7411_vm11, %v417_v15, -inf  ;;  %v449_v5 = vsel %vm7413_vm12, %v418_v24, -inf  ;;  %vm7414_vm2 = vmmov %vm7411_vm11 }
  0xe1   : > { %v446_v47 = vmax.f32 %v7409_v26, %v445_v30  ;;  %v448_v10 = vmax.f32 %v7410_v17, %v447_v37  ;;  %v451_v36 = vsel %vm7414_vm2, %v420_v33, -inf  ;;  %v475_v6 = vmax.f32 %v471_v25, %v474_v34  ;;  %vm3765_vm14 = vmand %vm3529_vm0, %vm3536_vm5 }
  0xe2   : > { %v7415_v57 = vmov 0  ;;  %v3772_v39 = vstv %s8344_s9  ;;  %v477_v32 = vmax.f32 %v473_v21, %v476_v60  ;;  %vm7418_vm6 = vmmov %vm7414_vm2  ;;  %v7420_v63 = vmov 0  ;;  %s4561_s9 = sadd.s32 %s1812_s19, %s1942_s17 }
  0xe3   : > { %v7416_v57 = vsel %vm3765_vm14, 4294967295, %v7415_v57  ;;  %v480_v31 = vsel %vm7418_vm6, %v419_v62, -inf  ;;  %vm7419_vm15 = vmmov %vm7414_vm2  ;;  %v7423_v16 = vmov 0  ;;  %v3803_v40 = vstv %s8346_s26  ;;  %s968_s26 = scalar_select %p4506_p8, 1, 0 }
  0xe4   : > { %7417 = vst [vmem:[#allocation66_spill] sm:$0xff] %v7416_v57  ;;  %v482_v30 = vsel %vm7419_vm15, %v421_v29, -inf  ;;  %vm3780_vm5 = vmand %vm3559_vm8, %vm3566_vm10  ;;  %v479_v42 = vmax.f32 %v475_v6, %v478_v38  ;;  %v7427_v59 = vmov 0  ;;  %v7430_v43 = vstv %s8340_s3  ;;  %s984_s17 = scalar_select %p4523_p9, 1, 0 }
  0xe5   : > { %v7421_v63 = vsel %vm3780_vm5, 4294967295, %v7420_v63  ;;  %vm3788_vm0 = vmand %vm3573_vm1, %vm3580_vm9  ;;  %vm3821_vm10 = vcmp.ge.s32.totalorder %v6830_v1, %v7430_v43  ;;  %v7433_v54 = vstv %s8342_s8  ;;  %v450_v19 = vmax.f32 %v446_v47, %v449_v5  ;;  %p1325_p12 = scmp.gt.s32.totalorder %s4561_s9, 0  ;;  %p1743_p3 = scmp.lt.s32.totalorder %s4561_s9, 16 }
  0xe6   : > { %7422 = vst [vmem:[#allocation67_spill] sm:$0xff] %v7421_v63  ;;  %v7424_v16 = vsel %vm3788_vm0, 4294967295, %v7423_v16  ;;  %vm3814_vm8 = vmand %vm3617_vm13, %vm3624_vm7  ;;  %vm3828_vm1 = vcmp.lt.s32.totalorder %v6830_v1, %v7433_v54  ;;  %v452_v23 = vmax.f32 %v448_v10, %v451_v36  ;;  %v7436_v37 = vmov 0 }
  0xe7   : > { %7425 = vst [vmem:[#allocation68_spill] sm:$0xff] %v7424_v16  ;;  %v7428_v59 = vsel %vm3814_vm8, 4294967295, %v7427_v59  ;;  %vm3839_vm9 = vmand %vm3641_vm3, %vm3648_vm4  ;;  %v7439_v24 = vmov %v7430_v43  ;;  %v7440_v33 = vmov %v7433_v54  ;;  %v481_v14 = vmax.f32 %v477_v32, %v480_v31  ;;  %s4673_s28 = scalar_select %p1325_p12, %s4561_s9, 0 }
  0xe8   : > { %7429 = vst [vmem:[#allocation69_spill] sm:$0xff] %v7428_v59  ;;  %v7437_v37 = vsel %vm3839_vm9, 4294967295, %v7436_v37  ;;  %vm637_vm13 = vcmp.ge.s32.totalorder %v6829_v2, %v7439_v24  ;;  %vm640_vm7 = vcmp.lt.s32.totalorder %v6829_v2, %v7440_v33  ;;  %v483_v34 = vmax.f32 %v479_v42, %v482_v30  ;;  %vm3866_vm6 = vmand %vm3821_vm10, %vm3828_vm1 }
  0xe9   : > { %7438 = vst [vmem:[#allocation70_spill] sm:$0xff] %v7437_v37  ;;  %vm7441_vm11 = vnez %v7398_v41  ;;  %vm7442_vm12 = vnez %v7395_v7  ;;  %v7443_v28 = vmov 0  ;;  %vm701_vm3 = vcmp.gt.s32.totalorder %v3803_v40, 0  ;;  %s8354_s28 = smov (!%p1743_p3, %s4673_s28), 16 }
  0xea   : > { %vm3853_vm2 = vmand %vm7442_vm12, %vm7441_vm11  ;;  %v7446_v56 = vmov 0  ;;  %vm685_vm15 = vcmp.le.s32.totalorder %v3772_v39, 1  ;;  %vm702_vm11 = vcmp.gt.s32.totalorder %v3803_v40, 1  ;;  %v7449_v41 = vmov 0  ;;  %p1569_p8 = scmp.le.s32.totalorder %s8354_s28, %s8352_s25 }
  0xeb   : > { %v7444_v28 = vsel %vm3853_vm2, 4294967295, %v7443_v28  ;;  %v7447_v56 = vsel %vm3866_vm6, 4294967295, %v7446_v56  ;;  %vm3872_vm12 = vmand %vm637_vm13, %vm640_vm7  ;;  %vm703_vm2 = vcmp.gt.s32.totalorder %v3803_v40, 2  ;;  %v453_v7 = vmax.f32 %v450_v19, %v452_v23 }
  0xec   : > { %7445 = vst [vmem:[#allocation71_spill] sm:$0xff] %v7444_v28  ;;  %7448 = vst [vmem:[#allocation72_spill] sm:$0xff] %v7447_v56  ;;  %v7450_v41 = vsel %vm3872_vm12, 4294967295, %v7449_v41  ;;  %vm704_vm1 = vcmp.gt.s32.totalorder %v3803_v40, 3  ;;  %vm7452_vm6 = vcmp.le.s32.totalorder %v3772_v39, 0  ;;  %v7453_v62 = vmov 0  ;;  %p6465_p9 = por %p1569_p8, %p501_p2  ;;  %p6482_p12 = por %p1569_p8, %p545_p6 }
  0xed   : > { %7451 = vst [vmem:[#allocation73_spill] sm:$0xff] %v7450_v41  ;;  %vm3887_vm13 = vmand %vm7452_vm6, %vm701_vm3  ;;  %v484_v29 = vmax.f32 %v481_v14, %v483_v34  ;;  %v7455_v25 = vmov 0  ;;  %vm706_vm6 = vcmp.gt.s32.totalorder %v3803_v40, 5  ;;  %vm7457_vm7 = vcmp.le.s32.totalorder %v3772_v39, 2  ;;  %p6496_p2 = por %p1569_p8, %p589_p7  ;;  %p6507_p6 = por %p1569_p8, %p633_p11 }
  0xee   : > { %v7454_v62 = vsel %vm3887_vm13, 4294967295, %v7453_v62  ;;  %vm3893_vm10 = vmand %vm685_vm15, %vm702_vm11  ;;  %v7458_v60 = vmov 0  ;;  %v515_v47 = vsel %vm3765_vm14, %v453_v7, -3.4028235e+38  ;;  %v559_v17 = vsel %vm3788_vm0, %v453_v7, -3.4028235e+38 }
  0xef   : > { %v7456_v25 = vsel %vm3893_vm10, 4294967295, %v7455_v25  ;;  %vm3906_vm13 = vmand %vm7457_vm7, %vm703_vm2  ;;  %vm7460_vm10 = vcmp.le.s32.totalorder %v3772_v39, 3  ;;  %v603_v10 = vsel %vm3839_vm9, %v453_v7, -3.4028235e+38  ;;  %vm7464_vm2 = vcmp.gt.s32.totalorder %v3803_v40, 4 }
  0xf0   : > { %v7459_v60 = vsel %vm3906_vm13, 4294967295, %v7458_v60  ;;  %vm3916_vm3 = vmand %vm7460_vm10, %vm704_vm1  ;;  %vm7465_vm10 = vcmp.le.s32.totalorder %v3772_v39, 4  ;;  %v7466_v21 = vmov 0  ;;  %v516_v38 = vsel %vm3780_vm5, %v484_v29, -3.4028235e+38 }
  0xf1   : > { %vm3942_vm1 = vmand %vm7465_vm10, %vm7464_vm2  ;;  %v3951_v5 = vstv %s526_s13  ;;  %v560_v36 = vsel %vm3814_vm8, %v484_v29, -3.4028235e+38  ;;  %vm7469_vm7 = vnez %v7444_v28  ;;  %vm7470_vm2 = vcmp.le.s32.totalorder %v3772_v39, 5  ;;  %s936_s13 = scalar_select %p4448_p4, 1, 0 }
  0xf2   : > { %v7467_v21 = vsel %vm3942_vm1, 4294967295, %v7466_v21  ;;  %7468 = vst [vmem:[#allocation74_spill] sm:$0xff] %v3951_v5  ;;  %v604_v6 = vsel %vm7469_vm7, %v484_v29, -3.4028235e+38  ;;  %vm3961_vm10 = vmand %vm7470_vm2, %vm706_vm6  ;;  %v7471_v32 = vmov 0  ;;  %v3968_v31 = vstv %s570_s21  ;;  %p5626_p4 = por %p1246_p13, %p589_p7  ;;  %p21_p7 = scmp.ge.s32.totalorder %s24_s0, 6  }
  0xf3   : > { %v7472_v32 = vsel %vm3961_vm10, 4294967295, %v7471_v32  ;;  %7473 = vst [vmem:[#allocation75_spill] sm:$0xff] %v3968_v31  ;;  %vm7474_vm11 = vnez %v7447_v56  ;;  %v648_v42 = vsel %vm3872_vm12, %v484_v29, -3.4028235e+38  ;;  %vm7475_vm4 = vnez %v6930_v46  ;;  %v7550_v31 = vld [vmem:[#allocation21_spill] sm:$0xff]  ;;  %s1906_s8 = smov (%p21_p7), [#allocation4]  }
  0xf4   : > { %v647_v30 = vsel %vm7474_vm11, %v453_v7, -3.4028235e+38  ;;  %vm7476_vm6 = vnez %v7454_v62  ;;  %vm7477_vm7 = vcmask 64512   ;;  %vm7479_vm11 = vcmp.gt.s32.totalorder %v3803_v40, 6  ;;  %s1582_s24 = scalar_select %p6465_p9, 1, 0 }
  0xf5   : > { %v517_v43 = vsel %vm7477_vm7, %v515_v47, -inf  ;;  %vm7478_vm8 = vmmov %vm7477_vm7  ;;  %vm7480_vm15 = vcmp.le.s32.totalorder %v3772_v39, 6  ;;  %v7481_v54 = vmov 0  ;;  %vm7483_vm2 = vnez %v6939_v49  ;;  %s1598_s22 = scalar_select %p6482_p12, 1, 0 }
  0xf6   : > { %v561_v12 = vsel %vm7478_vm8, %v559_v17, -inf  ;;  %vm3990_vm9 = vmand %vm7480_vm15, %vm7479_vm11  ;;  %vm7489_vm11 = vnez %v7456_v25  ;;  %v4011_v33 = vstv %s614_s23  ;;  %v7495_v7 = vmov 0  ;;  %s952_s23 = scalar_select %p4479_p5, 1, 0 }
  0xf7   : > { %v7482_v54 = vsel %vm3990_vm9, 4294967295, %v7481_v54  ;;  %vm7484_vm8 = vmmov %vm7477_vm7  ;;  %7490 = vst [vmem:[#allocation76_spill] sm:$0xff] %v4011_v33  ;;  %vm7500_vm10 = vcmp.le.s32.totalorder %v3772_v39, 8  ;;  %vm7506_vm13 = vcmp.gt.s32.totalorder %v3803_v40, 9  ;;  %vm7507_vm14 = vcmp.le.s32.totalorder %v3772_v39, 9  ;;  %p5664_p5 = por %p1246_p13, %p633_p11 }
  0xf8   : > { %v518_v15 = vsel %vm7484_vm8, %v516_v38, -inf  ;;  %vm7485_vm5 = vmmov %vm7477_vm7  ;;  %v7516_v62 = vmov 0  ;;  %s1614_s30 = scalar_select %p6496_p2, 1, 0 }
  0xf9   : > { %v562_v19 = vsel %vm7485_vm5, %v560_v36, -inf  ;;  %vm7486_vm0 = vmmov %vm7485_vm5  ;;  %v4045_v29 = vmax.f32 %v517_v43, %v518_v15  ;;  %vm7499_vm5 = vcmp.gt.s32.totalorder %v3803_v40, 8  ;;  %v4066_v36 = vstv %s658_s18  ;;  %s1630_s3 = scalar_select %p6507_p6, 1, 0 }
  0xfa   : > { %v605_v23 = vsel %vm7486_vm0, %v603_v10, -inf  ;;  %vm7487_vm12 = vmmov %vm7486_vm0  ;;  %v4047_v47 = vmax.f32 %v561_v12, %v562_v19  ;;  %v7501_v10 = vmov 0  ;;  %7504 = vst [vmem:[#allocation77_spill] sm:$0xff] %v4066_v36  ;;  %v4109_v43 = vstv %s8348_s16  ;;  %s1291_s16 = scalar_select %p5626_p4, 1, 0 }
  0xfb   : > { %v606_v24 = vsel %vm7487_vm12, %v604_v6, -inf  ;;  %vm7491_vm7 = vmmov %vm7486_vm0  ;;  %vm7494_vm12 = vcmp.le.s32.totalorder %v3772_v39, 7  ;;  %v7508_v6 = vmov 0  ;;  %v4112_v12 = vstv %s8350_s7  ;;  %s1307_s7 = scalar_select %p5664_p5, 1, 0 }
  0xfc   : > { %v649_v14 = vsel %vm7491_vm7, %v647_v30, -inf  ;;  %vm7492_vm8 = vmmov %vm7486_vm0  ;;  %vm7493_vm0 = vcmp.gt.s32.totalorder %v3803_v40, 7  ;;  %v4049_v17 = vmax.f32 %v605_v23, %v606_v24 }
  0xfd   : > { %v650_v34 = vsel %vm7492_vm8, %v648_v42, -inf  ;;  %vm4020_vm9 = vmand %vm7494_vm12, %vm7493_vm0  ;;  %vm7515_vm12 = vcmp.le.s32.totalorder %v3772_v39, 10 }
  0xfe   : > { %v7496_v7 = vsel %vm4020_vm9, 4294967295, %v7495_v7  ;;  %vm4056_vm7 = vmand %vm7500_vm10, %vm7499_vm5  ;;  %v4064_v38 = vmax.f32 %v649_v14, %v650_v34  ;;  %vm7505_vm5 = vnez %v6989_v0  ;;  %v7521_v34 = vld [vmem:[#allocation17_spill] sm:$0xff]  ;;  %vm7533_vm10 = vnez %v7059_v22  ;;  %v7561_v22 = vld [vmem:[#allocation24_spill] sm:$0xff] }
  0xff   : > { %v7502_v10 = vsel %vm4056_vm7, 4294967295, %v7501_v10  ;;  %vm4082_vm8 = vmand %vm7507_vm14, %vm7506_vm13  ;;  %vm7519_vm13 = vnez %v6948_v52  ;;  %vm7529_vm14 = vcmp.gt.s32.totalorder %v3803_v40, 11  ;;  %v7632_v0 = vld [vmem:[#allocation62_spill] sm:$0xff] }
 0x100   : > { %v7509_v6 = vsel %vm4082_vm8, 4294967295, %v7508_v6  ;;  %vm7511_vm15 = vmand %vm7476_vm6, %vm7475_vm4  ;;  %vm7524_vm4 = vnez %v6958_v55 }
 0x101   : > { %v765_v30 = vsel %vm7511_vm15, 1, %v7293_v8  ;;  %vm7513_vm9 = vmand %vm7476_vm6, %vm7483_vm2  ;;  %vm7514_vm15 = vcmp.gt.s32.totalorder %v3803_v40, 10  ;;  %vm7522_vm2 = vnez %v7521_v34  ;;  %v7568_v34 = vld [vmem:[#allocation26_spill] sm:$0xff] }
 0x102   : > { %v766_v42 = vsel %vm7513_vm9, 1, %v7293_v8  ;;  %vm4121_vm0 = vmand %vm7515_vm12, %vm7514_vm15  ;;  %vm7518_vm9 = vnez %v7033_v18  ;;  %vm7523_vm12 = vnez %v7472_v32 }
 0x103   : > { %v7517_v62 = vsel %vm4121_vm0, 4294967295, %v7516_v62  ;;  %vm742_vm6 = vmand %vm3942_vm1, %vm7518_vm9  ;;  %vm7526_vm0 = vnez %v7459_v60  ;;  %vm7530_vm1 = vcmp.le.s32.totalorder %v3772_v39, 11  ;;  %v7539_v60 = vld [vmem:[#allocation19_spill] sm:$0xff] }
 0x104   : > { %vm7520_vm7 = vmand %vm7489_vm11, %vm7519_vm13  ;;  %vm7527_vm13 = vnez %v6968_v58  ;;  %v774_v2 = vsel %vm742_vm6, 1, %v7293_v8 }
 0x105   : > { %v767_v24 = vsel %vm7520_vm7, 1, %v7293_v8  ;;  %vm743_vm15 = vmand %vm7523_vm12, %vm7522_vm2 }
 0x106   : > { %vm7525_vm9 = vmand %vm7489_vm11, %vm7524_vm4  ;;  %v775_v26 = vsel %vm743_vm15, 1, %v7293_v8  ;;  %vm7551_vm15 = vnez %v7550_v31  ;;  %vm7553_vm4 = vcmp.gt.s32.totalorder %v3803_v40, 13 }
 0x107   : > { %v768_v23 = vsel %vm7525_vm9, 1, %v7293_v8  ;;  %vm7528_vm7 = vmand %vm7526_vm0, %vm7527_vm13  ;;  %vm7534_vm9 = vnez %v6978_v61  ;;  %vm7543_vm13 = vnez %v7018_v13 }
 0x108   : > { %v769_v19 = vsel %vm7528_vm7, 1, %v7293_v8  ;;  %vm4156_vm2 = vmand %vm7530_vm1, %vm7529_vm14  ;;  %vm7537_vm14 = vnez %v7004_v9  ;;  %v7576_v9 = vld [vmem:[#allocation27_spill] sm:$0xff] }
 0x109   : > { %vm744_vm11 = vmand %vm7523_vm12, %vm7533_vm10  ;;  %vm7540_vm10 = vnez %v7539_v60 }
 0x10a   : > { %vm7535_vm7 = vmand %vm7526_vm0, %vm7534_vm9  ;;  %vm7541_vm0 = vnez %v7482_v54  ;;  %vm7542_vm9 = vnez %v7467_v21  ;;  %v776_v21 = vsel %vm744_vm11, 1, %v7293_v8  ;;  %v7555_v54 = vmov 0 }
 0x10b   : > { %v770_v25 = vsel %vm7535_vm7, 1, %v7293_v8  ;;  %vm7536_vm1 = vmand %vm3916_vm3, %vm7505_vm5  ;;  %vm7557_vm11 = vnez %v7105_v35 }
 0x10c   : > { %v771_v15 = vsel %vm7536_vm1, 1, %v7293_v8  ;;  %vm7538_vm12 = vmand %vm3916_vm3, %vm7537_vm14  ;;  %vm7545_vm3 = vcmp.gt.s32.totalorder %v3803_v40, 12  ;;  %vm7584_vm6 = vcmp.eq.s32.totalorder %v770_v25, 1 }
 0x10d   : > { %v772_v32 = vsel %vm7538_vm12, 1, %v7293_v8  ;;  %vm745_vm7 = vmand %vm7541_vm0, %vm7540_vm10  ;;  %vm7546_vm12 = vcmp.le.s32.totalorder %v3772_v39, 12  ;;  %vm7549_vm10 = vnez %v7080_v27  ;;  %v7558_v27 = vld [vmem:[#allocation23_spill] sm:$0xff] }
 0x10e   : > { %vm7544_vm5 = vmand %vm7542_vm9, %vm7543_vm13  ;;  %v777_v33 = vsel %vm745_vm7, 1, %v7293_v8  ;;  %vm7552_vm9 = vnez %v7496_v7  ;;  %vm7559_vm13 = vnez %v7558_v27 }
 0x10f   : > { %v773_v1 = vsel %vm7544_vm5, 1, %v7293_v8  ;;  %vm4198_vm8 = vmand %vm7546_vm12, %vm7545_vm3  ;;  %vm7560_vm12 = vnez %v7502_v10  ;;  %vm7567_vm3 = vnez %v7125_v44  ;;  %v7574_v10 = vld [vmem:[#allocation36_spill] sm:$0xff] }
 0x110   : > { %vm746_vm14 = vmand %vm7541_vm0, %vm7549_vm10  ;;  %vm7554_vm0 = vcmp.le.s32.totalorder %v3772_v39, 13 }
 0x111   : > { %vm747_vm1 = vmand %vm7552_vm9, %vm7551_vm15  ;;  %v778_v5 = vsel %vm746_vm14, 1, %v7293_v8  ;;  %vm7562_vm15 = vcmp.eq.s32.totalorder %v765_v30, 1 }
 0x112   : > { %vm4217_vm10 = vmand %vm7554_vm0, %vm7553_vm4  ;;  %v779_v31 = vsel %vm747_vm1, 1, %v7293_v8  ;;  %v829_v35 = vsel %vm7562_vm15, %v7561_v22, -3.4028235e+38  ;;  %vm7569_vm0 = vcmp.eq.s32.totalorder %v766_v42, 1  ;;  %v7570_v22 = vld [vmem:[#allocation29_spill] sm:$0xff]  ;;  %vm7571_vm15 = vcmp.eq.s32.totalorder %v767_v24, 1 }
 0x113   : > { %v7556_v54 = vsel %vm4217_vm10, 4294967295, %v7555_v54  ;;  %vm748_vm7 = vmand %vm7552_vm9, %vm7557_vm11  ;;  %vm7563_vm10 = vcmp.gt.s32.totalorder %v3803_v40, 14  ;;  %vm7564_vm9 = vcmp.le.s32.totalorder %v3772_v39, 14  ;;  %v4248_v30 = vsel %vm7569_vm0, %v7568_v34, -3.4028235e+38  ;;  %v7583_v34 = vld [vmem:[#allocation40_spill] sm:$0xff] }
 0x114   : > { %vm749_vm5 = vmand %vm7560_vm12, %vm7559_vm13  ;;  %v780_v60 = vsel %vm748_vm7, 1, %v7293_v8  ;;  %v831_v18 = vsel %vm7571_vm15, %v7570_v22, -3.4028235e+38  ;;  %vm7578_vm0 = vcmp.gt.s32.totalorder %v3803_v40, 15  ;;  %vm7579_vm7 = vcmp.le.s32.totalorder %v3772_v39, 15 }
 0x115   : > { %vm4237_vm1 = vmand %vm7564_vm9, %vm7563_vm10  ;;  %v781_v27 = vsel %vm749_vm5, 1, %v7293_v8  ;;  %vm7572_vm10 = vnez %v7136_v53  ;;  %vm7573_vm9 = vnez %v7509_v6  ;;  %vm7577_vm5 = vcmp.eq.s32.totalorder %v769_v19, 1  ;;  %v7589_v6 = vld [vmem:[#allocation44_spill] sm:$0xff]  ;;  %v7620_v53 = vld [vmem:[#allocation43_spill] sm:$0xff] }
 0x116   : > { %vm750_vm14 = vmand %vm7560_vm12, %vm7567_vm3  ;;  %vm7575_vm12 = vcmp.eq.s32.totalorder %v768_v23, 1  ;;  %v833_v42 = vsel %vm7577_vm5, %v7576_v9, -3.4028235e+38  ;;  %v4278_v19 = vsel %vm7584_vm6, %v7583_v34, -3.4028235e+38  ;;  %v7585_v9 = vld [vmem:[#allocation30_spill] sm:$0xff]  ;;  %vm7593_vm6 = vnez %v7178_v48 }
 0x117   : > { %vm751_vm4 = vmand %vm7573_vm9, %vm7572_vm10  ;;  %v782_v44 = vsel %vm750_vm14, 1, %v7293_v8  ;;  %v4259_v13 = vsel %vm7575_vm12, %v7574_v10, -3.4028235e+38  ;;  %vm7582_vm10 = vnez %v7152_v4  ;;  %vm7586_vm5 = vcmp.eq.s32.totalorder %v771_v15, 1  ;;  %v7591_v10 = vld [vmem:[#allocation34_spill] sm:$0xff]  ;;  %v7594_v34 = vld [vmem:[#allocation47_spill] sm:$0xff] }
 0x118   : > { %vm4267_vm15 = vmand %vm7579_vm7, %vm7578_vm0  ;;  %v783_v23 = vsel %vm751_vm4, 1, %v7293_v8  ;;  %v835_v40 = vsel %vm7586_vm5, %v7585_v9, -3.4028235e+38  ;;  %vm7587_vm7 = vnez %v7163_v3  ;;  %vm7588_vm0 = vnez %v7517_v62  ;;  %v7596_v3 = vld [vmem:[#allocation37_spill] sm:$0xff]  ;;  %v7600_v62 = vld [vmem:[#allocation51_spill] sm:$0xff] }
 0x119   : > { %vm752_vm14 = vmand %vm7573_vm9, %vm7582_vm10  ;;  %vm7590_vm9 = vcmp.eq.s32.totalorder %v772_v32, 1  ;;  %vm7592_vm4 = vcmp.eq.s32.totalorder %v773_v1, 1  ;;  %v7602_v48 = vld [vmem:[#allocation41_spill] sm:$0xff]  ;;  %vm7617_vm12 = vcmp.eq.s32.totalorder %v781_v27, 1  ;;  %vm7624_vm13 = vcmp.eq.s32.totalorder %v783_v23, 1 }
 0x11a   : > { %vm753_vm3 = vmand %vm7588_vm0, %vm7587_vm7  ;;  %v784_v39 = vsel %vm752_vm14, 1, %v7293_v8  ;;  %v4289_v22 = vsel %vm7590_vm9, %v7589_v6, -3.4028235e+38  ;;  %v837_v25 = vsel %vm7592_vm4, %v7591_v10, -3.4028235e+38  ;;  %vm7595_vm7 = vcmp.eq.s32.totalorder %v774_v2, 1 }
 0x11b   : > { %vm754_vm5 = vmand %vm7588_vm0, %vm7593_vm6  ;;  %v785_v15 = vsel %vm753_vm3, 1, %v7293_v8  ;;  %v4300_v9 = vsel %vm7595_vm7, %v7594_v34, -3.4028235e+38  ;;  %vm7597_vm14 = vcmp.eq.s32.totalorder %v775_v26, 1  ;;  %v7598_v6 = vld [vmem:[#allocation35_spill] sm:$0xff]  ;;  %vm7601_vm0 = vcmp.eq.s32.totalorder %v776_v21, 1 }
 0x11c   : > { %v839_v32 = vsel %vm7597_vm14, %v7596_v3, -3.4028235e+38  ;;  %vm7599_vm9 = vnez %v7598_v6  ;;  %v786_v1 = vsel %vm754_vm5, 1, %v7293_v8  ;;  %v4311_v10 = vsel %vm7601_vm0, %v7600_v62, -3.4028235e+38  ;;  %v7604_v34 = vld [vmem:[#allocation38_spill] sm:$0xff] }
 0x11d   : > { %vm755_vm4 = vmand %vm4156_vm2, %vm7599_vm9  ;;  %vm7603_vm3 = vcmp.eq.s32.totalorder %v777_v33, 1  ;;  %vm7605_vm7 = vnez %v7604_v34  ;;  %v7606_v26 = vld [vmem:[#allocation56_spill] sm:$0xff]  ;;  %vm7607_vm9 = vcmp.eq.s32.totalorder %v778_v5, 1  ;;  %v7608_v4 = vld [vmem:[#allocation45_spill] sm:$0xff]  ;;  %vm7609_vm5 = vcmp.eq.s32.totalorder %v779_v31, 1 }
 0x11e   : > { %v841_v2 = vsel %vm7603_vm3, %v7602_v48, -3.4028235e+38  ;;  %vm756_vm14 = vmand %vm4156_vm2, %vm7605_vm7  ;;  %v787_v3 = vsel %vm755_vm4, 1, %v7293_v8  ;;  %v4322_v6 = vsel %vm7607_vm9, %v7606_v26, -3.4028235e+38  ;;  %v7610_v62 = vld [vmem:[#allocation39_spill] sm:$0xff] }
 0x11f   : > { %v843_v21 = vsel %vm7609_vm5, %v7608_v4, -3.4028235e+38  ;;  %vm7611_vm0 = vnez %v7610_v62  ;;  %v788_v48 = vsel %vm756_vm14, 1, %v7293_v8  ;;  %v7612_v33 = vld [vmem:[#allocation58_spill] sm:$0xff]  ;;  %vm7613_vm2 = vcmp.eq.s32.totalorder %v780_v60, 1  ;;  %v7616_v5 = vld [vmem:[#allocation48_spill] sm:$0xff] }
 0x120   : > { %vm757_vm3 = vmand %vm4198_vm8, %vm7611_vm0  ;;  %v4333_v14 = vsel %vm7613_vm2, %v7612_v33, -3.4028235e+38  ;;  %v7614_v34 = vld [vmem:[#allocation42_spill] sm:$0xff]  ;;  %vm819_vm5 = vcmp.eq.s32.totalorder %v787_v3, 1  ;;  %v845_v31 = vsel %vm7617_vm12, %v7616_v5, -3.4028235e+38  ;;  %vm7621_vm14 = vnez %v7620_v53 }
 0x121   : > { %vm7615_vm4 = vnez %v7614_v34  ;;  %v789_v4 = vsel %vm757_vm3, 1, %v7293_v8  ;;  %v7618_v26 = vld [vmem:[#allocation59_spill] sm:$0xff]  ;;  %vm7619_vm0 = vcmp.eq.s32.totalorder %v782_v44, 1  ;;  %vm7622_vm2 = vnez %v7556_v54  ;;  %v7623_v33 = vld [vmem:[#allocation52_spill] sm:$0xff]  ;;  %v7628_v5 = vld [vmem:[#allocation46_spill] sm:$0xff] }
 0x122   : > { %vm758_vm9 = vmand %vm4198_vm8, %vm7615_vm4  ;;  %v4344_v62 = vsel %vm7619_vm0, %v7618_v26, -3.4028235e+38  ;;  %v847_v36 = vsel %vm7624_vm13, %v7623_v33, -3.4028235e+38  ;;  %v7625_v34 = vld [vmem:[#allocation60_spill] sm:$0xff]  ;;  %vm7626_vm8 = vcmp.eq.s32.totalorder %v784_v39, 1  ;;  %vm7629_vm12 = vnez %v7628_v5 }
 0x123   : > { %vm759_vm6 = vmand %vm7622_vm2, %vm7621_vm14  ;;  %v790_v60 = vsel %vm758_vm9, 1, %v7293_v8  ;;  %v4355_v3 = vsel %vm7626_vm8, %v7625_v34, -3.4028235e+38  ;;  %vm7627_vm3 = vcmask 64512   ;;  %vm820_vm4 = vcmp.eq.s32.totalorder %v788_v48, 1  ;;  %v7630_v26 = vld [vmem:[#allocation54_spill] sm:$0xff] }
 0x124   : > { %v861_v27 = vsel %vm7627_vm3, %v829_v35, -inf  ;;  %vm760_vm0 = vmand %vm7622_vm2, %vm7629_vm12  ;;  %v791_v44 = vsel %vm759_vm6, 1, %v7293_v8  ;;  %vm7631_vm14 = vcmp.eq.s32.totalorder %v785_v15, 1  ;;  %vm7633_vm9 = vcmp.eq.s32.totalorder %v786_v1, 1  ;;  %v7634_v39 = vld [vmem:[#allocation49_spill] sm:$0xff]  ;;  %v7639_v5 = vld [vmem:[#allocation50_spill] sm:$0xff] }
 0x125   : > { %v849_v53 = vsel %vm7631_vm14, %v7630_v26, -3.4028235e+38  ;;  %v4367_v23 = vsel %vm7633_vm9, %v7632_v0, -3.4028235e+38  ;;  %vm7635_vm13 = vnez %v7634_v39  ;;  %v7636_v35 = vld [vmem:[#allocation57_spill] sm:$0xff]  ;;  %vm7637_vm7 = vmmov %vm7627_vm3  ;;  %vm7640_vm6 = vnez %v7639_v5  ;;  %v7649_v48 = vld [vmem:[#allocation64_spill] sm:$0xff] }
 0x126   : > { %vm761_vm8 = vmand %vm4237_vm1, %vm7635_vm13  ;;  %v851_v34 = vsel %vm819_vm5, %v7636_v35, -3.4028235e+38  ;;  %v862_v54 = vsel %vm7637_vm7, %v831_v18, -inf  ;;  %v4381_v0 = vsel %vm760_vm0, 1, %v7293_v8  ;;  %vm822_vm9 = vcmp.eq.s32.totalorder %v790_v60, 1  ;;  %v7641_v26 = vld [vmem:[#allocation53_spill] sm:$0xff] }
 0x127   : > { %vm7638_vm2 = vmmov %vm7627_vm3  ;;  %v793_v15 = vsel %vm761_vm8, 1, %v7293_v8  ;;  %vm7642_vm5 = vnez %v7641_v26  ;;  %v7643_v18 = vld [vmem:[#allocation63_spill] sm:$0xff]  ;;  %v7650_v26 = vld [vmem:[#allocation65_spill] sm:$0xff]  ;;  %vm7705_vm13 = vcmp.gt.s32.totalorder %v4112_v12, 6 }
 0x128   : > { %v863_v33 = vsel %vm7638_vm2, %v833_v42, -inf  ;;  %vm762_vm14 = vmand %vm4237_vm1, %vm7640_vm6  ;;  %vm823_vm2 = vcmp.eq.s32.totalorder %v791_v44, 1  ;;  %vm825_vm3 = vcmp.eq.s32.totalorder %v793_v15, 1  ;;  %v4390_v7 = vsel %vm820_vm4, %v7643_v18, -3.4028235e+38  ;;  %v7645_v35 = vld [vmem:[#allocation55_spill] sm:$0xff] }
 0x129   : > { %v864_v1 = vmax.f32 %v861_v27, %v863_v33  ;;  %vm763_vm7 = vmand %vm4267_vm15, %vm7642_vm5  ;;  %vm7644_vm1 = vcmask 64512   ;;  %vm7646_vm0 = vnez %v7645_v35  ;;  %v4398_v60 = vsel %vm762_vm14, 1, %v7293_v8  ;;  %v7647_v33 = vld [vmem:[#allocation61_spill] sm:$0xff] }
 0x12a   : > { %v865_v42 = vsel %vm7644_vm1, %v835_v40, -inf  ;;  %vm764_vm8 = vmand %vm4267_vm15, %vm7646_vm0  ;;  %v795_v27 = vsel %vm763_vm7, 1, %v7293_v8  ;;  %vm7648_vm5 = vcmp.eq.s32.totalorder %v789_v4, 1  ;;  %vm824_vm6 = vcmp.eq.s32.totalorder %v4381_v0, 1 }
 0x12b   : > { %v853_v44 = vsel %vm7648_vm5, %v7647_v33, -3.4028235e+38  ;;  %v866_v15 = vmax.f32 %v862_v54, %v865_v42  ;;  %vm827_vm4 = vcmp.eq.s32.totalorder %v795_v27, 1  ;;  %v4405_v18 = vsel %vm822_vm9, %v7649_v48, -3.4028235e+38  ;;  %vm7651_vm14 = vmmov %vm7644_vm1 }
 0x12c   : > { %v867_v40 = vsel %vm7644_vm1, %v837_v25, -inf  ;;  %v855_v5 = vsel %vm823_vm2, %v7650_v26, -3.4028235e+38  ;;  %v857_v39 = vsel %vm825_vm3, %v3687_v50, -3.4028235e+38  ;;  %v869_v61 = vsel %vm7651_vm14, %v839_v32, -inf  ;;  %vm7652_vm3 = vmmov %vm7644_vm1 }
 0x12d   : > { %v868_v41 = vmax.f32 %v864_v1, %v867_v40  ;;  %vm1007_vm5 = vcmp.le.s32.totalorder %v4109_v43, 0  ;;  %vm1024_vm7 = vcmp.gt.s32.totalorder %v4112_v12, 0  ;;  %v4421_v25 = vsel %vm764_vm8, 1, %v7293_v8  ;;  %vm7653_vm2 = vmmov %vm7644_vm1 }
 0x12e   : > { %v870_v4 = vmax.f32 %v866_v15, %v869_v61  ;;  %v871_v50 = vsel %vm7652_vm3, %v841_v2, -inf  ;;  %v873_v32 = vsel %vm7653_vm2, %v843_v21, -inf  ;;  %v859_v24 = vsel %vm827_vm4, %v3692_v11, -3.4028235e+38  ;;  %vm7654_vm15 = vmmov %vm7644_vm1 }
 0x12f   : > { %v872_v54 = vmax.f32 %v868_v41, %v871_v50  ;;  %v875_v1 = vsel %vm7654_vm15, %v845_v31, -inf  ;;  %vm7655_vm8 = vmmov %vm7644_vm1  ;;  %v881_v26 = vsel %vm7644_vm1, %v851_v34, -inf  ;;  %v892_v31 = vsel %vm7644_vm1, %v4248_v30, -inf }
 0x130   : > { %v877_v61 = vsel %vm7655_vm8, %v847_v36, -inf  ;;  %v874_v2 = vmax.f32 %v870_v4, %v873_v32  ;;  %vm7656_vm2 = vmmov %vm7644_vm1  ;;  %v856_v50 = vsel %vm824_vm6, %v3660_v20, -3.4028235e+38  ;;  %vm7689_vm9 = vcmp.le.s32.totalorder %v4109_v43, 3 }
 0x131   : > { %v879_v21 = vsel %vm7656_vm2, %v849_v53, -inf  ;;  %vm7657_vm14 = vmmov %vm7644_vm1  ;;  %v876_v11 = vmax.f32 %v872_v54, %v875_v1  ;;  %vm1028_vm2 = vcmp.gt.s32.totalorder %v4112_v12, 4  ;;  %vm7711_vm0 = vcmp.gt.s32.totalorder %v4112_v12, 7 }
 0x132   : > { %v883_v42 = vsel %vm7657_vm14, %v853_v44, -inf  ;;  %vm7659_vm8 = vmmov %vm7644_vm1  ;;  %v878_v36 = vmax.f32 %v874_v2, %v877_v61 }
 0x133   : > { %v885_v41 = vsel %vm7659_vm8, %v855_v5, -inf  ;;  %vm7660_vm3 = vmmov %vm7644_vm1  ;;  %v880_v30 = vmax.f32 %v876_v11, %v879_v21  ;;  %vm7676_vm8 = vcmp.eq.s32.totalorder %v4398_v60, 1 }
 0x134   : > { %v887_v53 = vsel %vm7660_vm3, %v857_v39, -inf  ;;  %vm7661_vm4 = vmmov %vm7644_vm1 }
 0x135   : > { %v893_v34 = vsel %vm7661_vm4, %v4259_v13, -inf  ;;  %vm7662_vm15 = vmmov %vm7644_vm1  ;;  %v884_v15 = vmax.f32 %v880_v30, %v883_v42 }
 0x136   : > { %v894_v5 = vsel %vm7662_vm15, %v4278_v19, -inf  ;;  %vm7663_vm3 = vmmov %vm7644_vm1  ;;  %v882_v19 = vmax.f32 %v878_v36, %v881_v26 }
 0x137   : > { %v896_v39 = vsel %vm7663_vm3, %v4289_v22, -inf  ;;  %v895_v27 = vmax.f32 %v892_v31, %v894_v5  ;;  %vm7664_vm4 = vmmov %vm7644_vm1  ;;  %v900_v22 = vsel %vm7644_vm1, %v4311_v10, -inf  ;;  %v888_v32 = vmax.f32 %v884_v15, %v887_v53 }
 0x138   : > { %v897_v33 = vmax.f32 %v893_v34, %v896_v39  ;;  %v898_v13 = vsel %vm7664_vm4, %v4300_v9, -inf  ;;  %vm7666_vm3 = vmmov %vm7644_vm1  ;;  %v7696_v34 = vmov 0  ;;  %v7698_v5 = vrot.slane %v4064_v38, 4 }
 0x139   : > { %v902_v9 = vsel %vm7666_vm3, %v4322_v6, -inf  ;;  %vm7667_vm4 = vmmov %vm7644_vm1  ;;  %v899_v40 = vmax.f32 %v895_v27, %v898_v13  ;;  %v886_v6 = vmax.f32 %v882_v19, %v885_v41  ;;  %v910_v0 = vsel %vm7666_vm3, %v4367_v23, -inf }
 0x13a   : > { %v904_v44 = vsel %vm7667_vm4, %v4333_v14, -inf  ;;  %vm7668_vm15 = vmmov %vm7644_vm1  ;;  %v901_v10 = vmax.f32 %v897_v33, %v900_v22  ;;  %vm828_vm1 = vcmp.eq.s32.totalorder %v4421_v25, 1  ;;  %v906_v14 = vsel %vm7666_vm3, %v4344_v62, -inf }
 0x13b   : > { %v889_v48 = vsel %vm7668_vm15, %v859_v24, -inf  ;;  %vm7669_vm4 = vmmov %vm7666_vm3  ;;  %v903_v62 = vmax.f32 %v899_v40, %v902_v9  ;;  %v860_v23 = vsel %vm828_vm1, %v3708_v45, -3.4028235e+38  ;;  %vm7684_vm1 = vcmp.gt.s32.totalorder %v4112_v12, 2 }
 0x13c   : > { %v908_v4 = vsel %vm7669_vm4, %v4355_v3, -inf  ;;  %v905_v24 = vmax.f32 %v901_v10, %v904_v44  ;;  %v7672_v3 = vrot.slane %v4045_v29, 4  ;;  %v890_v1 = vmax.f32 %v886_v6, %v889_v48  ;;  %vm7673_vm6 = vmmov %vm7666_vm3 }
 0x13d   : > { %v912_v20 = vsel %vm7673_vm6, %v4390_v7, -inf  ;;  %vm4541_vm15 = vmand %vm1007_vm5, %vm1024_vm7  ;;  %v907_v7 = vmax.f32 %v903_v62, %v906_v14  ;;  %vm7677_vm3 = vcmp.gt.s32.totalorder %v4112_v12, 1  ;;  %vm7678_vm6 = vcmp.le.s32.totalorder %v4109_v43, 1 }
 0x13e   : > { %v521_v54 = vmax.f32 %v4045_v29, %v7672_v3  ;;  %v858_v29 = vsel %vm7676_vm8, %v3703_v51, -3.4028235e+38  ;;  %v909_v2 = vmax.f32 %v905_v24, %v908_v4  ;;  %vm4555_vm4 = vmand %vm7678_vm6, %vm7677_vm3  ;;  %v7681_v51 = vrot.slane %v4047_v47, 4 }
 0x13f   : > { %v891_v25 = vmax.f32 %v888_v32, %v890_v1  ;;  %vm7682_vm5 = vmmov %vm7657_vm14  ;;  %vm7685_vm3 = vcmp.le.s32.totalorder %v4109_v43, 2  ;;  %vm7688_vm8 = vcmp.gt.s32.totalorder %v4112_v12, 3  ;;  %v7692_v41 = vrot.slane %v4049_v17, 4 }
 0x140   : > { %v565_v60 = vmax.f32 %v4047_v47, %v7681_v51  ;;  %v914_v45 = vsel %vm7682_vm5, %v4405_v18, -inf  ;;  %vm7683_vm7 = vmmov %vm7682_vm5  ;;  %v911_v47 = vmax.f32 %v907_v7, %v910_v0  ;;  %v913_v11 = vmax.f32 %v909_v2, %v912_v20 }
 0x141   : > { %v916_v26 = vsel %vm7683_vm7, %v856_v50, -inf  ;;  %vm4576_vm6 = vmand %vm7685_vm3, %vm7684_vm1  ;;  %v4595_v53 = vmax.f32 %v4049_v17, %v7692_v41  ;;  %v522_v17 = vrot.slane %v521_v54, 2  ;;  %v4613_v39 = vmax.f32 %v4064_v38, %v7698_v5 }
 0x142   : > { %vm4588_vm14 = vmand %vm7689_vm9, %vm7688_vm8  ;;  %vm7695_vm9 = vcmp.le.s32.totalorder %v4109_v43, 4  ;;  %v915_v30 = vmax.f32 %v911_v47, %v914_v45  ;;  %v917_v27 = vmax.f32 %v913_v11, %v916_v26  ;;  %v7701_v33 = vmov 0  ;;  %v7744_v45 = vld [vmem:[#allocation13_spill] sm:$0xff]  ;;  %v7746_v26 = vld [vmem:[#allocation14_spill] sm:$0xff] }
 0x143   : > { %vm7693_vm1 = vmmov %vm7682_vm5  ;;  %v566_v13 = vrot.slane %v565_v60, 2  ;;  %v7707_v22 = vmov 0  ;;  %vm7710_vm7 = vnez %v7447_v56  ;;  %v7713_v40 = vmov 0 }
 0x144   : > { %v918_v31 = vsel %vm7693_vm1, %v858_v29, -inf  ;;  %vm7694_vm3 = vmmov %vm7693_vm1  ;;  %vm7699_vm1 = vcmp.gt.s32.totalorder %v4112_v12, 5  ;;  %v973_v48 = vsel %vm7710_vm7, %v891_v25, -3.4028235e+38  ;;  %v4675_v10 = vmax.f32 %v521_v54, %v522_v17 }
 0x145   : > { %v920_v36 = vsel %vm7694_vm3, %v860_v23, -inf  ;;  %vm4605_vm8 = vmand %vm7695_vm9, %vm1028_vm2  ;;  %vm7700_vm3 = vcmp.le.s32.totalorder %v4109_v43, 5  ;;  %vm7703_vm2 = vnez %v7416_v57  ;;  %vm7704_vm9 = vnez %v7424_v16  ;;  %v7736_v23 = vld [vmem:[#allocation12_spill] sm:$0xff] }
 0x146   : > { %v7697_v34 = vsel %vm4605_vm8, 4294967295, %v7696_v34  ;;  %vm4619_vm5 = vmand %vm7700_vm3, %vm7699_vm1  ;;  %v925_v19 = vsel %vm7703_vm2, %v891_v25, -3.4028235e+38  ;;  %v941_v38 = vsel %vm7704_vm9, %v891_v25, -3.4028235e+38  ;;  %vm7706_vm1 = vcmp.le.s32.totalorder %v4109_v43, 6 }
 0x147   : > { %v7702_v33 = vsel %vm4619_vm5, 4294967295, %v7701_v33  ;;  %vm4638_vm3 = vmand %vm7706_vm1, %vm7705_vm13  ;;  %v919_v9 = vmax.f32 %v915_v30, %v918_v31  ;;  %v921_v44 = vmax.f32 %v917_v27, %v920_v36  ;;  %vm7709_vm2 = vnez %v7437_v37  ;;  %v7753_v31 = vld [vmem:[#allocation15_spill] sm:$0xff]  ;;  %v7755_v36 = vld [vmem:[#allocation16_spill] sm:$0xff] }
 0x148   : > { %v7708_v22 = vsel %vm4638_vm3, 4294967295, %v7707_v22  ;;  %v957_v15 = vsel %vm7709_vm2, %v891_v25, -3.4028235e+38  ;;  %vm7712_vm9 = vcmp.le.s32.totalorder %v4109_v43, 7  ;;  %vm7715_vm13 = vnez %v6930_v46  ;;  %v7790_v37 = vld [vmem:[#allocation23_spill] sm:$0xff] }
 0x149   : > { %vm4652_vm12 = vmand %vm7712_vm9, %vm7711_vm0  ;;  %v610_v6 = vrot.slane %v4595_v53, 2  ;;  %v654_v14 = vrot.slane %v4613_v39, 2  ;;  %v922_v4 = vmax.f32 %v919_v9, %v921_v44  ;;  %vm7717_vm2 = vcmp.gt.s32.totalorder %v4112_v12, 8 }
 0x14a   : > { %v7714_v40 = vsel %vm4652_vm12, 4294967295, %v7713_v40  ;;  %vm7718_vm0 = vcmp.le.s32.totalorder %v4109_v43, 8  ;;  %v7719_v50 = vmov 0  ;;  %vm7722_vm7 = vcmask 64512  }
 0x14b   : > { %vm4683_vm11 = vmand %vm7718_vm0, %vm7717_vm2  ;;  %v927_v32 = vsel %vm7722_vm7, %v925_v19, -inf  ;;  %v567_v54 = vmax.f32 %v565_v60, %v566_v13  ;;  %vm7733_vm3 = vcmp.le.s32.totalorder %v4109_v43, 9  ;;  %v7734_v29 = vmov 0  ;;  %v7742_v60 = vld [vmem:[#allocation73_spill] sm:$0xff] }
 0x14c   : > { %v7720_v50 = vsel %vm4683_vm11, 4294967295, %v7719_v50  ;;  %vm7723_vm10 = vmmov %vm7722_vm7  ;;  %vm7726_vm11 = vnez %v6958_v55  ;;  %v4765_v47 = vstv %s936_s13  ;;  %vm7749_vm12 = vcmp.gt.s32.totalorder %v4112_v12, 10  ;;  %v7757_v13 = vld [vmem:[#allocation17_spill] sm:$0xff]  ;;  %s6432_s13 = scalar_lea.vmem [#allocation4], %s1748_s15 }
 0x14d   : > { %v943_v62 = vsel %vm7723_vm10, %v941_v38, -inf  ;;  %vm7724_vm9 = vmmov %vm7722_vm7  ;;  %vm7729_vm10 = vnez %v7421_v63  ;;  %v7751_v41 = vmov 0  ;;  %v4794_v30 = vstv %s952_s23 }
 0x14e   : > { %v959_v24 = vsel %vm7724_vm9, %v957_v15, -inf  ;;  %vm7725_vm2 = vmmov %vm7722_vm7  ;;  %v926_v1 = vsel %vm7729_vm10, %v922_v4, -3.4028235e+38  ;;  %vm7730_vm7 = vnez %v7428_v59  ;;  %vm7731_vm9 = vnez %v7444_v28  ;;  %v7763_v15 = vld [vmem:[#allocation18_spill] sm:$0xff] }
 0x14f   : > { %v975_v3 = vsel %vm7725_vm2, %v973_v48, -inf  ;;  %v942_v0 = vsel %vm7730_vm7, %v922_v4, -3.4028235e+38  ;;  %v958_v20 = vsel %vm7731_vm9, %v922_v4, -3.4028235e+38  ;;  %vm7732_vm2 = vcmp.gt.s32.totalorder %v4112_v12, 9 }
 0x150   : > { %vm4725_vm1 = vmand %vm7733_vm3, %vm7732_vm2  ;;  %vm7739_vm9 = vcmask 64512   ;;  %vm7743_vm2 = vnez %v7742_v60  ;;  %v4803_v19 = vmax.f32 %v4595_v53, %v610_v6  ;;  %v4808_v38 = vstv %s968_s26  ;;  %v7786_v60 = vld [vmem:[#allocation22_spill] sm:$0xff] }
 0x151   : > { %v7735_v29 = vsel %vm4725_vm1, 4294967295, %v7734_v29  ;;  %v928_v7 = vsel %vm7739_vm9, %v926_v1, -inf  ;;  %vm7740_vm7 = vmmov %vm7739_vm9  ;;  %v974_v25 = vsel %vm7743_vm2, %v922_v4, -3.4028235e+38  ;;  %vm7750_vm2 = vcmp.le.s32.totalorder %v4109_v43, 10 }
 0x152   : > { %v944_v2 = vsel %vm7740_vm7, %v942_v0, -inf  ;;  %vm7741_vm3 = vmmov %vm7740_vm7  ;;  %v929_v17 = vmax.f32 %v927_v32, %v928_v7  ;;  %vm7760_vm1 = vcmp.le.s32.totalorder %v4109_v43, 11  ;;  %v7761_v44 = vmov 0 }
 0x153   : > { %v960_v51 = vsel %vm7741_vm3, %v958_v20, -inf  ;;  %vm7748_vm7 = vmmov %vm7741_vm3  ;;  %v945_v5 = vmax.f32 %v943_v62, %v944_v2  ;;  %vm7759_vm3 = vcmp.gt.s32.totalorder %v4112_v12, 11  ;;  %v524_v48 = vrot.slane %v4675_v10, 1  ;;  %v7766_v62 = vld [vmem:[#allocation19_spill] sm:$0xff] }
 0x154   : > { %v976_v11 = vsel %vm7748_vm7, %v974_v25, -inf  ;;  %vm4774_vm10 = vmand %vm7750_vm2, %vm7749_vm12  ;;  %v961_v27 = vmax.f32 %v959_v24, %v960_v51  ;;  %v568_v6 = vrot.slane %v567_v54, 1  ;;  %v4832_v4 = vmax.f32 %v4613_v39, %v654_v14  ;;  %v7779_v51 = vld [vmem:[#allocation21_spill] sm:$0xff] }
 0x155   : > { %v7752_v41 = vsel %vm4774_vm10, 4294967295, %v7751_v41  ;;  %v977_v9 = vmax.f32 %v975_v3, %v976_v11  ;;  %vm4814_vm0 = vmand %vm7760_vm1, %vm7759_vm3  ;;  %v4837_v32 = vstv %s984_s17  ;;  %vm7767_vm1 = vnez %v7766_v62  ;;  %v7773_v3 = vld [vmem:[#allocation20_spill] sm:$0xff]  ;;  %v7846_v62 = vld [vmem:[#allocation38_spill] sm:$0xff] }
 0x156   : > { %v7762_v44 = vsel %vm4814_vm0, 4294967295, %v7761_v44  ;;  %vm7765_vm7 = vmand %vm4541_vm15, %vm7715_vm13  ;;  %vm7768_vm3 = vnez %v7708_v22  ;;  %vm7769_vm13 = vcmp.gt.s32.totalorder %v4112_v12, 12  ;;  %v7771_v24 = vmov 0 }
 0x157   : > { %v1088_v53 = vsel %vm7765_vm7, 1, %v7293_v8  ;;  %vm7770_vm7 = vcmp.le.s32.totalorder %v4109_v43, 12  ;;  %vm7775_vm9 = vnez %v6939_v49  ;;  %v4868_v1 = vstv %s8352_s25  ;;  %s1649_s25 = sshll.u32 (%p21_p7), %s1906_s8, 4  ;;  %s1650_s25 = int_to_ptr.vmem [resolvable:$true] %s1649_s25 }
 0x158   : > { %vm4847_vm0 = vmand %vm7770_vm7, %vm7769_vm13  ;;  %vm7777_vm13 = vnez %v6948_v52  ;;  %v4871_v0 = vstv %s8354_s28  ;;  %v930_v20 = vrot.slane %v929_v17, 4  ;;  %v946_v7 = vrot.slane %v945_v5, 4  ;;  %s1871_s28 = scalar_lea.vmem (%p21_p7), %s1650_s25, 1536  ;;  %p1876_p13 = scmp.lt.s32.totalorder (%p21_p7), %s1650_s25, %s1650_s25 }
 0x159   : > { %v7772_v24 = vsel %vm4847_vm0, 4294967295, %v7771_v24  ;;  %vm7776_vm8 = vmand %vm4541_vm15, %vm7775_vm9  ;;  %v962_v2 = vrot.slane %v961_v27, 4  ;;  %v978_v25 = vrot.slane %v977_v9, 4  ;;  %vm7782_vm9 = vcmp.gt.s32.totalorder %v4112_v12, 13  ;;  %p1872_p11 = scmp.ne.s32.totalorder (%p21_p7), %s1650_s25, %s1871_s28  ;;  %p1877_p0 = scmp.lt.s32.totalorder (%p21_p7), %s1871_s28, %s1871_s28 }
 0x15a   : > { %v1089_v39 = vsel %vm7776_vm8, 1, %v7293_v8  ;;  %vm7778_vm7 = vmand %vm4555_vm4, %vm7777_vm13  ;;  %v7784_v11 = vmov 0  ;;  %v4890_v28 = vstv %s1259_s12  ;;  %v4892_v59 = vstv %s1275_s29 }
 0x15b   : > { %v1090_v14 = vsel %vm7778_vm7, 1, %v7293_v8  ;;  %vm7783_vm7 = vcmp.le.s32.totalorder %v4109_v43, 13  ;;  %7788 = vst [vmem:[#allocation24_spill] sm:$0xff] %v4890_v28  ;;  %7789 = vst [vmem:[#allocation26_spill] sm:$0xff] %v4892_v59  ;;  %v4895_v61 = vmax.f32 %v4675_v10, %v524_v48  ;;  %v4897_v63 = vmax.f32 %v567_v54, %v568_v6  ;;  %v7797_v10 = vld [vmem:[#allocation25_spill] sm:$0xff]  ;;  %v4935_v6 = vld [vmem:[%s6531_s1] sm:$0xff]  ;;  %p1878_p3 = por (%p21_p7), %p1877_p0, %p1876_p13 }
 0x15c   : > { %vm4882_vm13 = vmand %vm7783_vm7, %vm7782_vm9  ;;  %vm7791_vm9 = vnez %v7790_v37  ;;  %vm7792_vm7 = vnez %v7720_v50  ;;  %vm7794_vm2 = vcmp.le.s32.totalorder %v4109_v43, 14  ;;  %v7795_v28 = vmov 0  ;;  %7802 = vst [vmem:[#allocation29_spill] sm:$0xff] %v4935_v6 }
 0x15d   : > { %v7785_v11 = vsel %vm4882_vm13, 4294967295, %v7784_v11  ;;  %vm7793_vm13 = vcmp.gt.s32.totalorder %v4112_v12, 14  ;;  %vm7798_vm5 = vnez %v7797_v10  ;;  %vm7799_vm15 = vmand %vm4555_vm4, %vm7726_vm11  ;;  %vm7803_vm12 = vcmp.eq.s32.totalorder %v1088_v53, 1  ;;  %p1879_p1 = pnand (%p21_p7), %p1878_p3, %p1872_p11 }
 0x15e   : > { %vm4908_vm0 = vmand %vm7794_vm2, %vm7793_vm13  ;;  %v4922_v54 = vsel %vm7799_vm15, 1, %v7293_v8  ;;  %vm7800_vm2 = vnez %v6968_v58  ;;  %v4939_v21 = vsel %vm7803_vm12, %v4935_v6, -3.4028235e+38  ;;  %v4941_v56 = vmax.f32 %v929_v17, %v930_v20  ;;  %v7804_v58 = vld [vmem:[#allocation28_spill] sm:$0xff] }
 0x15f   : > { %v7796_v28 = vsel %vm4908_vm0, 4294967295, %v7795_v28  ;;  %vm7801_vm13 = vmand %vm4576_vm6, %vm7800_vm2  ;;  %v4943_v59 = vmax.f32 %v945_v5, %v946_v7  ;;  %v4945_v55 = vmax.f32 %v961_v27, %v962_v2  ;;  %vm7806_vm15 = vnez %v7735_v29  ;;  %v7813_v5 = vld [vmem:[#allocation31_spill] sm:$0xff]  ;;  %v5030_v7 = vld [vmem:[%s6531_s1 + $0x10] sm:$0xff] }
 0x160   : > { %v4930_v48 = vsel %vm7801_vm13, 1, %v7293_v8  ;;  %vm7807_vm8 = vnez %v7736_v23  ;;  %v4959_v6 = vmax.f32 %v977_v9, %v978_v25  ;;  %vm7809_vm12 = vcmp.gt.s32.totalorder %v4112_v12, 15  ;;  %v4992_v12 = vld [vmem:[%s6531_s1 + $0x8] sm:$0xff]  ;;  %v7821_v9 = vld [vmem:[#allocation32_spill] sm:$0xff]  ;;  %7831 = vst [vmem:[#allocation27_spill] sm:$0xff] %v5030_v7 }
 0x161   : > { %vm7808_vm2 = vmand %vm4576_vm6, %vm7807_vm8  ;;  %vm7810_vm11 = vcmp.le.s32.totalorder %v4109_v43, 15  ;;  %v7811_v17 = vmov 0  ;;  %vm7814_vm13 = vnez %v7813_v5  ;;  %vm7815_vm6 = vnez %v7744_v45  ;;  %7819 = vst [vmem:[#allocation36_spill] sm:$0xff] %v4992_v12  ;;  %v7833_v2 = vld [vmem:[#allocation33_spill] sm:$0xff] }
 0x162   : > { %v4957_v53 = vsel %vm7808_vm2, 1, %v7293_v8  ;;  %vm4965_vm0 = vmand %vm7810_vm11, %vm7809_vm12  ;;  %vm7817_vm11 = vnez %v7746_v26  ;;  %vm7820_vm4 = vcmp.eq.s32.totalorder %v1089_v39, 1  ;;  %vm7823_vm8 = vnez %v7697_v34 }
 0x163   : > { %v7812_v17 = vsel %vm4965_vm0, 4294967295, %v7811_v17  ;;  %vm7816_vm2 = vmand %vm4588_vm14, %vm7815_vm6  ;;  %v4996_v27 = vsel %vm7820_vm4, %v4992_v12, -3.4028235e+38  ;;  %vm7828_vm0 = vnez %v7702_v33  ;;  %vm7829_vm6 = vnez %v7757_v13 }
 0x164   : > { %v4979_v42 = vsel %vm7816_vm2, 1, %v7293_v8  ;;  %vm7818_vm12 = vmand %vm4588_vm14, %vm7817_vm11  ;;  %vm7824_vm14 = vnez %v7753_v31  ;;  %vm7826_vm11 = vnez %v7755_v36 }
 0x165   : > { %v4987_v43 = vsel %vm7818_vm12, 1, %v7293_v8  ;;  %vm7825_vm12 = vmand %vm7823_vm8, %vm7824_vm14 }
 0x166   : > { %v5008_v18 = vsel %vm7825_vm12, 1, %v7293_v8  ;;  %vm7827_vm4 = vmand %vm7823_vm8, %vm7826_vm11  ;;  %vm7832_vm12 = vcmp.eq.s32.totalorder %v1090_v14, 1  ;;  %vm7847_vm11 = vnez %v7846_v62 }
 0x167   : > { %v5016_v39 = vsel %vm7827_vm4, 1, %v7293_v8  ;;  %vm7830_vm2 = vmand %vm7828_vm0, %vm7829_vm6  ;;  %v5034_v34 = vsel %vm7832_vm12, %v5030_v7, -3.4028235e+38  ;;  %vm7838_vm4 = vnez %v7773_v3  ;;  %v5261_v3 = vld [vmem:[%s6531_s1 + $0x20] sm:$0xff] }
 0x168   : > { %v5024_v20 = vsel %vm7830_vm2, 1, %v7293_v8  ;;  %vm7835_vm2 = vnez %v7763_v15  ;;  %vm7837_vm12 = vmand %vm7768_vm3, %vm7767_vm1  ;;  %v7840_v15 = vld [vmem:[#allocation35_spill] sm:$0xff]  ;;  %vm7842_vm1 = vnez %v7762_v44  ;;  %7887 = vst [vmem:[#allocation30_spill] sm:$0xff] %v5261_v3 }
 0x169   : > { %vm7836_vm14 = vmand %vm7828_vm0, %vm7835_vm2  ;;  %v5054_v14 = vsel %vm7837_vm12, 1, %v7293_v8  ;;  %vm7848_vm2 = vnez %v7786_v60  ;;  %v7855_v60 = vld [vmem:[#allocation42_spill] sm:$0xff] }
 0x16a   : > { %v5046_v25 = vsel %vm7836_vm14, 1, %v7293_v8  ;;  %vm7839_vm6 = vmand %vm7768_vm3, %vm7838_vm4  ;;  %vm7843_vm3 = vnez %v7714_v40 }
 0x16b   : > { %v5062_v33 = vsel %vm7839_vm6, 1, %v7293_v8  ;;  %vm7844_vm6 = vnez %v7779_v51  ;;  %vm7849_vm12 = vmand %vm7843_vm3, %vm7848_vm2  ;;  %v7850_v51 = vld [vmem:[#allocation39_spill] sm:$0xff] }
 0x16c   : > { %vm7845_vm4 = vmand %vm7843_vm3, %vm7844_vm6  ;;  %v5094_v7 = vsel %vm7849_vm12, 1, %v7293_v8  ;;  %vm7851_vm0 = vnez %v7850_v51  ;;  %vm7852_vm6 = vnez %v7772_v24  ;;  %v7877_v24 = vld [vmem:[#allocation50_spill] sm:$0xff]  ;;  %v7879_v51 = vld [vmem:[#allocation53_spill] sm:$0xff] }
 0x16d   : > { %v5079_v22 = vsel %vm7845_vm4, 1, %v7293_v8  ;;  %vm7853_vm8 = vmand %vm7792_vm7, %vm7791_vm9  ;;  %vm7856_vm4 = vnez %v7855_v60  ;;  %v7860_v60 = vld [vmem:[#allocation43_spill] sm:$0xff] }
 0x16e   : > { %v5108_v40 = vsel %vm7853_vm8, 1, %v7293_v8  ;;  %vm7854_vm12 = vmand %vm7792_vm7, %vm7798_vm5  ;;  %vm7857_vm8 = vnez %v7804_v58  ;;  %vm7861_vm3 = vnez %v7860_v60  ;;  %v7868_v60 = vld [vmem:[#allocation46_spill] sm:$0xff] }
 0x16f   : > { %v5116_v12 = vsel %vm7854_vm12, 1, %v7293_v8  ;;  %vm1081_vm10 = vmand %vm7852_vm6, %vm7856_vm4  ;;  %vm7862_vm4 = vnez %v7785_v11 }
 0x170   : > { %vm7858_vm9 = vmand %vm7806_vm15, %vm7857_vm8  ;;  %vm7864_vm8 = vnez %v7821_v9  ;;  %v5240_v9 = vld [vmem:[%s6531_s1 + $0x18] sm:$0xff] }
 0x171   : > { %v5130_v50 = vsel %vm7858_vm9, 1, %v7293_v8  ;;  %vm7859_vm7 = vmand %vm7806_vm15, %vm7814_vm13  ;;  %vm7863_vm9 = vnez %v7752_v41  ;;  %vm7866_vm15 = vnez %v7833_v2  ;;  %7884 = vst [vmem:[#allocation40_spill] sm:$0xff] %v5240_v9 }
 0x172   : > { %v5138_v10 = vsel %vm7859_vm7, 1, %v7293_v8  ;;  %vm1082_vm5 = vmand %vm7862_vm4, %vm7861_vm3  ;;  %vm7869_vm3 = vnez %v7868_v60  ;;  %v5193_v60 = vsel %vm1081_vm10, 1, %v7293_v8  ;;  %vm7885_vm10 = vcmp.eq.s32.totalorder %v4922_v54, 1 }
 0x173   : > { %vm7865_vm2 = vmand %vm7863_vm9, %vm7864_vm8  ;;  %v5200_v44 = vsel %vm1082_vm5, 1, %v7293_v8  ;;  %vm1139_vm14 = vcmp.eq.s32.totalorder %v5138_v10, 1  ;;  %v5245_v58 = vsel %vm7885_vm10, %v5240_v9, -3.4028235e+38  ;;  %vm7888_vm10 = vcmp.eq.s32.totalorder %v4930_v48, 1  ;;  %v5284_v48 = vld [vmem:[%s6531_s1 + $0x30] sm:$0xff] }
 0x174   : > { %v5152_v29 = vsel %vm7865_vm2, 1, %v7293_v8  ;;  %vm7867_vm7 = vmand %vm7863_vm9, %vm7866_vm15  ;;  %vm7870_vm2 = vnez %v7840_v15  ;;  %v7874_v15 = vld [vmem:[#allocation49_spill] sm:$0xff]  ;;  %v1156_v54 = vsel %vm7888_vm10, %v5261_v3, -3.4028235e+38  ;;  %7892 = vst [vmem:[#allocation34_spill] sm:$0xff] %v5284_v48  ;;  %vm7897_vm10 = vcmp.eq.s32.totalorder %v5008_v18, 1 }
 0x175   : > { %v5160_v5 = vsel %vm7867_vm7, 1, %v7293_v8  ;;  %vm1083_vm13 = vmand %vm7862_vm4, %vm7869_vm3  ;;  %vm7876_vm7 = vnez %v7796_v28  ;;  %vm7881_vm3 = vnez %v7812_v17  ;;  %v5269_v28 = vld [vmem:[%s6531_s1 + $0x28] sm:$0xff]  ;;  %v5329_v17 = vld [vmem:[%s6531_s1 + $0x50] sm:$0xff] }
 0x176   : > { %vm7871_vm8 = vmand %vm7842_vm1, %vm7870_vm2  ;;  %v5203_v62 = vsel %vm1083_vm13, 1, %v7293_v8  ;;  %vm7880_vm13 = vnez %v7879_v51  ;;  %7889 = vst [vmem:[#allocation44_spill] sm:$0xff] %v5269_v28  ;;  %vm8013_vm2 = vcmp.le.s32.totalorder %v4868_v1, 8 }
 0x177   : > { %v5174_v41 = vsel %vm7871_vm8, 1, %v7293_v8  ;;  %vm7872_vm9 = vmand %vm7842_vm1, %vm7847_vm11  ;;  %vm7875_vm8 = vnez %v7874_v15  ;;  %7900 = vst [vmem:[#allocation41_spill] sm:$0xff] %v5329_v17 }
 0x178   : > { %v5182_v2 = vsel %vm7872_vm9, 1, %v7293_v8  ;;  %vm7873_vm4 = vmand %vm7852_vm6, %vm7851_vm0  ;;  %vm7878_vm9 = vnez %v7877_v24  ;;  %vm1146_vm6 = vcmp.eq.s32.totalorder %v5200_v44, 1  ;;  %v7891_v24 = vrot.slane %v4803_v19, 1  ;;  %v7945_v44 = vld [vmem:[#allocation74_spill] sm:$0xff] }
 0x179   : > { %v5190_v11 = vsel %vm7873_vm4, 1, %v7293_v8  ;;  %vm1086_vm1 = vmand %vm7881_vm3, %vm7880_vm13  ;;  %vm7882_vm4 = vnez %v7645_v35  ;;  %vm8006_vm13 = vcmp.gt.s32.totalorder %v4871_v0, 7 }
 0x17a   : > { %vm1144_vm11 = vcmp.eq.s32.totalorder %v5190_v11, 1  ;;  %vm1087_vm12 = vmand %vm7881_vm3, %vm7882_vm4  ;;  %v5256_v37 = vsel %vm1086_vm1, 1, %v7293_v8  ;;  %v5279_v13 = vmax.f32 %v4803_v19, %v7891_v24  ;;  %vm7893_vm1 = vcmp.eq.s32.totalorder %v4979_v42, 1  ;;  %v5302_v19 = vld [vmem:[%s6531_s1 + $0x40] sm:$0xff] }
 0x17b   : > { %vm7883_vm5 = vmand %vm7876_vm7, %vm7875_vm8  ;;  %v1158_v3 = vsel %vm7893_vm1, %v5284_v48, -3.4028235e+38  ;;  %7896 = vst [vmem:[#allocation37_spill] sm:$0xff] %v5302_v19  ;;  %v1160_v42 = vsel %vm7897_vm10, %v5302_v19, -3.4028235e+38  ;;  %v5313_v24 = vsel %vm1087_vm12, 1, %v7293_v8 }
 0x17c   : > { %v5233_v51 = vsel %vm7883_vm5, 1, %v7293_v8  ;;  %vm7886_vm5 = vmand %vm7876_vm7, %vm7878_vm9  ;;  %vm7890_vm7 = vcmp.eq.s32.totalorder %v4957_v53, 1  ;;  %v5292_v53 = vld [vmem:[%s6531_s1 + $0x38] sm:$0xff]  ;;  %vm7899_vm1 = vcmp.eq.s32.totalorder %v5016_v39, 1  ;;  %vm7901_vm3 = vcmp.eq.s32.totalorder %v5024_v20, 1 }
 0x17d   : > { %v5253_v15 = vsel %vm7886_vm5, 1, %v7293_v8  ;;  %v5274_v9 = vsel %vm7890_vm7, %v5269_v28, -3.4028235e+38  ;;  %7894 = vst [vmem:[#allocation47_spill] sm:$0xff] %v5292_v53  ;;  %vm7895_vm5 = vcmp.eq.s32.totalorder %v4987_v43, 1  ;;  %v5319_v43 = vld [vmem:[%s6531_s1 + $0x48] sm:$0xff] }
 0x17e   : > { %v5297_v28 = vsel %vm7895_vm5, %v5292_v53, -3.4028235e+38  ;;  %7898 = vst [vmem:[#allocation51_spill] sm:$0xff] %v5319_v43  ;;  %v5324_v18 = vsel %vm7899_vm1, %v5319_v43, -3.4028235e+38  ;;  %v5338_v53 = vld [vmem:[%s6531_s1 + $0x58] sm:$0xff] }
 0x17f   : > { %v1162_v19 = vsel %vm7901_vm3, %v5329_v17, -3.4028235e+38  ;;  %7902 = vst [vmem:[#allocation56_spill] sm:$0xff] %v5338_v53  ;;  %vm7903_vm5 = vcmp.eq.s32.totalorder %v5046_v25, 1  ;;  %v5348_v43 = vld [vmem:[%s6531_s1 + $0x60] sm:$0xff]  ;;  %vm7905_vm10 = vcmp.eq.s32.totalorder %v5054_v14, 1 }
 0x180   : > { %v5343_v39 = vsel %vm7903_vm5, %v5338_v53, -3.4028235e+38  ;;  %7904 = vst [vmem:[#allocation45_spill] sm:$0xff] %v5348_v43  ;;  %v1164_v20 = vsel %vm7905_vm10, %v5348_v43, -3.4028235e+38  ;;  %vm7906_vm1 = vcmask 64512  }
 0x181   : > { %v5355_v17 = vsel %vm7906_vm1, %v4939_v21, -inf  ;;  %v7907_v48 = vrot.slane %v4832_v4, 1  ;;  %v5365_v25 = vld [vmem:[%s6531_s1 + $0x68] sm:$0xff]  ;;  %vm7909_vm3 = vcmp.eq.s32.totalorder %v5062_v33, 1  ;;  %v5375_v21 = vld [vmem:[%s6531_s1 + $0x70] sm:$0xff]  ;;  %vm7911_vm5 = vcmp.eq.s32.totalorder %v5079_v22, 1 }
 0x182   : > { %7908 = vst [vmem:[#allocation58_spill] sm:$0xff] %v5365_v25  ;;  %v5370_v53 = vsel %vm7909_vm3, %v5365_v25, -3.4028235e+38  ;;  %7910 = vst [vmem:[#allocation48_spill] sm:$0xff] %v5375_v21  ;;  %v5383_v14 = vld [vmem:[%s6531_s1 + $0x78] sm:$0xff]  ;;  %vm7913_vm10 = vcmp.eq.s32.totalorder %v5094_v7, 1 }
 0x183   : > { %v5360_v35 = vmax.f32 %v4832_v4, %v7907_v48  ;;  %v1166_v4 = vsel %vm7911_vm5, %v5375_v21, -3.4028235e+38  ;;  %7912 = vst [vmem:[#allocation59_spill] sm:$0xff] %v5383_v14  ;;  %v5388_v33 = vsel %vm7913_vm10, %v5383_v14, -3.4028235e+38  ;;  %v7914_v48 = vrot.slane %v4941_v56, 2 }
 0x184   : > { %v5398_v22 = vld [vmem:[%s6531_s1 + $0x80] sm:$0xff]  ;;  %vm7916_vm1 = vcmp.eq.s32.totalorder %v5108_v40, 1  ;;  %v5406_v7 = vld [vmem:[%s6531_s1 + $0x88] sm:$0xff]  ;;  %vm7918_vm3 = vcmp.eq.s32.totalorder %v5116_v12, 1  ;;  %vm7920_vm5 = vcmp.eq.s32.totalorder %v5130_v50, 1  ;;  %v5431_v12 = vld [vmem:[%s6531_s1 + $0x98] sm:$0xff] }
 0x185   : > { %v5393_v25 = vmax.f32 %v4941_v56, %v7914_v48  ;;  %7915 = vst [vmem:[#allocation52_spill] sm:$0xff] %v5398_v22  ;;  %v1168_v21 = vsel %vm7916_vm1, %v5398_v22, -3.4028235e+38  ;;  %7917 = vst [vmem:[#allocation60_spill] sm:$0xff] %v5406_v7  ;;  %v5411_v14 = vsel %vm7918_vm3, %v5406_v7, -3.4028235e+38 }
 0x186   : > { %v5416_v56 = vld [vmem:[%s6531_s1 + $0x90] sm:$0xff]  ;;  %v7921_v48 = vrot.slane %v4943_v59, 2  ;;  %7922 = vst [vmem:[#allocation62_spill] sm:$0xff] %v5431_v12  ;;  %v5436_v7 = vsel %vm1139_vm14, %v5431_v12, -3.4028235e+38  ;;  %v5441_v50 = vld [vmem:[%s6531_s1 + $0xa0] sm:$0xff] }
 0x187   : > { %7919 = vst [vmem:[#allocation54_spill] sm:$0xff] %v5416_v56  ;;  %v1170_v40 = vsel %vm7920_vm5, %v5416_v56, -3.4028235e+38  ;;  %7923 = vst [vmem:[#allocation57_spill] sm:$0xff] %v5441_v50  ;;  %vm7924_vm3 = vcmp.eq.s32.totalorder %v5152_v29, 1  ;;  %vm7926_vm5 = vcmp.eq.s32.totalorder %v5160_v5, 1 }
 0x188   : > { %v5426_v22 = vmax.f32 %v4943_v59, %v7921_v48  ;;  %v1172_v59 = vsel %vm7924_vm3, %v5441_v50, -3.4028235e+38  ;;  %v5449_v48 = vld [vmem:[%s6531_s1 + $0xa8] sm:$0xff]  ;;  %v7927_v12 = vrot.slane %v4945_v55, 2  ;;  %v5466_v29 = vld [vmem:[%s6531_s1 + $0xb0] sm:$0xff]  ;;  %vm7929_vm3 = vcmp.eq.s32.totalorder %v5174_v41, 1 }
 0x189   : > { %7925 = vst [vmem:[#allocation63_spill] sm:$0xff] %v5449_v48  ;;  %v5454_v10 = vsel %vm7926_vm5, %v5449_v48, -3.4028235e+38  ;;  %7928 = vst [vmem:[#allocation61_spill] sm:$0xff] %v5466_v29  ;;  %v1174_v5 = vsel %vm7929_vm3, %v5466_v29, -3.4028235e+38 }
 0x18a   : > { %v5461_v56 = vmax.f32 %v4945_v55, %v7927_v12  ;;  %v5474_v48 = vld [vmem:[%s6531_s1 + $0xb8] sm:$0xff]  ;;  %vm7931_vm5 = vcmp.eq.s32.totalorder %v5182_v2, 1  ;;  %v5484_v55 = vld [vmem:[%s6531_s1 + $0xc0] sm:$0xff]  ;;  %v5494_v12 = vld [vmem:[%s6531_s1 + $0xc8] sm:$0xff]  ;;  %vm7935_vm10 = vcmask 64512   ;;  %vm7947_vm7 = vcmp.eq.s32.totalorder %v5233_v51, 1 }
 0x18b   : > { %7930 = vst [vmem:[#allocation64_spill] sm:$0xff] %v5474_v48  ;;  %v5479_v50 = vsel %vm7931_vm5, %v5474_v48, -3.4028235e+38  ;;  %7932 = vst [vmem:[#allocation65_spill] sm:$0xff] %v5484_v55  ;;  %v1176_v41 = vsel %vm1144_vm11, %v5484_v55, -3.4028235e+38 }
 0x18c   : > { %7933 = vst [vmem:[#allocation12_spill] sm:$0xff] %v5494_v12  ;;  %vm7934_vm5 = vcmp.eq.s32.totalorder %v5193_v60, 1  ;;  %v1185_v48 = vsel %vm7935_vm10, %v5034_v34, -inf  ;;  %vm7936_vm1 = vmmov %vm7935_vm10  ;;  %vm8002_vm9 = vcmp.le.s32.totalorder %v4868_v1, 6 }
 0x18d   : > { %v5499_v2 = vsel %vm7934_vm5, %v5494_v12, -3.4028235e+38  ;;  %v1186_v11 = vsel %vm7936_vm1, %v1156_v54, -inf  ;;  %vm7937_vm11 = vmmov %vm7936_vm1  ;;  %v5525_v54 = vld [vmem:[%s6531_s1 + $0xd8] sm:$0xff] }
 0x18e   : > { %v1188_v55 = vsel %vm7937_vm11, %v1158_v3, -inf  ;;  %v1187_v29 = vmax.f32 %v5355_v17, %v1186_v11  ;;  %vm7938_vm5 = vmmov %vm7936_vm1  ;;  %v5517_v3 = vld [vmem:[%s6531_s1 + $0xd0] sm:$0xff]  ;;  %7941 = vst [vmem:[#allocation14_spill] sm:$0xff] %v5525_v54 }
 0x18f   : > { %v1189_v60 = vmax.f32 %v1185_v48, %v1188_v55  ;;  %v1190_v12 = vsel %vm7938_vm5, %v1160_v42, -inf  ;;  %vm7939_vm0 = vmmov %vm7936_vm1  ;;  %7940 = vst [vmem:[#allocation13_spill] sm:$0xff] %v5517_v3  ;;  %v1178_v34 = vsel %vm1146_vm6, %v5517_v3, -3.4028235e+38  ;;  %v5540_v48 = vld [vmem:[%s6531_s1 + $0xe0] sm:$0xff]  ;;  %v1202_v3 = vsel %vm7936_vm1, %v1172_v59, -inf }
 0x190   : > { %v1192_v43 = vsel %vm7939_vm0, %v1162_v19, -inf  ;;  %vm7942_vm0 = vcmp.eq.s32.totalorder %v5203_v62, 1  ;;  %vm7943_vm11 = vmmov %vm7936_vm1  ;;  %7946 = vst [vmem:[#allocation15_spill] sm:$0xff] %v5540_v48  ;;  %v1180_v62 = vsel %vm7947_vm7, %v5540_v48, -3.4028235e+38  ;;  %v1191_v55 = vmax.f32 %v1187_v29, %v1190_v12 }
 0x191   : > { %v5530_v19 = vsel %vm7942_vm0, %v5525_v54, -3.4028235e+38  ;;  %v1194_v42 = vsel %vm7943_vm11, %v1164_v20, -inf  ;;  %vm7944_vm5 = vmmov %vm7936_vm1  ;;  %v5548_v20 = vld [vmem:[%s6531_s1 + $0xf0] sm:$0xff]  ;;  %vm7948_vm0 = vcmp.eq.s32.totalorder %v5256_v37, 1  ;;  %v1193_v11 = vmax.f32 %v1189_v60, %v1192_v43  ;;  %v7949_v54 = vld [vmem:[#allocation75_spill] sm:$0xff] }
 0x192   : > { %v1196_v17 = vsel %vm7944_vm5, %v1166_v4, -inf  ;;  %v1182_v4 = vsel %vm7948_vm0, %v5548_v20, -3.4028235e+38  ;;  %vm7950_vm10 = vmmov %vm7936_vm1  ;;  %v7953_v37 = vld [vmem:[#allocation76_spill] sm:$0xff]  ;;  %v1195_v43 = vmax.f32 %v1191_v55, %v1194_v42  ;;  %vm8005_vm8 = vcmp.eq.s32.totalorder %v7949_v54, 1 }
 0x193   : > { %v1198_v51 = vsel %vm7950_vm10, %v1168_v21, -inf  ;;  %vm7951_vm7 = vmmov %vm7936_vm1  ;;  %v1197_v29 = vmax.f32 %v1193_v11, %v1196_v17  ;;  %vm7964_vm10 = vcmp.gt.s32.totalorder %v4871_v0, 0  ;;  %v934_v54 = vrot.slane %v5393_v25, 1 }
 0x194   : > { %v1200_v48 = vsel %vm7951_vm7, %v1170_v40, -inf  ;;  %vm7952_vm12 = vmmov %vm7936_vm1 }
 0x195   : > { %v1204_v8 = vsel %vm7952_vm12, %v1174_v5, -inf  ;;  %vm7954_vm11 = vmmov %vm7936_vm1  ;;  %v1201_v42 = vmax.f32 %v1197_v29, %v1200_v48  ;;  %v7966_v48 = vmov 0 }
 0x196   : > { %v1215_v12 = vsel %vm7954_vm11, %v4996_v27, -inf  ;;  %vm7955_vm6 = vmmov %vm7936_vm1  ;;  %v1199_v27 = vmax.f32 %v1195_v43, %v1198_v51 }
 0x197   : > { %v1216_v21 = vsel %vm7955_vm6, %v5245_v58, -inf  ;;  %vm7956_vm12 = vmmov %vm7936_vm1  ;;  %v7960_v58 = vld [vmem:[#allocation77_spill] sm:$0xff]  ;;  %vm7965_vm6 = vcmp.le.s32.totalorder %v4868_v1, 0 }
 0x198   : > { %v1217_v40 = vsel %vm7956_vm12, %v5274_v9, -inf  ;;  %vm7957_vm7 = vmmov %vm7936_vm1 }
 0x199   : > { %v1219_v59 = vsel %vm7957_vm7, %v5297_v28, -inf  ;;  %vm7958_vm14 = vmmov %vm7936_vm1  ;;  %v1218_v17 = vmax.f32 %v1215_v12, %v1217_v40  ;;  %v1208_v28 = vsel %vm7936_vm1, %v1178_v34, -inf }
 0x19a   : > { %v1221_v5 = vsel %vm7958_vm14, %v5324_v18, -inf  ;;  %vm7959_vm3 = vmmov %vm7936_vm1  ;;  %v1220_v55 = vmax.f32 %v1216_v21, %v1219_v59  ;;  %v5641_v21 = vld [vmem:[%s6531_s1 + $0xe8] sm:$0xff]  ;;  %v5649_v59 = vld [vmem:[%s6531_s1 + $0xf8] sm:$0xff] }
 0x19b   : > { %v1223_v60 = vsel %vm7959_vm3, %v5343_v39, -inf  ;;  %vm7961_vm12 = vmmov %vm7936_vm1 }
 0x19c   : > { %v1206_v9 = vsel %vm7961_vm12, %v1176_v41, -inf  ;;  %vm7962_vm7 = vmmov %vm7936_vm1  ;;  %v1203_v41 = vmax.f32 %v1199_v27, %v1202_v3  ;;  %v1224_v34 = vmax.f32 %v1220_v55, %v1223_v60 }
 0x19d   : > { %v1225_v18 = vsel %vm7962_vm7, %v5370_v53, -inf  ;;  %vm7963_vm14 = vmmov %vm7936_vm1  ;;  %v1205_v53 = vmax.f32 %v1201_v42, %v1204_v8  ;;  %vm7968_vm1 = vcmp.gt.s32.totalorder %v4871_v0, 1  ;;  %vm7969_vm7 = vcmp.le.s32.totalorder %v4868_v1, 1 }
 0x19e   : > { %v1227_v39 = vsel %vm7963_vm14, %v5388_v33, -inf  ;;  %vm5592_vm0 = vmand %vm7965_vm6, %vm7964_vm10  ;;  %v1222_v33 = vmax.f32 %v1218_v17, %v1221_v5  ;;  %v1231_v8 = vsel %vm7959_vm3, %v5436_v7, -inf  ;;  %v7995_v17 = vmov 0 }
 0x19f   : > { %v7967_v48 = vsel %vm5592_vm0, 4294967295, %v7966_v48  ;;  %vm5600_vm14 = vmand %vm7969_vm7, %vm7968_vm1  ;;  %vm7975_vm7 = vcmp.gt.s32.totalorder %v4871_v0, 2  ;;  %v1228_v7 = vmax.f32 %v1224_v34, %v1227_v39  ;;  %vm7989_vm1 = vcmp.gt.s32.totalorder %v4871_v0, 4 }
 0x1a0   : > { %vm7972_vm10 = vmmov %vm7959_vm3  ;;  %v1226_v29 = vmax.f32 %v1222_v33, %v1225_v18  ;;  %v966_v34 = vrot.slane %v5461_v56, 1  ;;  %vm8031_vm0 = vcmp.le.s32.totalorder %v4868_v1, 10 }
 0x1a1   : > { %v1210_v51 = vsel %vm7972_vm10, %v1180_v62, -inf  ;;  %vm7973_vm6 = vmmov %vm7959_vm3  ;;  %vm7976_vm10 = vcmp.le.s32.totalorder %v4868_v1, 2  ;;  %v7977_v62 = vmov 0  ;;  %v1232_v42 = vmax.f32 %v1228_v7, %v1231_v8 }
 0x1a2   : > { %v1212_v43 = vsel %vm7973_vm6, %v1182_v4, -inf  ;;  %vm7974_vm12 = vmmov %vm7959_vm3  ;;  %v1209_v4 = vmax.f32 %v1205_v53, %v1208_v28  ;;  %vm7980_vm3 = vcmp.gt.s32.totalorder %v4871_v0, 3 }
 0x1a3   : > { %v1229_v3 = vsel %vm7974_vm12, %v5411_v14, -inf  ;;  %vm5616_vm5 = vmand %vm7976_vm10, %vm7975_vm7  ;;  %v1207_v14 = vmax.f32 %v1203_v41, %v1206_v9  ;;  %vm7981_vm12 = vcmp.le.s32.totalorder %v4868_v1, 3  ;;  %vm7984_vm7 = vcmp.eq.s32.totalorder %v5253_v15, 1  ;;  %v8144_v15 = vld [vmem:[#allocation39_spill] sm:$0xff] }
 0x1a4   : > { %v7978_v62 = vsel %vm5616_vm5, 4294967295, %v7977_v62  ;;  %vm5634_vm6 = vmand %vm7981_vm12, %vm7980_vm3  ;;  %v1181_v40 = vsel %vm7984_vm7, %v5641_v21, -3.4028235e+38  ;;  %vm7985_vm10 = vcmp.eq.s32.totalorder %v5313_v24, 1  ;;  %v7998_v9 = vrot.slane %v4959_v6, 2 }
 0x1a5   : > { %v1183_v5 = vsel %vm7985_vm10, %v5649_v59, -3.4028235e+38  ;;  %vm7986_vm3 = vmmov %vm7954_vm11  ;;  %vm7990_vm10 = vcmp.le.s32.totalorder %v4868_v1, 4  ;;  %v1211_v24 = vmax.f32 %v1207_v14, %v1210_v51  ;;  %vm7997_vm11 = vcmp.eq.s32.totalorder %v7945_v44, 1 }
 0x1a6   : > { %v1233_v60 = vsel %vm7986_vm3, %v5454_v10, -inf  ;;  %vm7987_vm12 = vmmov %vm7986_vm3  ;;  %v1230_v10 = vmax.f32 %v1226_v29, %v1229_v3  ;;  %vm7993_vm3 = vcmp.gt.s32.totalorder %v4871_v0, 5  ;;  %v529_v55 = vsel %vm7997_vm11, 0.0, %v4895_v61 }
 0x1a7   : > { %v1235_v27 = vsel %vm7987_vm12, %v5479_v50, -inf  ;;  %vm5674_vm4 = vmand %vm7990_vm10, %vm7989_vm1  ;;  %v1213_v50 = vmax.f32 %v1209_v4, %v1212_v43  ;;  %vm7994_vm12 = vcmp.le.s32.totalorder %v4868_v1, 5  ;;  %v981_v28 = vmax.f32 %v4959_v6, %v7998_v9 }
 0x1a8   : > { %vm5682_vm7 = vmand %vm7994_vm12, %vm7993_vm3  ;;  %vm7999_vm1 = vcmask 64512   ;;  %vm8001_vm12 = vcmp.gt.s32.totalorder %v4871_v0, 6  ;;  %v573_v6 = vsel %vm8005_vm8, 0.0, %v4897_v63  ;;  %v1236_v44 = vmax.f32 %v1232_v42, %v1235_v27 }
 0x1a9   : > { %v7996_v17 = vsel %vm5682_vm7, 4294967295, %v7995_v17  ;;  %v1237_v18 = vsel %vm7999_vm1, %v5499_v2, -inf  ;;  %vm8000_vm10 = vmmov %vm7999_vm1  ;;  %v1214_v2 = vmax.f32 %v1211_v24, %v1213_v50  ;;  %v8008_v41 = vmov 0  ;;  %v8034_v24 = vld [vmem:[#allocation10_spill] sm:$0xff]  ;;  %v8036_v50 = vld [vmem:[#allocation11_spill] sm:$0xff] }
 0x1aa   : > { %v1239_v39 = vsel %vm8000_vm10, %v5530_v19, -inf  ;;  %vm5702_vm11 = vmand %vm8002_vm9, %vm8001_vm12  ;;  %v1234_v19 = vmax.f32 %v1230_v10, %v1233_v60  ;;  %vm8007_vm9 = vcmp.le.s32.totalorder %v4868_v1, 7  ;;  %vm8010_vm8 = vcmp.eq.s32.totalorder %v7953_v37, 1 }
 0x1ab   : > { %vm5717_vm12 = vmand %vm8007_vm9, %vm8006_vm13  ;;  %v5724_v63 = vsel %vm8010_vm8, 0.0, %v5279_v13  ;;  %v1241_v53 = vsel %vm7999_vm1, %v1181_v40, -inf  ;;  %vm8012_vm9 = vcmp.gt.s32.totalorder %v4871_v0, 8  ;;  %v8014_v37 = vmov 0 }
 0x1ac   : > { %v8009_v41 = vsel %vm5717_vm12, 4294967295, %v8008_v41  ;;  %vm8011_vm3 = vmmov %vm7999_vm1  ;;  %v950_v13 = vrot.slane %v5426_v22, 1  ;;  %v1238_v51 = vmax.f32 %v1234_v19, %v1237_v18  ;;  %v1240_v43 = vmax.f32 %v1236_v44, %v1239_v39  ;;  %v8052_v44 = vld [vmem:[#allocation17_spill] sm:$0xff] }
 0x1ad   : > { %v1243_v33 = vsel %vm8011_vm3, %v1183_v5, -inf  ;;  %vm5737_vm15 = vmand %vm8013_vm2, %vm8012_vm9  ;;  %vm8016_vm3 = vcmp.gt.s32.totalorder %v4871_v0, 9  ;;  %vm8017_vm8 = vcmp.le.s32.totalorder %v4868_v1, 9  ;;  %v8018_v3 = vmov 0  ;;  %v8028_v5 = vld [vmem:[#allocation72_spill] sm:$0xff] }
 0x1ae   : > { %v8015_v37 = vsel %vm5737_vm15, 4294967295, %v8014_v37  ;;  %vm5748_vm13 = vmand %vm8017_vm8, %vm8016_vm3  ;;  %vm8022_vm15 = vcmp.eq.s32.totalorder %v7960_v58, 1  ;;  %v982_v14 = vrot.slane %v981_v28, 1  ;;  %vm8023_vm3 = vnez %v7416_v57  ;;  %v8026_v58 = vld [vmem:[#allocation70_spill] sm:$0xff] }
 0x1af   : > { %v8019_v3 = vsel %vm5748_vm13, 4294967295, %v8018_v3  ;;  %v5763_v8 = vsel %vm8022_vm15, 0.0, %v5360_v35  ;;  %v1248_v4 = vsel %vm8023_vm3, %v1214_v2, -3.4028235e+38  ;;  %vm8024_vm8 = vnez %v7424_v16  ;;  %v8139_v57 = vld [vmem:[#allocation38_spill] sm:$0xff] }
 0x1b0   : > { %v1264_v29 = vsel %vm8024_vm8, %v1214_v2, -3.4028235e+38  ;;  %v1242_v7 = vmax.f32 %v1238_v51, %v1241_v53  ;;  %v1244_v40 = vmax.f32 %v1240_v43, %v1243_v33  ;;  %vm8027_vm10 = vnez %v8026_v58  ;;  %v8054_v53 = vld [vmem:[#allocation67_spill] sm:$0xff] }
 0x1b1   : > { %v1280_v35 = vsel %vm8027_vm10, %v1214_v2, -3.4028235e+38  ;;  %vm8029_vm15 = vnez %v8028_v5  ;;  %vm8030_vm3 = vcmp.gt.s32.totalorder %v4871_v0, 10  ;;  %vm8039_vm12 = vcmask 1040384   ;;  %v8058_v51 = vld [vmem:[#allocation71_spill] sm:$0xff] }
 0x1b2   : > { %v1296_v60 = vsel %vm8029_vm15, %v1214_v2, -3.4028235e+38  ;;  %vm5782_vm8 = vmand %vm8031_vm0, %vm8030_vm3  ;;  %v5799_v10 = vsel %vm8039_vm12, %v529_v55, %v573_v6  ;;  %v5804_v42 = vstv %s1291_s16  ;;  %v5806_v9 = vstv %s1307_s7 }
 0x1b3   : > { %v935_v18 = vmax.f32 %v5393_v25, %v934_v54  ;;  %v951_v39 = vmax.f32 %v5426_v22, %v950_v13  ;;  %v967_v55 = vmax.f32 %v5461_v56, %v966_v34  ;;  %v1245_v6 = vmax.f32 %v1242_v7, %v1244_v40  ;;  %v8056_v13 = vld [vmem:[#allocation69_spill] sm:$0xff] }
 0x1b4   : > { %vm8041_vm12 = vcmp.gt.s32.totalorder %v4871_v0, 11  ;;  %vm8042_vm13 = vcmp.le.s32.totalorder %v4868_v1, 11  ;;  %v8043_v2 = vmov 0  ;;  %vm8048_vm9 = vcmask 64512  }
 0x1b5   : > { %vm5820_vm1 = vmand %vm8042_vm13, %vm8041_vm12  ;;  %v1250_v25 = vsel %vm8048_vm9, %v1248_v4, -inf  ;;  %v983_v54 = vmax.f32 %v981_v28, %v982_v14  ;;  %vm8055_vm15 = vnez %v8054_v53  ;;  %vm8057_vm3 = vnez %v8056_v13  ;;  %v8066_v28 = vld [vmem:[#allocation19_spill] sm:$0xff]  ;;  %v8068_v14 = vld [vmem:[#allocation20_spill] sm:$0xff] }
 0x1b6   : > { %v8044_v2 = vsel %vm5820_vm1, 4294967295, %v8043_v2  ;;  %vm8049_vm13 = vmmov %vm8048_vm9  ;;  %v1249_v33 = vsel %vm8055_vm15, %v1245_v6, -3.4028235e+38  ;;  %v1265_v34 = vsel %vm8057_vm3, %v1245_v6, -3.4028235e+38  ;;  %v8062_v4 = vmov 0 }
 0x1b7   : > { %v1266_v22 = vsel %vm8049_vm13, %v1264_v29, -inf  ;;  %vm8050_vm12 = vmmov %vm8048_vm9  ;;  %vm8060_vm13 = vcmp.gt.s32.totalorder %v4871_v0, 12  ;;  %v8064_v29 = vld [vmem:[#allocation18_spill] sm:$0xff]  ;;  %vm8067_vm15 = vnez %v8066_v28  ;;  %vm8070_vm2 = vcmask 64512   ;;  %v8075_v13 = vld [vmem:[#allocation21_spill] sm:$0xff] }
 0x1b8   : > { %v1282_v56 = vsel %vm8050_vm12, %v1280_v35, -inf  ;;  %vm8051_vm1 = vmmov %vm8048_vm9  ;;  %vm8059_vm9 = vnez %v8058_v51  ;;  %vm8061_vm12 = vcmp.le.s32.totalorder %v4868_v1, 12  ;;  %v1251_v7 = vsel %vm8070_vm2, %v1249_v33, -inf }
 0x1b9   : > { %v1298_v19 = vsel %vm8051_vm1, %v1296_v60, -inf  ;;  %v1281_v43 = vsel %vm8059_vm9, %v1245_v6, -3.4028235e+38  ;;  %vm5854_vm1 = vmand %vm8061_vm12, %vm8060_vm13  ;;  %v8073_v60 = vld [vmem:[#allocation73_spill] sm:$0xff]  ;;  %v1252_v53 = vmax.f32 %v1250_v25, %v1251_v7  ;;  %vm8079_vm10 = vcmp.gt.s32.totalorder %v4871_v0, 13 }
 0x1ba   : > { %v8063_v4 = vsel %vm5854_vm1, 4294967295, %v8062_v4  ;;  %vm8071_vm13 = vmmov %vm8070_vm2  ;;  %vm8074_vm1 = vnez %v8073_v60  ;;  %v8081_v33 = vmov 0  ;;  %vm8085_vm7 = vcmp.eq.s32.totalorder %v4765_v47, 1  ;;  %v8111_v60 = vld [vmem:[#allocation31_spill] sm:$0xff] }
 0x1bb   : > { %v1267_v40 = vsel %vm8071_vm13, %v1265_v34, -inf  ;;  %vm8072_vm12 = vmmov %vm8070_vm2  ;;  %v1297_v51 = vsel %vm8074_vm1, %v1245_v6, -3.4028235e+38  ;;  %v8083_v34 = vld [vmem:[#allocation22_spill] sm:$0xff]  ;;  %v5894_v6 = vsel %vm8085_vm7, 0.0, %v935_v18  ;;  %vm8086_vm5 = vcmp.eq.s32.totalorder %v4794_v30, 1 }
 0x1bc   : > { %v1283_v35 = vsel %vm8072_vm12, %v1281_v43, -inf  ;;  %v1268_v5 = vmax.f32 %v1266_v22, %v1267_v40  ;;  %vm8078_vm3 = vmmov %vm8070_vm2  ;;  %vm8080_vm2 = vcmp.le.s32.totalorder %v4868_v1, 13  ;;  %v5898_v25 = vsel %vm8086_vm5, 0.0, %v951_v39  ;;  %v8095_v30 = vld [vmem:[#allocation25_spill] sm:$0xff] }
 0x1bd   : > { %v1284_v58 = vmax.f32 %v1282_v56, %v1283_v35  ;;  %v1299_v16 = vsel %vm8078_vm3, %v1297_v51, -inf  ;;  %vm5884_vm13 = vmand %vm8080_vm2, %vm8079_vm10  ;;  %v8087_v56 = vld [vmem:[#allocation23_spill] sm:$0xff]  ;;  %vm8089_vm2 = vnez %v8015_v37  ;;  %vm8090_vm9 = vcmp.eq.s32.totalorder %v4808_v38, 1 }
 0x1be   : > { %v8082_v33 = vsel %vm5884_vm13, 4294967295, %v8081_v33  ;;  %v1300_v22 = vmax.f32 %v1298_v19, %v1299_v16  ;;  %v5907_v51 = vsel %vm8090_vm9, 0.0, %v967_v55  ;;  %v1253_v43 = vrot.slane %v1252_v53, 4  ;;  %v8098_v55 = vld [vmem:[#allocation28_spill] sm:$0xff] }
 0x1bf   : > { %v1269_v47 = vrot.slane %v1268_v5, 4  ;;  %v1285_v18 = vrot.slane %v1284_v58, 4  ;;  %vm8091_vm7 = vcmp.gt.s32.totalorder %v4871_v0, 14  ;;  %vm8092_vm5 = vcmp.le.s32.totalorder %v4868_v1, 14 }
 0x1c0   : > { %vm5913_vm1 = vmand %vm8092_vm5, %vm8091_vm7  ;;  %v8093_v16 = vmov 0  ;;  %vm8097_vm10 = vcmp.eq.s32.totalorder %v4837_v32, 1  ;;  %v1301_v39 = vrot.slane %v1300_v22, 4  ;;  %vm8100_vm12 = vnez %v8019_v3 }
 0x1c1   : > { %v8094_v16 = vsel %vm5913_vm1, 4294967295, %v8093_v16  ;;  %v5923_v38 = vsel %vm8097_vm10, 0.0, %v983_v54  ;;  %v8101_v19 = vmov 0   ;;  %vm8102_vm7 = vnez %v7967_v48  ;;  %v8115_v48 = vld [vmem:[#allocation32_spill] sm:$0xff] }
 0x1c2   : > { %vm8103_vm5 = vnez %v6930_v46  ;;  %vm8105_vm10 = vnez %v6939_v49  ;;  %v1254_v54 = vmax.f32 %v1252_v53, %v1253_v43  ;;  %v1270_v40 = vmax.f32 %v1268_v5, %v1269_v47  ;;  %v8124_v5 = vld [vmem:[#allocation24_spill] sm:$0xff]  ;;  %v8130_v43 = vld [vmem:[#allocation35_spill] sm:$0xff] }
 0x1c3   : > { %vm8104_vm1 = vmand %vm8102_vm7, %vm8103_vm5  ;;  %v1286_v35 = vmax.f32 %v1284_v58, %v1285_v18  ;;  %vm8107_vm0 = vcmp.gt.s32.totalorder %v4871_v0, 15  ;;  %vm8108_vm9 = vcmp.le.s32.totalorder %v4868_v1, 15  ;;  %v8109_v46 = vmov 0 }
 0x1c4   : > { %v5935_v7 = vsel %vm8104_vm1, 1, %v8101_v19  ;;  %vm8106_vm13 = vmand %vm8102_vm7, %vm8105_vm10  ;;  %v1302_v0 = vmax.f32 %v1300_v22, %v1301_v39  ;;  %v1255_v58 = vrot.slane %v1254_v54, 2  ;;  %v8125_v22 = vld [vmem:[#allocation33_spill] sm:$0xff]  ;;  %vm8132_vm1 = vnez %v8044_v2 }
 0x1c5   : > { %v5943_v32 = vsel %vm8106_vm13, 1, %v8101_v19  ;;  %vm5949_vm3 = vmand %vm8108_vm9, %vm8107_vm0  ;;  %vm8113_vm13 = vnez %v6948_v52  ;;  %vm8117_vm9 = vnez %v8034_v24  ;;  %vm8122_vm0 = vnez %v7736_v23  ;;  %v8186_v2 = vld [vmem:[#allocation53_spill] sm:$0xff] }
 0x1c6   : > { %v8110_v46 = vsel %vm5949_vm3, 4294967295, %v8109_v46  ;;  %vm8114_vm7 = vmand %vm5600_vm14, %vm8113_vm13  ;;  %vm8119_vm3 = vnez %v7978_v62  ;;  %vm8120_vm13 = vnez %v8036_v50  ;;  %v1271_v24 = vrot.slane %v1270_v40, 2  ;;  %v8129_v62 = vld [vmem:[#allocation26_spill] sm:$0xff] }
 0x1c7   : > { %v5963_v49 = vsel %vm8114_vm7, 1, %v8101_v19  ;;  %vm8118_vm5 = vmand %vm5600_vm14, %vm8117_vm9  ;;  %v1287_v53 = vrot.slane %v1286_v35, 2  ;;  %v1303_v50 = vrot.slane %v1302_v0, 2  ;;  %vm8131_vm14 = vnez %v8130_v43 }
 0x1c8   : > { %v5975_v1 = vsel %vm8118_vm5, 1, %v8101_v19  ;;  %vm8121_vm7 = vmand %vm8119_vm3, %vm8120_vm13  ;;  %vm8127_vm13 = vnez %v7744_v45  ;;  %vm8133_vm5 = vnez %v7746_v26  ;;  %v1256_v26 = vmax.f32 %v1254_v54, %v1255_v58 }
 0x1c9   : > { %v5983_v52 = vsel %vm8121_vm7, 1, %v8101_v19  ;;  %vm8123_vm10 = vmand %vm8119_vm3, %vm8122_vm0  ;;  %vm8137_vm0 = vnez %v7755_v36  ;;  %v1272_v18 = vmax.f32 %v1270_v40, %v1271_v24  ;;  %v1288_v39 = vmax.f32 %v1286_v35, %v1287_v53 }
 0x1ca   : > { %v5991_v11 = vsel %vm8123_vm10, 1, %v8101_v19  ;;  %vm8128_vm7 = vmand %vm5634_vm6, %vm8127_vm13  ;;  %v1304_v36 = vmax.f32 %v1302_v0, %v1303_v50  ;;  %vm8147_vm9 = vnez %v8064_v29  ;;  %v1257_v29 = vrot.slane %v1256_v26, 1  ;;  %v8152_v0 = vld [vmem:[#allocation42_spill] sm:$0xff] }
 0x1cb   : > { %v6004_v23 = vsel %vm8128_vm7, 1, %v8101_v19  ;;  %vm8134_vm13 = vmand %vm5634_vm6, %vm8133_vm5  ;;  %vm8135_vm7 = vnez %v7753_v31  ;;  %v1273_v40 = vrot.slane %v1272_v18, 1  ;;  %v1289_v35 = vrot.slane %v1288_v39, 1  ;;  %v8182_v50 = vld [vmem:[#allocation50_spill] sm:$0xff] }
 0x1cc   : > { %v6019_v45 = vsel %vm8134_vm13, 1, %v8101_v19  ;;  %vm8136_vm10 = vmand %vm5674_vm4, %vm8135_vm7  ;;  %vm8142_vm13 = vnez %v8052_v44  ;;  %v1305_v28 = vrot.slane %v1304_v36, 1 }
 0x1cd   : > { %v6027_v47 = vsel %vm8136_vm10, 1, %v8101_v19  ;;  %vm8138_vm3 = vmand %vm5674_vm4, %vm8137_vm0  ;;  %vm8141_vm10 = vnez %v7996_v17  ;;  %vm8159_vm4 = vnez %v8082_v33  ;;  %v1274_v24 = vmax.f32 %v1272_v18, %v1273_v40  ;;  %v8193_v18 = vld [vmem:[#allocation55_spill] sm:$0xff] }
 0x1ce   : > { %v6035_v12 = vsel %vm8138_vm3, 1, %v8101_v19  ;;  %vm8143_vm7 = vmand %vm8141_vm10, %vm8142_vm13  ;;  %vm8146_vm3 = vnez %v8063_v4  ;;  %v1290_v53 = vmax.f32 %v1288_v39, %v1289_v35  ;;  %v8208_v35 = vld [vmem:[#allocation27_spill] sm:$0xff] }
 0x1cf   : > { %v6047_v31 = vsel %vm8143_vm7, 1, %v8101_v19  ;;  %vm8148_vm5 = vmand %vm8141_vm10, %vm8147_vm9  ;;  %vm8150_vm7 = vnez %v8068_v14  ;;  %vm8155_vm10 = vnez %v8075_v13  ;;  %v8157_v14 = vld [vmem:[#allocation43_spill] sm:$0xff] }
 0x1d0   : > { %v6059_v54 = vsel %vm8148_vm5, 1, %v8101_v19  ;;  %vm8149_vm13 = vmand %vm5702_vm11, %vm8067_vm15  ;;  %vm8154_vm15 = vnez %v8009_v41  ;;  %vm8160_vm5 = vnez %v8083_v34  ;;  %v8166_v34 = vld [vmem:[#allocation46_spill] sm:$0xff] }
 0x1d1   : > { %v6067_v44 = vsel %vm8149_vm13, 1, %v8101_v19  ;;  %vm8151_vm0 = vmand %vm5702_vm11, %vm8150_vm7  ;;  %vm8167_vm6 = vnez %v8166_v34 }
 0x1d2   : > { %v6075_v17 = vsel %vm8151_vm0, 1, %v8101_v19  ;;  %vm8156_vm13 = vmand %vm8154_vm15, %vm8155_vm10  ;;  %vm8162_vm10 = vnez %v8087_v56  ;;  %vm8164_vm0 = vnez %v8095_v30 }
 0x1d3   : > { %v6087_v61 = vsel %vm8156_vm13, 1, %v8101_v19  ;;  %vm8161_vm9 = vmand %vm8154_vm15, %vm8160_vm5 }
 0x1d4   : > { %v6101_v13 = vsel %vm8161_vm9, 1, %v8101_v19  ;;  %vm8163_vm13 = vmand %vm8089_vm2, %vm8162_vm10  ;;  %vm8188_vm9 = vnez %v8110_v46  ;;  %vm8194_vm10 = vnez %v8193_v18 }
 0x1d5   : > { %v6109_v58 = vsel %vm8163_vm13, 1, %v8101_v19  ;;  %vm8165_vm11 = vmand %vm8089_vm2, %vm8164_vm0  ;;  %vm8168_vm13 = vnez %v8098_v55  ;;  %vm8170_vm2 = vnez %v8111_v60  ;;  %vm8172_vm0 = vnez %v8115_v48  ;;  %v8176_v55 = vld [vmem:[#allocation49_spill] sm:$0xff] }
 0x1d6   : > { %v6117_v41 = vsel %vm8165_vm11, 1, %v8101_v19  ;;  %vm8169_vm7 = vmand %vm8100_vm12, %vm8168_vm13  ;;  %v1258_v60 = vmax.f32 %v1256_v26, %v1257_v29 }
 0x1d7   : > { %v6132_v37 = vsel %vm8169_vm7, 1, %v8101_v19  ;;  %vm8171_vm11 = vmand %vm8100_vm12, %vm8170_vm2  ;;  %vm8174_vm7 = vnez %v8125_v22  ;;  %v1306_v22 = vmax.f32 %v1304_v36, %v1305_v28  ;;  %vm1456_vm2 = vcmp.eq.s32.totalorder %v6075_v17, 1  ;;  %v8210_v28 = vld [vmem:[#allocation40_spill] sm:$0xff] }
 0x1d8   : > { %v6140_v56 = vsel %vm8171_vm11, 1, %v8101_v19  ;;  %vm8173_vm15 = vmand %vm5782_vm8, %vm8172_vm0  ;;  %vm8177_vm0 = vnez %v8176_v55  ;;  %vm8187_vm11 = vnez %v8186_v2  ;;  %vm666_vm12 = vcmask 1042432   ;;  %v8229_v2 = vld [vmem:[#allocation56_spill] sm:$0xff] }
 0x1d9   : > { %v6148_v30 = vsel %vm8173_vm15, 1, %v8101_v19  ;;  %vm8175_vm13 = vmand %vm5782_vm8, %vm8174_vm7  ;;  %vm8178_vm15 = vnez %v8094_v16  ;;  %vm8180_vm7 = vnez %v8139_v57  ;;  %v8238_v17 = vld [vmem:[#allocation60_spill] sm:$0xff] }
 0x1da   : > { %v6156_v3 = vsel %vm8175_vm13, 1, %v8101_v19  ;;  %vm8179_vm8 = vmand %vm8132_vm1, %vm8131_vm14  ;;  %vm8183_vm14 = vnez %v8182_v50  ;;  %v8226_v50 = vld [vmem:[#allocation41_spill] sm:$0xff] }
 0x1db   : > { %v6171_v27 = vsel %vm8179_vm8, 1, %v8101_v19  ;;  %vm8181_vm13 = vmand %vm8132_vm1, %vm8180_vm7  ;;  %vm8184_vm1 = vnez %v8144_v15  ;;  %vm8189_vm8 = vnez %v8152_v0 }
 0x1dc   : > { %v6179_v48 = vsel %vm8181_vm13, 1, %v8101_v19  ;;  %vm8185_vm7 = vmand %vm8146_vm3, %vm8184_vm1  ;;  %vm8191_vm1 = vnez %v8157_v14  ;;  %vm1457_vm13 = vcmp.eq.s32.totalorder %v6087_v61, 1  ;;  %v8212_v14 = vld [vmem:[#allocation30_spill] sm:$0xff] }
 0x1dd   : > { %v6194_v57 = vsel %vm8185_vm7, 1, %v8101_v19  ;;  %vm8190_vm5 = vmand %vm8146_vm3, %vm8189_vm8 }
 0x1de   : > { %v6208_v43 = vsel %vm8190_vm5, 1, %v8101_v19  ;;  %vm8192_vm7 = vmand %vm8159_vm4, %vm8191_vm1  ;;  %vm1458_vm1 = vcmp.eq.s32.totalorder %v6101_v13, 1 }
 0x1df   : > { %v6216_v26 = vsel %vm8192_vm7, 1, %v8101_v19  ;;  %vm1410_vm3 = vmand %vm8188_vm9, %vm8194_vm10  ;;  %vm1459_vm10 = vcmp.eq.s32.totalorder %v6109_v58, 1  ;;  %vm8197_vm7 = vcmp.eq.s32.totalorder %v8124_v5, 1 }
 0x1e0   : > { %vm8195_vm5 = vmand %vm8159_vm4, %vm8167_vm6  ;;  %v1262_v33 = vsel %vm8197_vm7, 0.0, %v1258_v60  ;;  %vm8201_vm7 = vcmp.eq.s32.totalorder %v5806_v9, 1  ;;  %v6269_v40 = vsel %vm1410_vm3, 1, %v8101_v19  ;;  %vm8204_vm3 = vcmp.eq.s32.totalorder %v5935_v7, 1  ;;  %v8215_v60 = vld [vmem:[#allocation44_spill] sm:$0xff] }
 0x1e1   : > { %v6230_v4 = vsel %vm8195_vm5, 1, %v8101_v19  ;;  %vm8196_vm8 = vmand %vm8178_vm15, %vm8177_vm0  ;;  %vm8199_vm5 = vcmp.eq.s32.totalorder %v8129_v62, 1  ;;  %v1310_v5 = vsel %vm8201_vm7, 0.0, %v1306_v22  ;;  %vm1466_vm7 = vcmp.eq.s32.totalorder %v6179_v48, 1  ;;  %v8224_v22 = vld [vmem:[#allocation51_spill] sm:$0xff] }
 0x1e2   : > { %v6238_v39 = vsel %vm8196_vm8, 1, %v8101_v19  ;;  %vm8198_vm6 = vmand %vm8178_vm15, %vm8183_vm14  ;;  %v1278_v15 = vsel %vm8199_vm5, 0.0, %v1274_v24  ;;  %vm8200_vm8 = vcmp.eq.s32.totalorder %v5804_v42, 1  ;;  %vm1462_vm14 = vcmp.eq.s32.totalorder %v6140_v56, 1  ;;  %v8203_v42 = vld [vmem:[#allocation29_spill] sm:$0xff]  ;;  %v8247_v56 = vld [vmem:[#allocation64_spill] sm:$0xff] }
 0x1e3   : > { %v6250_v36 = vsel %vm8198_vm6, 1, %v8101_v19  ;;  %v1294_v29 = vsel %vm8200_vm8, 0.0, %v1290_v53  ;;  %vm8202_vm15 = vmand %vm8188_vm9, %vm8187_vm11  ;;  %vm1463_vm6 = vcmp.eq.s32.totalorder %v6148_v30, 1  ;;  %vm1464_vm5 = vcmp.eq.s32.totalorder %v6156_v3, 1 }
 0x1e4   : > { %v6266_v16 = vsel %vm8202_vm15, 1, %v8101_v19  ;;  %v1475_v9 = vsel %vm8204_vm3, %v8203_v42, -3.4028235e+38  ;;  %v8205_v19 = vld [vmem:[#allocation36_spill] sm:$0xff]  ;;  %vm8206_vm15 = vcmp.eq.s32.totalorder %v5943_v32, 1  ;;  %vm8207_vm8 = vcmask 1040384  }
 0x1e5   : > { %v1476_v46 = vsel %vm8206_vm15, %v8205_v19, -3.4028235e+38  ;;  %v988_v62 = vsel %vm8207_vm8, %v5894_v6, %v5898_v25  ;;  %vm1471_vm0 = vcmp.eq.s32.totalorder %v6238_v39, 1  ;;  %vm8209_vm9 = vcmp.eq.s32.totalorder %v5963_v49, 1  ;;  %vm8214_vm15 = vmmov %vm8207_vm8  ;;  %v8217_v25 = vld [vmem:[#allocation34_spill] sm:$0xff]  ;;  %v8219_v49 = vld [vmem:[#allocation47_spill] sm:$0xff] }
 0x1e6   : > { %v1477_v0 = vsel %vm8209_vm9, %v8208_v35, -3.4028235e+38  ;;  %vm8211_vm11 = vcmp.eq.s32.totalorder %v5975_v1, 1  ;;  %vm8213_vm3 = vcmp.eq.s32.totalorder %v5983_v52, 1  ;;  %v1311_v34 = vsel %vm8214_vm15, %v1262_v33, %v1278_v15  ;;  %v8222_v52 = vld [vmem:[#allocation37_spill] sm:$0xff]  ;;  %v8235_v15 = vld [vmem:[#allocation48_spill] sm:$0xff] }
 0x1e7   : > { %v1478_v7 = vsel %vm8211_vm11, %v8210_v28, -3.4028235e+38  ;;  %v1479_v32 = vsel %vm8213_vm3, %v8212_v14, -3.4028235e+38  ;;  %vm8216_vm8 = vcmp.eq.s32.totalorder %v5991_v11, 1  ;;  %vm8218_vm4 = vcmp.eq.s32.totalorder %v6004_v23, 1 }
 0x1e8   : > { %v1480_v6 = vsel %vm8216_vm8, %v8215_v60, -3.4028235e+38  ;;  %v1481_v55 = vsel %vm8218_vm4, %v8217_v25, -3.4028235e+38  ;;  %vm8220_vm9 = vcmp.eq.s32.totalorder %v6019_v45, 1  ;;  %vm8221_vm11 = vcmask 1041408  }
 0x1e9   : > { %v1482_v24 = vsel %vm8220_vm9, %v8219_v49, -3.4028235e+38  ;;  %v665_v1 = vsel %vm8221_vm11, %v5799_v10, %v5724_v63  ;;  %vm8223_vm3 = vcmp.eq.s32.totalorder %v6027_v47, 1  ;;  %vm8225_vm15 = vcmp.eq.s32.totalorder %v6035_v12, 1  ;;  %vm8228_vm4 = vmmov %vm8221_vm11  ;;  %v8231_v63 = vld [vmem:[#allocation45_spill] sm:$0xff]  ;;  %v8233_v47 = vld [vmem:[#allocation58_spill] sm:$0xff] }
 0x1ea   : > { %v1483_v53 = vsel %vm8223_vm3, %v8222_v52, -3.4028235e+38  ;;  %v1484_v11 = vsel %vm8225_vm15, %v8224_v22, -3.4028235e+38  ;;  %vm8227_vm8 = vcmp.eq.s32.totalorder %v6047_v31, 1  ;;  %v989_v45 = vsel %vm8228_vm4, %v988_v62, %v5907_v51  ;;  %vm8234_vm3 = vmmov %vm8228_vm4  ;;  %v8236_v42 = vld [vmem:[#allocation59_spill] sm:$0xff] }
 0x1eb   : > { %v1485_v23 = vsel %vm8227_vm8, %v8226_v50, -3.4028235e+38  ;;  %vm8230_vm9 = vcmp.eq.s32.totalorder %v6059_v54, 1  ;;  %vm8232_vm11 = vcmp.eq.s32.totalorder %v6067_v44, 1  ;;  %v1488_v12 = vsel %vm1456_vm2, %v8233_v47, -3.4028235e+38 }
 0x1ec   : > { %v1486_v18 = vsel %vm8230_vm9, %v8229_v2, -3.4028235e+38  ;;  %v1487_v10 = vsel %vm8232_vm11, %v8231_v63, -3.4028235e+38  ;;  %v1312_v33 = vsel %vm8234_vm3, %v1311_v34, %v1294_v29  ;;  %v1489_v31 = vsel %vm1457_vm13, %v8235_v15, -3.4028235e+38 }
 0x1ed   : > { %v1490_v51 = vsel %vm1458_vm1, %v8236_v42, -3.4028235e+38  ;;  %v8237_v54 = vld [vmem:[#allocation52_spill] sm:$0xff]  ;;  %v6345_v44 = vsel %vm666_vm12, %v665_v1, %v5763_v8  ;;  %vm8239_vm2 = vcmp.eq.s32.totalorder %v6117_v41, 1  ;;  %v8240_v62 = vld [vmem:[#allocation54_spill] sm:$0xff]  ;;  %vm8241_vm15 = vcmp.eq.s32.totalorder %v6132_v37, 1 }
 0x1ee   : > { %v1491_v19 = vsel %vm1459_vm10, %v8237_v54, -3.4028235e+38  ;;  %v1492_v29 = vsel %vm8239_vm2, %v8238_v17, -3.4028235e+38  ;;  %v1493_v61 = vsel %vm8241_vm15, %v8240_v62, -3.4028235e+38  ;;  %v6358_v58 = vsel %vm666_vm12, %v989_v45, %v5923_v38 }
 0x1ef   : > { %v8242_v35 = vld [vmem:[#allocation62_spill] sm:$0xff]  ;;  %v8243_v28 = vld [vmem:[#allocation57_spill] sm:$0xff]  ;;  %v8244_v14 = vld [vmem:[#allocation63_spill] sm:$0xff]  ;;  %vm8246_vm13 = vcmp.eq.s32.totalorder %v6171_v27, 1  ;;  %v6370_v60 = vsel %vm666_vm12, %v1312_v33, %v1310_v5  ;;  %v1498_v38 = vsel %vm1466_vm7, %v8247_v56, -3.4028235e+38 }
 0x1f0   : > { %v1494_v13 = vsel %vm1462_vm14, %v8242_v35, -3.4028235e+38  ;;  %v1495_v8 = vsel %vm1463_vm6, %v8243_v28, -3.4028235e+38  ;;  %v1496_v41 = vsel %vm1464_vm5, %v8244_v14, -3.4028235e+38 }
 0x1f1   : > { %v8245_v34 = vld [vmem:[#allocation61_spill] sm:$0xff]  ;;  %vm8249_vm1 = vcmp.eq.s32.totalorder %v6194_v57, 1  ;;  %v8250_v49 = vld [vmem:[#allocation12_spill] sm:$0xff]  ;;  %vm8251_vm10 = vcmp.eq.s32.totalorder %v6208_v43, 1  ;;  %vm8252_vm14 = vcmask 64512   ;;  %vm1472_vm4 = vcmp.eq.s32.totalorder %v6250_v36, 1 }
 0x1f2   : > { %v1497_v37 = vsel %vm8246_vm13, %v8245_v34, -3.4028235e+38  ;;  %v8248_v25 = vld [vmem:[#allocation65_spill] sm:$0xff]  ;;  %v1500_v3 = vsel %vm8251_vm10, %v8250_v49, -3.4028235e+38  ;;  %v1507_v1 = vsel %vm8252_vm14, %v1475_v9, -inf  ;;  %vm8253_vm6 = vmmov %vm8252_vm14 }
 0x1f3   : > { %v1499_v30 = vsel %vm8249_vm1, %v8248_v25, -3.4028235e+38  ;;  %v1508_v27 = vsel %vm8253_vm6, %v1477_v0, -inf  ;;  %vm8254_vm5 = vmmov %vm8253_vm6  ;;  %vm1474_vm7 = vcmp.eq.s32.totalorder %v6269_v40, 1  ;;  %v8258_v43 = vld [vmem:[#allocation13_spill] sm:$0xff]  ;;  %vm8259_vm3 = vcmp.eq.s32.totalorder %v6216_v26, 1 }
 0x1f4   : > { %v1509_v52 = vsel %vm8254_vm5, %v1479_v32, -inf  ;;  %vm8255_vm8 = vmmov %vm8254_vm5  ;;  %v1501_v9 = vsel %vm8259_vm3, %v8258_v43, -3.4028235e+38  ;;  %v8260_v45 = vld [vmem:[#allocation14_spill] sm:$0xff]  ;;  %vm8261_vm2 = vcmp.eq.s32.totalorder %v6230_v4, 1  ;;  %v8264_v2 = vld [vmem:[#allocation15_spill] sm:$0xff] }
 0x1f5   : > { %v1511_v5 = vsel %vm8255_vm8, %v1481_v55, -inf  ;;  %v1510_v48 = vmax.f32 %v1507_v1, %v1509_v52  ;;  %vm8256_vm9 = vmmov %vm8254_vm5  ;;  %v1502_v0 = vsel %vm8261_vm2, %v8260_v45, -3.4028235e+38  ;;  %v1503_v63 = vsel %vm1471_vm0, %v8264_v2, -3.4028235e+38  ;;  %v8292_v45 = vld [vmem:[#allocation70_spill] sm:$0xff] }
 0x1f6   : > { %v1512_v22 = vmax.f32 %v1508_v27, %v1511_v5  ;;  %v1513_v57 = vsel %vm8256_vm9, %v1483_v53, -inf  ;;  %vm8257_vm11 = vmmov %vm8254_vm5  ;;  %vm8265_vm1 = vcmp.eq.s32.totalorder %v6266_v16, 1 }
 0x1f7   : > { %v1515_v50 = vsel %vm8257_vm11, %v1485_v23, -inf  ;;  %vm8262_vm15 = vmmov %vm8254_vm5  ;;  %v1505_v53 = vsel %vm8265_vm1, %v5548_v20, -3.4028235e+38  ;;  %v1514_v23 = vmax.f32 %v1510_v48, %v1513_v57 }
 0x1f8   : > { %v1517_v32 = vsel %vm8262_vm15, %v1487_v10, -inf  ;;  %vm8263_vm13 = vmmov %vm8254_vm5  ;;  %v1516_v47 = vmax.f32 %v1512_v22, %v1515_v50  ;;  %v1527_v10 = vsel %vm8254_vm5, %v1497_v37, -inf }
 0x1f9   : > { %v1519_v55 = vsel %vm8263_vm13, %v1489_v31, -inf  ;;  %vm8266_vm10 = vmmov %vm8254_vm5  ;;  %v1518_v15 = vmax.f32 %v1514_v23, %v1517_v32  ;;  %v8294_v32 = vld [vmem:[#allocation72_spill] sm:$0xff] }
 0x1fa   : > { %v1521_v26 = vsel %vm8266_vm10, %v1491_v19, -inf  ;;  %vm8267_vm14 = vmmov %vm8254_vm5  ;;  %v1520_v31 = vmax.f32 %v1516_v47, %v1519_v55 }
 0x1fb   : > { %v1523_v33 = vsel %vm8267_vm14, %v1493_v61, -inf  ;;  %vm8268_vm6 = vmmov %vm8254_vm5  ;;  %v1522_v17 = vmax.f32 %v1518_v15, %v1521_v26  ;;  %v8301_v26 = vld [vmem:[#allocation67_spill] sm:$0xff] }
 0x1fc   : > { %v1525_v4 = vsel %vm8268_vm6, %v1495_v8, -inf  ;;  %vm8269_vm8 = vmmov %vm8254_vm5  ;;  %v1524_v62 = vmax.f32 %v1520_v31, %v1523_v33  ;;  %v8305_v15 = vld [vmem:[#allocation71_spill] sm:$0xff] }
 0x1fd   : > { %v1538_v39 = vsel %vm8269_vm8, %v1476_v46, -inf  ;;  %vm8270_vm0 = vmmov %vm8254_vm5 }
 0x1fe   : > { %v1539_v42 = vsel %vm8270_vm0, %v1478_v7, -inf  ;;  %vm8271_vm9 = vmmov %vm8270_vm0  ;;  %v1528_v14 = vmax.f32 %v1524_v62, %v1527_v10  ;;  %v1556_v27 = vsel %vm8270_vm0, %v1496_v41, -inf }
 0x1ff   : > { %v1540_v16 = vsel %vm8271_vm9, %v1480_v6, -inf  ;;  %vm8272_vm11 = vmmov %vm8270_vm0  ;;  %v1526_v6 = vmax.f32 %v1522_v17, %v1525_v4  ;;  %v8303_v4 = vld [vmem:[#allocation69_spill] sm:$0xff] }
 0x200   : > { %v1542_v20 = vsel %vm8272_vm11, %v1482_v24, -inf  ;;  %vm8273_vm3 = vmmov %vm8270_vm0  ;;  %v1541_v61 = vmax.f32 %v1538_v39, %v1540_v16 }
 0x201   : > { %v1544_v54 = vsel %vm8273_vm3, %v1484_v11, -inf  ;;  %vm8274_vm2 = vmmov %vm8270_vm0  ;;  %v1543_v35 = vmax.f32 %v1539_v42, %v1542_v20  ;;  %v8310_v20 = vld [vmem:[#allocation73_spill] sm:$0xff] }
 0x202   : > { %v1546_v19 = vsel %vm8274_vm2, %v1486_v18, -inf  ;;  %vm8275_vm15 = vmmov %vm8270_vm0  ;;  %v1545_v24 = vmax.f32 %v1541_v61, %v1544_v54  ;;  %vm1639_vm2 = vcmask 60416  }
 0x203   : > { %v1529_v28 = vsel %vm8275_vm15, %v1499_v30, -inf  ;;  %vm8276_vm13 = vmmov %vm8270_vm0  ;;  %v1547_v34 = vmax.f32 %v1543_v35, %v1546_v19  ;;  %1640 = vst.msk [vmem:[%s6432_s13] sm:$0xf] %vm1639_vm2, %v6345_v44  ;;  %v8290_v44 = vld [vmem:[#allocation68_spill] sm:$0xff] }
 0x204   : > { %v1531_v8 = vsel %vm8276_vm13, %v1501_v9, -inf  ;;  %vm8277_vm1 = vmmov %vm8270_vm0  ;;  %v1530_v25 = vmax.f32 %v1526_v6, %v1529_v28  ;;  %1641 = vst.msk [vmem:[%s6432_s13 + $0x4] sm:$0xf] %vm1639_vm2, %v6358_v58  ;;  %vm8291_vm13 = vnez %v8290_v44 }
 0x205   : > { %v1548_v46 = vsel %vm8277_vm1, %v1488_v12, -inf  ;;  %vm8278_vm10 = vmmov %vm8270_vm0  ;;  %v1532_v30 = vmax.f32 %v1528_v14, %v1531_v8  ;;  %v1504_v12 = vsel %vm1472_vm4, %v5641_v21, -3.4028235e+38  ;;  %1642 = vst.msk [vmem:[%s6432_s13 + $0x8] sm:$0xf] %vm1639_vm2, %v6370_v60  ;;  %vm8293_vm1 = vnez %v8292_v45 }
 0x206   : > { %v1550_v7 = vsel %vm8278_vm10, %v1490_v51, -inf  ;;  %vm8279_vm14 = vmmov %vm8270_vm0  ;;  %v1549_v49 = vmax.f32 %v1545_v24, %v1548_v46  ;;  %v1506_v51 = vsel %vm1474_vm7, %v5649_v59, -3.4028235e+38  ;;  %vm8295_vm10 = vnez %v8294_v32 }
 0x207   : > { %v1533_v11 = vsel %vm8279_vm14, %v1503_v63, -inf  ;;  %vm8280_vm6 = vmmov %vm8270_vm0  ;;  %v1551_v1 = vmax.f32 %v1547_v34, %v1550_v7 }
 0x208   : > { %v1535_v18 = vsel %vm8280_vm6, %v1505_v53, -inf  ;;  %vm8281_vm5 = vmmov %vm8270_vm0  ;;  %v1534_v5 = vmax.f32 %v1530_v25, %v1533_v11  ;;  %v1599_v25 = vstv %s1598_s22 }
 0x209   : > { %v1552_v37 = vsel %vm8281_vm5, %v1492_v29, -inf  ;;  %vm8282_vm8 = vmmov %vm8270_vm0  ;;  %v1536_v29 = vmax.f32 %v1532_v30, %v1535_v18 }
 0x20a   : > { %v1554_v56 = vsel %vm8282_vm8, %v1494_v13, -inf  ;;  %vm8283_vm9 = vmmov %vm8270_vm0  ;;  %v1553_v48 = vmax.f32 %v1549_v49, %v1552_v37 }
 0x20b   : > { %v1558_v52 = vsel %vm8283_vm9, %v1498_v38, -inf  ;;  %v1555_v13 = vmax.f32 %v1551_v1, %v1554_v56  ;;  %vm8284_vm11 = vmmov %vm8270_vm0  ;;  %v1537_v21 = vmax.f32 %v1534_v5, %v1536_v29  ;;  %vm8304_vm9 = vnez %v8303_v4 }
 0x20c   : > { %v1560_v22 = vsel %vm8284_vm11, %v1500_v3, -inf  ;;  %vm8285_vm3 = vmmov %vm8270_vm0  ;;  %v1557_v36 = vmax.f32 %v1553_v48, %v1556_v27  ;;  %v8288_v3 = vld [vmem:[#allocation66_spill] sm:$0xff]  ;;  %vm8306_vm11 = vnez %v8305_v15  ;;  %v1583_v56 = vstv %s1582_s24 }
 0x20d   : > { %v1562_v57 = vsel %vm8285_vm3, %v1502_v0, -inf  ;;  %v1559_v50 = vmax.f32 %v1555_v13, %v1558_v52  ;;  %vm8286_vm4 = vmmov %vm8270_vm0  ;;  %vm8289_vm15 = vnez %v8288_v3  ;;  %v1587_v9 = vsel %vm8291_vm13, %v1537_v21, -3.4028235e+38 }
 0x20e   : > { %v1564_v59 = vsel %vm8286_vm4, %v1504_v12, -inf  ;;  %vm8287_vm7 = vmmov %vm8270_vm0  ;;  %v1561_v41 = vmax.f32 %v1557_v36, %v1560_v22  ;;  %v1571_v43 = vsel %vm8289_vm15, %v1537_v21, -3.4028235e+38  ;;  %v1603_v0 = vsel %vm8293_vm1, %v1537_v21, -3.4028235e+38 }
 0x20f   : > { %v1566_v40 = vsel %vm8287_vm7, %v1506_v51, -inf  ;;  %v1563_v38 = vmax.f32 %v1559_v50, %v1562_v57  ;;  %v1619_v55 = vsel %vm8295_vm10, %v1537_v21, -3.4028235e+38  ;;  %vm8296_vm14 = vmmov %vm8270_vm0  ;;  %vm8311_vm15 = vnez %v8310_v20 }
 0x210   : > { %v1565_v58 = vmax.f32 %v1561_v41, %v1564_v59  ;;  %v1573_v63 = vsel %vm8296_vm14, %v1571_v43, -inf  ;;  %vm8297_vm6 = vmmov %vm8270_vm0  ;;  %v1615_v51 = vstv %s1614_s30  ;;  %v1631_v52 = vstv %s1630_s3 }
 0x211   : > { %v1567_v60 = vmax.f32 %v1563_v38, %v1566_v40  ;;  %v1589_v53 = vsel %vm8297_vm6, %v1587_v9, -inf  ;;  %vm8298_vm5 = vmmov %vm8270_vm0  ;;  %vm1584_vm1 = vcmp.eq.s32.totalorder %v1583_v56, 1  ;;  %vm1600_vm10 = vcmp.eq.s32.totalorder %v1599_v25, 1 }
 0x212   : > { %v1605_v23 = vsel %vm8298_vm5, %v1603_v0, -inf  ;;  %vm8299_vm8 = vmmov %vm8270_vm0  ;;  %vm8302_vm0 = vnez %v8301_v26  ;;  %vm1616_vm14 = vcmp.eq.s32.totalorder %v1615_v51, 1  ;;  %vm1632_vm6 = vcmp.eq.s32.totalorder %v1631_v52, 1 }
 0x213   : > { %v1568_v2 = vmax.f32 %v1565_v58, %v1567_v60  ;;  %v1621_v47 = vsel %vm8299_vm8, %v1619_v55, -inf  ;;  %vm8308_vm4 = vmmov %vm8285_vm3  ;;  %vm8315_vm5 = vcmask 1040384   ;;  %vm8316_vm8 = vcmask 1041408  }
 0x214   : > { %vm8309_vm7 = vmmov %vm8285_vm3 }
 0x215   : > { %v1572_v33 = vsel %vm8302_vm0, %v1568_v2, -3.4028235e+38  ;;  %v1588_v10 = vsel %vm8304_vm9, %v1568_v2, -3.4028235e+38  ;;  %v1604_v31 = vsel %vm8306_vm11, %v1568_v2, -3.4028235e+38  ;;  %vm8313_vm13 = vmmov %vm8285_vm3 }
 0x216   : > { %v1574_v39 = vsel %vm8285_vm3, %v1572_v33, -inf  ;;  %v1590_v42 = vsel %vm8308_vm4, %v1588_v10, -inf  ;;  %v1606_v16 = vsel %vm8309_vm7, %v1604_v31, -inf  ;;  %v1620_v54 = vsel %vm8311_vm15, %v1568_v2, -3.4028235e+38 }
 0x217   : > { %v1575_v19 = vmax.f32 %v1573_v63, %v1574_v39  ;;  %v1591_v17 = vmax.f32 %v1589_v53, %v1590_v42  ;;  %v1607_v62 = vmax.f32 %v1605_v23, %v1606_v16  ;;  %v1622_v61 = vsel %vm8313_vm13, %v1620_v54, -inf }
 0x218   : > { %v1623_v35 = vmax.f32 %v1621_v47, %v1622_v61 }
 0x219   : > { %v1576_v28 = vrot.slane %v1575_v19, 4  ;;  %v1592_v8 = vrot.slane %v1591_v17, 4  ;;  %v1608_v46 = vrot.slane %v1607_v62, 4 }
 0x21a   : > { %v1624_v7 = vrot.slane %v1623_v35, 4 }
 0x21b   : > { %v1577_v6 = vmax.f32 %v1575_v19, %v1576_v28  ;;  %v1593_v14 = vmax.f32 %v1591_v17, %v1592_v8  ;;  %v1609_v24 = vmax.f32 %v1607_v62, %v1608_v46 }
 0x21c   : > { %v1625_v34 = vmax.f32 %v1623_v35, %v1624_v7 }
 0x21d   : > { %v1578_v11 = vrot.slane %v1577_v6, 2  ;;  %v1594_v18 = vrot.slane %v1593_v14, 2  ;;  %v1610_v37 = vrot.slane %v1609_v24, 2 }
 0x21e   : > { %v1626_v30 = vrot.slane %v1625_v34, 2 }
 0x21f   : > { %v1579_v49 = vmax.f32 %v1577_v6, %v1578_v11  ;;  %v1595_v1 = vmax.f32 %v1593_v14, %v1594_v18  ;;  %v1611_v12 = vmax.f32 %v1609_v24, %v1610_v37 }
 0x220   : > { %v1627_v27 = vmax.f32 %v1625_v34, %v1626_v30 }
 0x221   : > { %v1580_v5 = vrot.slane %v1579_v49, 1  ;;  %v1596_v29 = vrot.slane %v1595_v1, 1  ;;  %v1612_v48 = vrot.slane %v1611_v12, 1 }
 0x222   : > { %v1628_v13 = vrot.slane %v1627_v27, 1 }
 0x223   : > { %v1581_v22 = vmax.f32 %v1579_v49, %v1580_v5  ;;  %v1597_v57 = vmax.f32 %v1595_v1, %v1596_v29  ;;  %v1613_v21 = vmax.f32 %v1611_v12, %v1612_v48 }
 0x224   : > { %v1629_v36 = vmax.f32 %v1627_v27, %v1628_v13 }
 0x225   : > { %v1585_v50 = vsel %vm1584_vm1, 0.0, %v1581_v22  ;;  %v1601_v59 = vsel %vm1600_vm10, 0.0, %v1597_v57  ;;  %v1617_v40 = vsel %vm1616_vm14, 0.0, %v1613_v21  ;;  %23 = sbr.rel (!%p21_p7) target bundleno = 22 (0x16), region = 32 }
 0x226   : > { %v1633_v41 = vsel %vm1632_vm6, 0.0, %v1629_v36  ;;  %v1634_v38 = vsel %vm8315_vm5, %v1585_v50, %v1601_v59 }
 0x227   : > { %v1635_v3 = vsel %vm8316_vm8, %v1634_v38, %v1617_v40 }
 0x228   : > { %v1636_v43 = vsel %vm666_vm12, %v1635_v3, %v1633_v41 }
 0x229   : > { %1643 = vst.msk [vmem:[%s6432_s13 + $0xc] sm:$0xf] %vm1639_vm2, %v1636_v43 }
 0x22a   :  { %1882 = shalt.err (!%p1879_p1)
}
 0x22b   :  { %s1907_s20 = smov 64   ;;  %s1908_s11 = smov 4  }
 0x22c   :  { %1655 = dma.vmem_to_hbm [thread:$0]  %s1650_s25, 1536, %s6532_s2, [#allocation5], %s1907_s20, %s1907_s20, %s1908_s11  }
 0x22d   :  { %1897 = dma.done.wait [#allocation5], 1536  }
 0x22e   :  { %1898 = vsyncadd [#allocation5], 4294965760 }
 0x22f   :  { %1659 = vsyncpa [#allocation5], 1 }

</bundles_post_ra>
